<compile_context>
chip_gen: v7x
topology: tpu7x:2x2x1
jax: 0.10.0
libtpu: 0.0.40
codegen_flags: <defaults>
</compile_context>

<pallas_src>
import jax
import jax.numpy as jnp
from jax.experimental import pallas as pl
from jax.experimental.pallas import tpu as pltpu

CONTEXT_SIZE = 11
EMBEDDING_DIM = 32
REALIZE_BATCH_SIZE = 5
BATCH_PAD = 8  # pad batch to a full sublane group


def ngram_kernel(ids_ref, h0_ref, emb_ref, wi_ref, bfold_ref, whg_ref, bhn_ref,
                 gamma_ref, beta_ref, w2g_ref, b2_ref, out_ref, hid_ref):
    """Shapes:
      ids:  (S*B, CTX)      int32 token ids (B already padded to 8)
      h0:   (2, B, H)       initial hidden (fwd, bwd)
      emb:  (vocab, D)      embedding table
      wi:   (CTX*D, 6H)     input->gates weights, cols = [fwd r,z,n | bwd r,z,n]
      bfold:(1, 6H)         b_ih (+ b_hh folded for r,z gates only)
      whg:  (6, H, H)       hidden->gate weights, per gate, pre-transposed (h @ whg[g])
      bhn:  (2, 1, H)       b_hh of the n gate (cannot be folded: sits inside r*(...))
      w2g:  (2, H, V)       output head split per direction (no lane concat needed)
      b2:   (1, V)
    Outputs: out (S, B, V) log-probs;  hid (2, B, H) LayerNorm'd final hidden."""
    SB, CTX = ids_ref.shape
    _, B, H = h0_ref.shape
    S = SB // B
    vocab, D = emb_ref.shape

    # ---- hoist all weights out of the loops (stay vreg/VMEM resident) -------------------
    emb = emb_ref[...]
    wi = wi_ref[...]
    wh = [whg_ref[g] for g in range(6)]          # 6 x (H, H), lane-aligned per gate
    bhn_f, bhn_b = bhn_ref[0], bhn_ref[1]        # (1, H) each
    ids = ids_ref[...]

    # ---- embedding lookup + input projection, fully batched (off the recurrence path) ---
    # x_flat[m] = concat_j emb[ids[m, j]];  gx = x_flat @ wi + bfold.
    # The gather is an exact one-hot @ table matmul (rows are 0/1), so no data-dependent
    # indexing is needed in the kernel; all 2*CTX dots are one-time MXU work.
    lane_iota = jax.lax.broadcasted_iota(jnp.int32, (SB, vocab), 1)
    gx = jnp.broadcast_to(bfold_ref[...], (SB, 6 * H))
    for j in range(CTX):                                              # static, unrolled
        onehot = (ids[:, j:j + 1] == lane_iota).astype(jnp.float32)   # (SB, vocab)
        e_j = jnp.dot(onehot, emb, preferred_element_type=jnp.float32)        # (SB, D)
        gx = gx + jnp.dot(e_j, wi[j * D:(j + 1) * D, :],
                          preferred_element_type=jnp.float32)                 # (SB, 6H)

    # one-time per-gate lane split -> every per-step slice below is an aligned (B, H) tile
    gxp = [gx[:, g * H:(g + 1) * H] for g in range(6)]   # fwd r,z,n | bwd r,z,n

    # ---- GRU cell: only the tiny h @ wh dots + gate math remain per step ----------------
    def gru_cell(t, h, gxr, gxz, gxn, whr, whz, whn, bhn):
        row = slice(t * B, (t + 1) * B)                  # static, sublane-aligned (B = 8)
        r = jax.nn.sigmoid(gxr[row] + jnp.dot(h, whr, preferred_element_type=jnp.float32))
        z = jax.nn.sigmoid(gxz[row] + jnp.dot(h, whz, preferred_element_type=jnp.float32))
        n = jnp.tanh(gxn[row] +
                     r * (jnp.dot(h, whn, preferred_element_type=jnp.float32) + bhn))
        return (1.0 - z) * n + z * h

    # ---- both directions, fully unrolled (S is small & static) --------------------------
    h = h0_ref[0]
    hf = []
    for t in range(S):
        h = gru_cell(t, h, gxp[0], gxp[1], gxp[2], wh[0], wh[1], wh[2], bhn_f)
        hf.append(h)
    h_fwd = h

    h = h0_ref[1]
    hb = [None] * S
    for t in range(S - 1, -1, -1):
        h = gru_cell(t, h, gxp[3], gxp[4], gxp[5], wh[3], wh[4], wh[5], bhn_b)
        hb[t] = h
    h_bwd = h

    # ---- output head, batched over all S*B rows (one dot pair, one lane-dense store) ----
    of = jnp.maximum(jnp.concatenate(hf, axis=0), 0.0)    # (SB, H)  sublane concat (free)
    ob = jnp.maximum(jnp.concatenate(hb, axis=0), 0.0)    # (SB, H)
    logits = (jnp.dot(of, w2g_ref[0], preferred_element_type=jnp.float32) +
              jnp.dot(ob, w2g_ref[1], preferred_element_type=jnp.float32) +
              b2_ref[...])                                 # (SB, V)
    m = jnp.max(logits, axis=-1, keepdims=True)
    lse = m + jnp.log(jnp.sum(jnp.exp(logits - m), axis=-1, keepdims=True))
    out_ref[...] = (logits - lse).reshape(S, B, logits.shape[-1])     # tile-exact reshape

    # ---- LayerNorm of final hiddens (eps=1e-5), single batched store --------------------
    hfb = jnp.stack([h_fwd, h_bwd], axis=0)                # (2, B, H)
    mean = jnp.mean(hfb, axis=-1, keepdims=True)
    var = jnp.mean(jnp.square(hfb - mean), axis=-1, keepdims=True)
    hid_ref[...] = (hfb - mean) * jax.lax.rsqrt(var + 1e-5) * gamma_ref[...] + beta_ref[...]


def ngram_forward(inputs, h0, kp):
    """inputs: (S*5, CONTEXT_SIZE-1) int32 token ids; h0: (2, 5, H); kp: packed params."""
    B = REALIZE_BATCH_SIZE
    S = inputs.shape[0] // B
    CTX = CONTEXT_SIZE - 1
    H = h0.shape[-1]
    V = kp["b2"].shape[-1]

    # pad batch 5 -> 8 (fills sublanes / MXU rows); padded rows are sliced off below
    ids = inputs.reshape(S, B, CTX)
    ids = jnp.pad(ids, ((0, 0), (0, BATCH_PAD - B), (0, 0))).reshape(S * BATCH_PAD, CTX)
    h0p = jnp.pad(h0, ((0, 0), (0, BATCH_PAD - B), (0, 0)))

    vmem = pl.BlockSpec(memory_space=pltpu.MemorySpace.VMEM)
    out, hid = pl.pallas_call(
        ngram_kernel,
        out_shape=(jax.ShapeDtypeStruct((S, BATCH_PAD, V), jnp.float32),
                   jax.ShapeDtypeStruct((2, BATCH_PAD, H), jnp.float32)),
        in_specs=[vmem] * 11,
        out_specs=(vmem, vmem),
    )(ids, h0p, kp["emb"], kp["wi_all"], kp["bfold"], kp["whg"], kp["bhn"],
      kp["gamma"], kp["beta"], kp["w2g"], kp["b2"])
    return out[:, :B, :], hid[:, :B, :]


def init_params(key, vocab_size, embedding_dim, context_size, hidden_size):
    """PyTorch-layout params (Embedding ~ N(0,1); GRU/Linear ~ U(±1/sqrt(fan)))."""
    d_in = (context_size - 1) * embedding_dim
    ks = jax.random.split(key, 11)

    def u(k, shape, bound):
        return jax.random.uniform(k, shape, jnp.float32, -bound, bound)

    bg = 1.0 / (hidden_size ** 0.5)
    bl = 1.0 / ((2 * hidden_size) ** 0.5)
    return dict(
        emb=jax.random.normal(ks[0], (vocab_size, embedding_dim), jnp.float32),
        # GRU weights in PyTorch layout: (3H, in) / (3H, H), gate order r, z, n
        w_ih_f=u(ks[1], (3 * hidden_size, d_in), bg),
        w_hh_f=u(ks[2], (3 * hidden_size, hidden_size), bg),
        b_ih_f=u(ks[3], (3 * hidden_size,), bg),
        b_hh_f=u(ks[4], (3 * hidden_size,), bg),
        w_ih_b=u(ks[5], (3 * hidden_size, d_in), bg),
        w_hh_b=u(ks[6], (3 * hidden_size, hidden_size), bg),
        b_ih_b=u(ks[7], (3 * hidden_size,), bg),
        b_hh_b=u(ks[8], (3 * hidden_size,), bg),
        ln_gamma=jnp.ones((hidden_size,), jnp.float32),
        ln_beta=jnp.zeros((hidden_size,), jnp.float32),
        w2=u(ks[9], (vocab_size, 2 * hidden_size), bl),
        b2=u(ks[10], (vocab_size,), bl),
    )


def pack_params(p):
    """One-time repack of PyTorch-layout params into the kernel layout (done off-line,
    analogous to loading a checkpoint)."""
    H = p["w_hh_f"].shape[1]

    def split3(a):  # (3H, ...) -> r, z, n
        return a[:H], a[H:2 * H], a[2 * H:]

    bir_f, biz_f, bin_f = split3(p["b_ih_f"])
    bhr_f, bhz_f, bhn_f = split3(p["b_hh_f"])
    bir_b, biz_b, bin_b = split3(p["b_ih_b"])
    bhr_b, bhz_b, bhn_b = split3(p["b_hh_b"])
    whr_f, whz_f, whn_f = split3(p["w_hh_f"])
    whr_b, whz_b, whn_b = split3(p["w_hh_b"])

    return dict(
        emb=p["emb"],
        # fused input projection weight: cols [fwd r,z,n | bwd r,z,n]
        wi_all=jnp.concatenate([p["w_ih_f"].T, p["w_ih_b"].T], axis=1),
        # b_ih everywhere; b_hh folded in for r,z only (n-gate's b_hh sits inside r*(...))
        bfold=jnp.concatenate([bir_f + bhr_f, biz_f + bhz_f, bin_f,
                               bir_b + bhr_b, biz_b + bhz_b, bin_b])[None, :],
        whg=jnp.stack([whr_f.T, whz_f.T, whn_f.T, whr_b.T, whz_b.T, whn_b.T]),
        bhn=jnp.stack([bhn_f[None, :], bhn_b[None, :]]),
        gamma=p["ln_gamma"][None, :],
        beta=p["ln_beta"][None, :],
        w2g=jnp.stack([p["w2"][:, :H].T, p["w2"][:, H:].T]),
        b2=p["b2"][None, :],
    )


def ref_forward(inputs, h0, p):
    """Plain-JAX / PyTorch-semantics reference (f32 throughout) for correctness checks."""
    embeds = jnp.take(p["emb"], inputs, axis=0)
    d_in = (CONTEXT_SIZE - 1) * EMBEDDING_DIM
    x = embeds.reshape(-1, REALIZE_BATCH_SIZE, d_in)
    S = x.shape[0]
    H = h0.shape[-1]

    def cell(x_t, h, w_ih, w_hh, b_ih, b_hh):
        gx = x_t @ w_ih.T + b_ih
        gh = h @ w_hh.T + b_hh
        r = jax.nn.sigmoid(gx[:, :H] + gh[:, :H])
        z = jax.nn.sigmoid(gx[:, H:2 * H] + gh[:, H:2 * H])
        n = jnp.tanh(gx[:, 2 * H:] + r * gh[:, 2 * H:])
        return (1.0 - z) * n + z * h

    hf, hb = [None] * S, [None] * S
    h = h0[0]
    for t in range(S):
        h = cell(x[t], h, p["w_ih_f"], p["w_hh_f"], p["b_ih_f"], p["b_hh_f"])
        hf[t] = h
    h_fwd = h
    h = h0[1]
    for t in range(S - 1, -1, -1):
        h = cell(x[t], h, p["w_ih_b"], p["w_hh_b"], p["b_ih_b"], p["b_hh_b"])
        hb[t] = h
    h_bwd = h

    out = jnp.stack([jnp.concatenate([hf[t], hb[t]], axis=-1) for t in range(S)], axis=0)
    out = jnp.maximum(out, 0.0)
    logits = out @ p["w2"].T + p["b2"]
    out = jax.nn.log_softmax(logits, axis=2)

    def ln(h):
        mean = jnp.mean(h, axis=-1, keepdims=True)
        var = jnp.mean(jnp.square(h - mean), axis=-1, keepdims=True)
        return (h - mean) * jax.lax.rsqrt(var + 1e-5) * p["ln_gamma"] + p["ln_beta"]

    hidden = jnp.stack([ln(h_fwd), ln(h_bwd)], axis=0)
    return out, hidden


if __name__ == "__main__":
    vocab_size = 128          # lane-dense logits (last dim = 128)
    hidden_size = 32
    seq_len = 4               # small demo sequence length

    key = jax.random.PRNGKey(0)
    k_idx, k_h, k_p = jax.random.split(key, 3)

    inputs = jax.random.randint(
        k_idx, (seq_len * REALIZE_BATCH_SIZE, CONTEXT_SIZE - 1), 0, vocab_size,
        dtype=jnp.int32)
    h0 = jax.random.normal(k_h, (2, REALIZE_BATCH_SIZE, hidden_size), jnp.float32)

    params = init_params(k_p, vocab_size, EMBEDDING_DIM, CONTEXT_SIZE, hidden_size)
    kparams = pack_params(params)

    fwd = jax.jit(ngram_forward)
    out, hidden = fwd(inputs, h0, kparams)
    out, hidden = jax.block_until_ready((out, hidden))

    ref_out, ref_hidden = ref_forward(inputs, h0, params)

    assert out.shape == (seq_len, REALIZE_BATCH_SIZE, vocab_size)
    assert hidden.shape == (2, REALIZE_BATCH_SIZE, hidden_size)
    assert jnp.allclose(out, ref_out, atol=1e-3, rtol=1e-3)
    assert jnp.allclose(hidden, ref_hidden, atol=1e-3, rtol=1e-3)

    print("KERNEL_OK")
</pallas_src>

<mosaic_0001>
module attributes {stable_mosaic.version = 11 : i64} {
  func.func @ngram_kernel(%arg0: memref<32x10xi32, #tpu.memory_space<vmem>>, %arg1: memref<2x8x32xf32, #tpu.memory_space<vmem>>, %arg2: memref<128x32xf32, #tpu.memory_space<vmem>>, %arg3: memref<320x192xf32, #tpu.memory_space<vmem>>, %arg4: memref<1x192xf32, #tpu.memory_space<vmem>>, %arg5: memref<6x32x32xf32, #tpu.memory_space<vmem>>, %arg6: memref<2x1x32xf32, #tpu.memory_space<vmem>>, %arg7: memref<1x32xf32, #tpu.memory_space<vmem>>, %arg8: memref<1x32xf32, #tpu.memory_space<vmem>>, %arg9: memref<2x32x128xf32, #tpu.memory_space<vmem>>, %arg10: memref<1x128xf32, #tpu.memory_space<vmem>>, %arg11: memref<4x8x128xf32, #tpu.memory_space<vmem>>, %arg12: memref<2x8x32xf32, #tpu.memory_space<vmem>>) attributes {dimension_semantics = [], scalar_prefetch = 0 : i64, scratch_operands = 0 : i64, tpu.core_type = #tpu.core_type<tc>} {
    %c0 = arith.constant 0 : index
    %c0_0 = arith.constant 0 : index
    %0 = vector.load %arg2[%c0, %c0_0] : memref<128x32xf32, #tpu.memory_space<vmem>>, vector<128x32xf32>
    %c0_1 = arith.constant 0 : index
    %c0_2 = arith.constant 0 : index
    %1 = vector.load %arg3[%c0_1, %c0_2] : memref<320x192xf32, #tpu.memory_space<vmem>>, vector<320x192xf32>
    %c0_3 = arith.constant 0 : index
    %c0_4 = arith.constant 0 : index
    %c0_5 = arith.constant 0 : index
    %2 = vector.load %arg5[%c0_3, %c0_4, %c0_5] : memref<6x32x32xf32, #tpu.memory_space<vmem>>, vector<1x32x32xf32>
    %3 = vector.shape_cast %2 : vector<1x32x32xf32> to vector<32x32xf32>
    %c1 = arith.constant 1 : index
    %c0_6 = arith.constant 0 : index
    %c0_7 = arith.constant 0 : index
    %4 = vector.load %arg5[%c1, %c0_6, %c0_7] : memref<6x32x32xf32, #tpu.memory_space<vmem>>, vector<1x32x32xf32>
    %5 = vector.shape_cast %4 : vector<1x32x32xf32> to vector<32x32xf32>
    %c2 = arith.constant 2 : index
    %c0_8 = arith.constant 0 : index
    %c0_9 = arith.constant 0 : index
    %6 = vector.load %arg5[%c2, %c0_8, %c0_9] : memref<6x32x32xf32, #tpu.memory_space<vmem>>, vector<1x32x32xf32>
    %7 = vector.shape_cast %6 : vector<1x32x32xf32> to vector<32x32xf32>
    %c3 = arith.constant 3 : index
    %c0_10 = arith.constant 0 : index
    %c0_11 = arith.constant 0 : index
    %8 = vector.load %arg5[%c3, %c0_10, %c0_11] : memref<6x32x32xf32, #tpu.memory_space<vmem>>, vector<1x32x32xf32>
    %9 = vector.shape_cast %8 : vector<1x32x32xf32> to vector<32x32xf32>
    %c4 = arith.constant 4 : index
    %c0_12 = arith.constant 0 : index
    %c0_13 = arith.constant 0 : index
    %10 = vector.load %arg5[%c4, %c0_12, %c0_13] : memref<6x32x32xf32, #tpu.memory_space<vmem>>, vector<1x32x32xf32>
    %11 = vector.shape_cast %10 : vector<1x32x32xf32> to vector<32x32xf32>
    %c5 = arith.constant 5 : index
    %c0_14 = arith.constant 0 : index
    %c0_15 = arith.constant 0 : index
    %12 = vector.load %arg5[%c5, %c0_14, %c0_15] : memref<6x32x32xf32, #tpu.memory_space<vmem>>, vector<1x32x32xf32>
    %13 = vector.shape_cast %12 : vector<1x32x32xf32> to vector<32x32xf32>
    %c0_16 = arith.constant 0 : index
    %c0_17 = arith.constant 0 : index
    %c0_18 = arith.constant 0 : index
    %14 = vector.load %arg6[%c0_16, %c0_17, %c0_18] : memref<2x1x32xf32, #tpu.memory_space<vmem>>, vector<1x1x32xf32>
    %15 = vector.shape_cast %14 : vector<1x1x32xf32> to vector<1x32xf32>
    %c1_19 = arith.constant 1 : index
    %c0_20 = arith.constant 0 : index
    %c0_21 = arith.constant 0 : index
    %16 = vector.load %arg6[%c1_19, %c0_20, %c0_21] : memref<2x1x32xf32, #tpu.memory_space<vmem>>, vector<1x1x32xf32>
    %17 = vector.shape_cast %16 : vector<1x1x32xf32> to vector<1x32xf32>
    %c0_22 = arith.constant 0 : index
    %c0_23 = arith.constant 0 : index
    %18 = vector.load %arg0[%c0_22, %c0_23] : memref<32x10xi32, #tpu.memory_space<vmem>>, vector<32x10xi32>
    %19 = tpu.iota {dimensions = array<i32: 1>} : vector<32x128xi32>
    %c0_24 = arith.constant 0 : index
    %c0_25 = arith.constant 0 : index
    %20 = vector.load %arg4[%c0_24, %c0_25] : memref<1x192xf32, #tpu.memory_space<vmem>>, vector<1x192xf32>
    %21 = vector.shape_cast %20 : vector<1x192xf32> to vector<1x192xf32>
    %22 = vector.broadcast %21 : vector<1x192xf32> to vector<32x192xf32>
    %23 = vector.extract_strided_slice %18 {offsets = [0, 0], sizes = [32, 1], strides = [1, 1]} : vector<32x10xi32> to vector<32x1xi32>
    %24 = vector.broadcast %23 : vector<32x1xi32> to vector<32x128xi32>
    %25 = arith.cmpi eq, %24, %19 : vector<32x128xi32>
    %26 = arith.extui %25 : vector<32x128xi1> to vector<32x128xi32>
    %27 = arith.sitofp %26 : vector<32x128xi32> to vector<32x128xf32>
    %cst = arith.constant dense<0.000000e+00> : vector<32x32xf32>
    %28 = tpu.matmul %27, %0, %cst {dimension_numbers = #tpu.dot_dimension_numbers<[1], [0], [0], [1], [0, 0, 1, 1], [], []>} : vector<32x128xf32>, vector<128x32xf32>, vector<32x32xf32> -> vector<32x32xf32>
    %29 = vector.extract_strided_slice %1 {offsets = [0, 0], sizes = [32, 192], strides = [1, 1]} : vector<320x192xf32> to vector<32x192xf32>
    %cst_26 = arith.constant dense<0.000000e+00> : vector<32x192xf32>
    %30 = tpu.matmul %28, %29, %cst_26 {dimension_numbers = #tpu.dot_dimension_numbers<[1], [0], [0], [1], [0, 0, 1, 1], [], []>} : vector<32x32xf32>, vector<32x192xf32>, vector<32x192xf32> -> vector<32x192xf32>
    %31 = arith.addf %22, %30 : vector<32x192xf32>
    %32 = vector.extract_strided_slice %18 {offsets = [0, 1], sizes = [32, 1], strides = [1, 1]} : vector<32x10xi32> to vector<32x1xi32>
    %33 = vector.broadcast %32 : vector<32x1xi32> to vector<32x128xi32>
    %34 = arith.cmpi eq, %33, %19 : vector<32x128xi32>
    %35 = arith.extui %34 : vector<32x128xi1> to vector<32x128xi32>
    %36 = arith.sitofp %35 : vector<32x128xi32> to vector<32x128xf32>
    %cst_27 = arith.constant dense<0.000000e+00> : vector<32x32xf32>
    %37 = tpu.matmul %36, %0, %cst_27 {dimension_numbers = #tpu.dot_dimension_numbers<[1], [0], [0], [1], [0, 0, 1, 1], [], []>} : vector<32x128xf32>, vector<128x32xf32>, vector<32x32xf32> -> vector<32x32xf32>
    %38 = vector.extract_strided_slice %1 {offsets = [32, 0], sizes = [32, 192], strides = [1, 1]} : vector<320x192xf32> to vector<32x192xf32>
    %cst_28 = arith.constant dense<0.000000e+00> : vector<32x192xf32>
    %39 = tpu.matmul %37, %38, %cst_28 {dimension_numbers = #tpu.dot_dimension_numbers<[1], [0], [0], [1], [0, 0, 1, 1], [], []>} : vector<32x32xf32>, vector<32x192xf32>, vector<32x192xf32> -> vector<32x192xf32>
    %40 = arith.addf %31, %39 : vector<32x192xf32>
    %41 = vector.extract_strided_slice %18 {offsets = [0, 2], sizes = [32, 1], strides = [1, 1]} : vector<32x10xi32> to vector<32x1xi32>
    %42 = vector.broadcast %41 : vector<32x1xi32> to vector<32x128xi32>
    %43 = arith.cmpi eq, %42, %19 : vector<32x128xi32>
    %44 = arith.extui %43 : vector<32x128xi1> to vector<32x128xi32>
    %45 = arith.sitofp %44 : vector<32x128xi32> to vector<32x128xf32>
    %cst_29 = arith.constant dense<0.000000e+00> : vector<32x32xf32>
    %46 = tpu.matmul %45, %0, %cst_29 {dimension_numbers = #tpu.dot_dimension_numbers<[1], [0], [0], [1], [0, 0, 1, 1], [], []>} : vector<32x128xf32>, vector<128x32xf32>, vector<32x32xf32> -> vector<32x32xf32>
    %47 = vector.extract_strided_slice %1 {offsets = [64, 0], sizes = [32, 192], strides = [1, 1]} : vector<320x192xf32> to vector<32x192xf32>
    %cst_30 = arith.constant dense<0.000000e+00> : vector<32x192xf32>
    %48 = tpu.matmul %46, %47, %cst_30 {dimension_numbers = #tpu.dot_dimension_numbers<[1], [0], [0], [1], [0, 0, 1, 1], [], []>} : vector<32x32xf32>, vector<32x192xf32>, vector<32x192xf32> -> vector<32x192xf32>
    %49 = arith.addf %40, %48 : vector<32x192xf32>
    %50 = vector.extract_strided_slice %18 {offsets = [0, 3], sizes = [32, 1], strides = [1, 1]} : vector<32x10xi32> to vector<32x1xi32>
    %51 = vector.broadcast %50 : vector<32x1xi32> to vector<32x128xi32>
    %52 = arith.cmpi eq, %51, %19 : vector<32x128xi32>
    %53 = arith.extui %52 : vector<32x128xi1> to vector<32x128xi32>
    %54 = arith.sitofp %53 : vector<32x128xi32> to vector<32x128xf32>
    %cst_31 = arith.constant dense<0.000000e+00> : vector<32x32xf32>
    %55 = tpu.matmul %54, %0, %cst_31 {dimension_numbers = #tpu.dot_dimension_numbers<[1], [0], [0], [1], [0, 0, 1, 1], [], []>} : vector<32x128xf32>, vector<128x32xf32>, vector<32x32xf32> -> vector<32x32xf32>
    %56 = vector.extract_strided_slice %1 {offsets = [96, 0], sizes = [32, 192], strides = [1, 1]} : vector<320x192xf32> to vector<32x192xf32>
    %cst_32 = arith.constant dense<0.000000e+00> : vector<32x192xf32>
    %57 = tpu.matmul %55, %56, %cst_32 {dimension_numbers = #tpu.dot_dimension_numbers<[1], [0], [0], [1], [0, 0, 1, 1], [], []>} : vector<32x32xf32>, vector<32x192xf32>, vector<32x192xf32> -> vector<32x192xf32>
    %58 = arith.addf %49, %57 : vector<32x192xf32>
    %59 = vector.extract_strided_slice %18 {offsets = [0, 4], sizes = [32, 1], strides = [1, 1]} : vector<32x10xi32> to vector<32x1xi32>
    %60 = vector.broadcast %59 : vector<32x1xi32> to vector<32x128xi32>
    %61 = arith.cmpi eq, %60, %19 : vector<32x128xi32>
    %62 = arith.extui %61 : vector<32x128xi1> to vector<32x128xi32>
    %63 = arith.sitofp %62 : vector<32x128xi32> to vector<32x128xf32>
    %cst_33 = arith.constant dense<0.000000e+00> : vector<32x32xf32>
    %64 = tpu.matmul %63, %0, %cst_33 {dimension_numbers = #tpu.dot_dimension_numbers<[1], [0], [0], [1], [0, 0, 1, 1], [], []>} : vector<32x128xf32>, vector<128x32xf32>, vector<32x32xf32> -> vector<32x32xf32>
    %65 = vector.extract_strided_slice %1 {offsets = [128, 0], sizes = [32, 192], strides = [1, 1]} : vector<320x192xf32> to vector<32x192xf32>
    %cst_34 = arith.constant dense<0.000000e+00> : vector<32x192xf32>
    %66 = tpu.matmul %64, %65, %cst_34 {dimension_numbers = #tpu.dot_dimension_numbers<[1], [0], [0], [1], [0, 0, 1, 1], [], []>} : vector<32x32xf32>, vector<32x192xf32>, vector<32x192xf32> -> vector<32x192xf32>
    %67 = arith.addf %58, %66 : vector<32x192xf32>
    %68 = vector.extract_strided_slice %18 {offsets = [0, 5], sizes = [32, 1], strides = [1, 1]} : vector<32x10xi32> to vector<32x1xi32>
    %69 = vector.broadcast %68 : vector<32x1xi32> to vector<32x128xi32>
    %70 = arith.cmpi eq, %69, %19 : vector<32x128xi32>
    %71 = arith.extui %70 : vector<32x128xi1> to vector<32x128xi32>
    %72 = arith.sitofp %71 : vector<32x128xi32> to vector<32x128xf32>
    %cst_35 = arith.constant dense<0.000000e+00> : vector<32x32xf32>
    %73 = tpu.matmul %72, %0, %cst_35 {dimension_numbers = #tpu.dot_dimension_numbers<[1], [0], [0], [1], [0, 0, 1, 1], [], []>} : vector<32x128xf32>, vector<128x32xf32>, vector<32x32xf32> -> vector<32x32xf32>
    %74 = vector.extract_strided_slice %1 {offsets = [160, 0], sizes = [32, 192], strides = [1, 1]} : vector<320x192xf32> to vector<32x192xf32>
    %cst_36 = arith.constant dense<0.000000e+00> : vector<32x192xf32>
    %75 = tpu.matmul %73, %74, %cst_36 {dimension_numbers = #tpu.dot_dimension_numbers<[1], [0], [0], [1], [0, 0, 1, 1], [], []>} : vector<32x32xf32>, vector<32x192xf32>, vector<32x192xf32> -> vector<32x192xf32>
    %76 = arith.addf %67, %75 : vector<32x192xf32>
    %77 = vector.extract_strided_slice %18 {offsets = [0, 6], sizes = [32, 1], strides = [1, 1]} : vector<32x10xi32> to vector<32x1xi32>
    %78 = vector.broadcast %77 : vector<32x1xi32> to vector<32x128xi32>
    %79 = arith.cmpi eq, %78, %19 : vector<32x128xi32>
    %80 = arith.extui %79 : vector<32x128xi1> to vector<32x128xi32>
    %81 = arith.sitofp %80 : vector<32x128xi32> to vector<32x128xf32>
    %cst_37 = arith.constant dense<0.000000e+00> : vector<32x32xf32>
    %82 = tpu.matmul %81, %0, %cst_37 {dimension_numbers = #tpu.dot_dimension_numbers<[1], [0], [0], [1], [0, 0, 1, 1], [], []>} : vector<32x128xf32>, vector<128x32xf32>, vector<32x32xf32> -> vector<32x32xf32>
    %83 = vector.extract_strided_slice %1 {offsets = [192, 0], sizes = [32, 192], strides = [1, 1]} : vector<320x192xf32> to vector<32x192xf32>
    %cst_38 = arith.constant dense<0.000000e+00> : vector<32x192xf32>
    %84 = tpu.matmul %82, %83, %cst_38 {dimension_numbers = #tpu.dot_dimension_numbers<[1], [0], [0], [1], [0, 0, 1, 1], [], []>} : vector<32x32xf32>, vector<32x192xf32>, vector<32x192xf32> -> vector<32x192xf32>
    %85 = arith.addf %76, %84 : vector<32x192xf32>
    %86 = vector.extract_strided_slice %18 {offsets = [0, 7], sizes = [32, 1], strides = [1, 1]} : vector<32x10xi32> to vector<32x1xi32>
    %87 = vector.broadcast %86 : vector<32x1xi32> to vector<32x128xi32>
    %88 = arith.cmpi eq, %87, %19 : vector<32x128xi32>
    %89 = arith.extui %88 : vector<32x128xi1> to vector<32x128xi32>
    %90 = arith.sitofp %89 : vector<32x128xi32> to vector<32x128xf32>
    %cst_39 = arith.constant dense<0.000000e+00> : vector<32x32xf32>
    %91 = tpu.matmul %90, %0, %cst_39 {dimension_numbers = #tpu.dot_dimension_numbers<[1], [0], [0], [1], [0, 0, 1, 1], [], []>} : vector<32x128xf32>, vector<128x32xf32>, vector<32x32xf32> -> vector<32x32xf32>
    %92 = vector.extract_strided_slice %1 {offsets = [224, 0], sizes = [32, 192], strides = [1, 1]} : vector<320x192xf32> to vector<32x192xf32>
    %cst_40 = arith.constant dense<0.000000e+00> : vector<32x192xf32>
    %93 = tpu.matmul %91, %92, %cst_40 {dimension_numbers = #tpu.dot_dimension_numbers<[1], [0], [0], [1], [0, 0, 1, 1], [], []>} : vector<32x32xf32>, vector<32x192xf32>, vector<32x192xf32> -> vector<32x192xf32>
    %94 = arith.addf %85, %93 : vector<32x192xf32>
    %95 = vector.extract_strided_slice %18 {offsets = [0, 8], sizes = [32, 1], strides = [1, 1]} : vector<32x10xi32> to vector<32x1xi32>
    %96 = vector.broadcast %95 : vector<32x1xi32> to vector<32x128xi32>
    %97 = arith.cmpi eq, %96, %19 : vector<32x128xi32>
    %98 = arith.extui %97 : vector<32x128xi1> to vector<32x128xi32>
    %99 = arith.sitofp %98 : vector<32x128xi32> to vector<32x128xf32>
    %cst_41 = arith.constant dense<0.000000e+00> : vector<32x32xf32>
    %100 = tpu.matmul %99, %0, %cst_41 {dimension_numbers = #tpu.dot_dimension_numbers<[1], [0], [0], [1], [0, 0, 1, 1], [], []>} : vector<32x128xf32>, vector<128x32xf32>, vector<32x32xf32> -> vector<32x32xf32>
    %101 = vector.extract_strided_slice %1 {offsets = [256, 0], sizes = [32, 192], strides = [1, 1]} : vector<320x192xf32> to vector<32x192xf32>
    %cst_42 = arith.constant dense<0.000000e+00> : vector<32x192xf32>
    %102 = tpu.matmul %100, %101, %cst_42 {dimension_numbers = #tpu.dot_dimension_numbers<[1], [0], [0], [1], [0, 0, 1, 1], [], []>} : vector<32x32xf32>, vector<32x192xf32>, vector<32x192xf32> -> vector<32x192xf32>
    %103 = arith.addf %94, %102 : vector<32x192xf32>
    %104 = vector.extract_strided_slice %18 {offsets = [0, 9], sizes = [32, 1], strides = [1, 1]} : vector<32x10xi32> to vector<32x1xi32>
    %105 = vector.broadcast %104 : vector<32x1xi32> to vector<32x128xi32>
    %106 = arith.cmpi eq, %105, %19 : vector<32x128xi32>
    %107 = arith.extui %106 : vector<32x128xi1> to vector<32x128xi32>
    %108 = arith.sitofp %107 : vector<32x128xi32> to vector<32x128xf32>
    %cst_43 = arith.constant dense<0.000000e+00> : vector<32x32xf32>
    %109 = tpu.matmul %108, %0, %cst_43 {dimension_numbers = #tpu.dot_dimension_numbers<[1], [0], [0], [1], [0, 0, 1, 1], [], []>} : vector<32x128xf32>, vector<128x32xf32>, vector<32x32xf32> -> vector<32x32xf32>
    %110 = vector.extract_strided_slice %1 {offsets = [288, 0], sizes = [32, 192], strides = [1, 1]} : vector<320x192xf32> to vector<32x192xf32>
    %cst_44 = arith.constant dense<0.000000e+00> : vector<32x192xf32>
    %111 = tpu.matmul %109, %110, %cst_44 {dimension_numbers = #tpu.dot_dimension_numbers<[1], [0], [0], [1], [0, 0, 1, 1], [], []>} : vector<32x32xf32>, vector<32x192xf32>, vector<32x192xf32> -> vector<32x192xf32>
    %112 = arith.addf %103, %111 : vector<32x192xf32>
    %113 = vector.extract_strided_slice %112 {offsets = [0, 0], sizes = [32, 32], strides = [1, 1]} : vector<32x192xf32> to vector<32x32xf32>
    %114 = vector.extract_strided_slice %112 {offsets = [0, 32], sizes = [32, 32], strides = [1, 1]} : vector<32x192xf32> to vector<32x32xf32>
    %115 = vector.extract_strided_slice %112 {offsets = [0, 64], sizes = [32, 32], strides = [1, 1]} : vector<32x192xf32> to vector<32x32xf32>
    %116 = vector.extract_strided_slice %112 {offsets = [0, 96], sizes = [32, 32], strides = [1, 1]} : vector<32x192xf32> to vector<32x32xf32>
    %117 = vector.extract_strided_slice %112 {offsets = [0, 128], sizes = [32, 32], strides = [1, 1]} : vector<32x192xf32> to vector<32x32xf32>
    %118 = vector.extract_strided_slice %112 {offsets = [0, 160], sizes = [32, 32], strides = [1, 1]} : vector<32x192xf32> to vector<32x32xf32>
    %c0_45 = arith.constant 0 : index
    %c0_46 = arith.constant 0 : index
    %c0_47 = arith.constant 0 : index
    %119 = vector.load %arg1[%c0_45, %c0_46, %c0_47] : memref<2x8x32xf32, #tpu.memory_space<vmem>>, vector<1x8x32xf32>
    %120 = vector.shape_cast %119 : vector<1x8x32xf32> to vector<8x32xf32>
    %121 = vector.extract_strided_slice %113 {offsets = [0, 0], sizes = [8, 32], strides = [1, 1]} : vector<32x32xf32> to vector<8x32xf32>
    %cst_48 = arith.constant dense<0.000000e+00> : vector<8x32xf32>
    %122 = tpu.matmul %120, %3, %cst_48 {dimension_numbers = #tpu.dot_dimension_numbers<[1], [0], [0], [1], [0, 0, 1, 1], [], []>} : vector<8x32xf32>, vector<32x32xf32>, vector<8x32xf32> -> vector<8x32xf32>
    %123 = arith.addf %121, %122 : vector<8x32xf32>
    %124 = arith.negf %123 : vector<8x32xf32>
    %125 = math.exp %124 : vector<8x32xf32>
    %cst_49 = arith.constant 1.000000e+00 : f32
    %126 = vector.broadcast %cst_49 : f32 to vector<8x32xf32>
    %127 = arith.addf %126, %125 : vector<8x32xf32>
    %128 = arith.divf %126, %127 : vector<8x32xf32>
    %129 = vector.extract_strided_slice %114 {offsets = [0, 0], sizes = [8, 32], strides = [1, 1]} : vector<32x32xf32> to vector<8x32xf32>
    %cst_50 = arith.constant dense<0.000000e+00> : vector<8x32xf32>
    %130 = tpu.matmul %120, %5, %cst_50 {dimension_numbers = #tpu.dot_dimension_numbers<[1], [0], [0], [1], [0, 0, 1, 1], [], []>} : vector<8x32xf32>, vector<32x32xf32>, vector<8x32xf32> -> vector<8x32xf32>
    %131 = arith.addf %129, %130 : vector<8x32xf32>
    %132 = arith.negf %131 : vector<8x32xf32>
    %133 = math.exp %132 : vector<8x32xf32>
    %cst_51 = arith.constant 1.000000e+00 : f32
    %134 = vector.broadcast %cst_51 : f32 to vector<8x32xf32>
    %135 = arith.addf %134, %133 : vector<8x32xf32>
    %136 = arith.divf %134, %135 : vector<8x32xf32>
    %137 = vector.extract_strided_slice %115 {offsets = [0, 0], sizes = [8, 32], strides = [1, 1]} : vector<32x32xf32> to vector<8x32xf32>
    %cst_52 = arith.constant dense<0.000000e+00> : vector<8x32xf32>
    %138 = tpu.matmul %120, %7, %cst_52 {dimension_numbers = #tpu.dot_dimension_numbers<[1], [0], [0], [1], [0, 0, 1, 1], [], []>} : vector<8x32xf32>, vector<32x32xf32>, vector<8x32xf32> -> vector<8x32xf32>
    %139 = vector.broadcast %15 : vector<1x32xf32> to vector<8x32xf32>
    %140 = arith.addf %138, %139 : vector<8x32xf32>
    %141 = arith.mulf %128, %140 : vector<8x32xf32>
    %142 = arith.addf %137, %141 : vector<8x32xf32>
    %143 = math.tanh %142 : vector<8x32xf32>
    %cst_53 = arith.constant 1.000000e+00 : f32
    %144 = vector.broadcast %cst_53 : f32 to vector<8x32xf32>
    %145 = arith.subf %144, %136 : vector<8x32xf32>
    %146 = arith.mulf %145, %143 : vector<8x32xf32>
    %147 = arith.mulf %136, %120 : vector<8x32xf32>
    %148 = arith.addf %146, %147 : vector<8x32xf32>
    %149 = vector.extract_strided_slice %113 {offsets = [8, 0], sizes = [8, 32], strides = [1, 1]} : vector<32x32xf32> to vector<8x32xf32>
    %cst_54 = arith.constant dense<0.000000e+00> : vector<8x32xf32>
    %150 = tpu.matmul %148, %3, %cst_54 {dimension_numbers = #tpu.dot_dimension_numbers<[1], [0], [0], [1], [0, 0, 1, 1], [], []>} : vector<8x32xf32>, vector<32x32xf32>, vector<8x32xf32> -> vector<8x32xf32>
    %151 = arith.addf %149, %150 : vector<8x32xf32>
    %152 = arith.negf %151 : vector<8x32xf32>
    %153 = math.exp %152 : vector<8x32xf32>
    %cst_55 = arith.constant 1.000000e+00 : f32
    %154 = vector.broadcast %cst_55 : f32 to vector<8x32xf32>
    %155 = arith.addf %154, %153 : vector<8x32xf32>
    %156 = arith.divf %154, %155 : vector<8x32xf32>
    %157 = vector.extract_strided_slice %114 {offsets = [8, 0], sizes = [8, 32], strides = [1, 1]} : vector<32x32xf32> to vector<8x32xf32>
    %cst_56 = arith.constant dense<0.000000e+00> : vector<8x32xf32>
    %158 = tpu.matmul %148, %5, %cst_56 {dimension_numbers = #tpu.dot_dimension_numbers<[1], [0], [0], [1], [0, 0, 1, 1], [], []>} : vector<8x32xf32>, vector<32x32xf32>, vector<8x32xf32> -> vector<8x32xf32>
    %159 = arith.addf %157, %158 : vector<8x32xf32>
    %160 = arith.negf %159 : vector<8x32xf32>
    %161 = math.exp %160 : vector<8x32xf32>
    %cst_57 = arith.constant 1.000000e+00 : f32
    %162 = vector.broadcast %cst_57 : f32 to vector<8x32xf32>
    %163 = arith.addf %162, %161 : vector<8x32xf32>
    %164 = arith.divf %162, %163 : vector<8x32xf32>
    %165 = vector.extract_strided_slice %115 {offsets = [8, 0], sizes = [8, 32], strides = [1, 1]} : vector<32x32xf32> to vector<8x32xf32>
    %cst_58 = arith.constant dense<0.000000e+00> : vector<8x32xf32>
    %166 = tpu.matmul %148, %7, %cst_58 {dimension_numbers = #tpu.dot_dimension_numbers<[1], [0], [0], [1], [0, 0, 1, 1], [], []>} : vector<8x32xf32>, vector<32x32xf32>, vector<8x32xf32> -> vector<8x32xf32>
    %167 = vector.broadcast %15 : vector<1x32xf32> to vector<8x32xf32>
    %168 = arith.addf %166, %167 : vector<8x32xf32>
    %169 = arith.mulf %156, %168 : vector<8x32xf32>
    %170 = arith.addf %165, %169 : vector<8x32xf32>
    %171 = math.tanh %170 : vector<8x32xf32>
    %cst_59 = arith.constant 1.000000e+00 : f32
    %172 = vector.broadcast %cst_59 : f32 to vector<8x32xf32>
    %173 = arith.subf %172, %164 : vector<8x32xf32>
    %174 = arith.mulf %173, %171 : vector<8x32xf32>
    %175 = arith.mulf %164, %148 : vector<8x32xf32>
    %176 = arith.addf %174, %175 : vector<8x32xf32>
    %177 = vector.extract_strided_slice %113 {offsets = [16, 0], sizes = [8, 32], strides = [1, 1]} : vector<32x32xf32> to vector<8x32xf32>
    %cst_60 = arith.constant dense<0.000000e+00> : vector<8x32xf32>
    %178 = tpu.matmul %176, %3, %cst_60 {dimension_numbers = #tpu.dot_dimension_numbers<[1], [0], [0], [1], [0, 0, 1, 1], [], []>} : vector<8x32xf32>, vector<32x32xf32>, vector<8x32xf32> -> vector<8x32xf32>
    %179 = arith.addf %177, %178 : vector<8x32xf32>
    %180 = arith.negf %179 : vector<8x32xf32>
    %181 = math.exp %180 : vector<8x32xf32>
    %cst_61 = arith.constant 1.000000e+00 : f32
    %182 = vector.broadcast %cst_61 : f32 to vector<8x32xf32>
    %183 = arith.addf %182, %181 : vector<8x32xf32>
    %184 = arith.divf %182, %183 : vector<8x32xf32>
    %185 = vector.extract_strided_slice %114 {offsets = [16, 0], sizes = [8, 32], strides = [1, 1]} : vector<32x32xf32> to vector<8x32xf32>
    %cst_62 = arith.constant dense<0.000000e+00> : vector<8x32xf32>
    %186 = tpu.matmul %176, %5, %cst_62 {dimension_numbers = #tpu.dot_dimension_numbers<[1], [0], [0], [1], [0, 0, 1, 1], [], []>} : vector<8x32xf32>, vector<32x32xf32>, vector<8x32xf32> -> vector<8x32xf32>
    %187 = arith.addf %185, %186 : vector<8x32xf32>
    %188 = arith.negf %187 : vector<8x32xf32>
    %189 = math.exp %188 : vector<8x32xf32>
    %cst_63 = arith.constant 1.000000e+00 : f32
    %190 = vector.broadcast %cst_63 : f32 to vector<8x32xf32>
    %191 = arith.addf %190, %189 : vector<8x32xf32>
    %192 = arith.divf %190, %191 : vector<8x32xf32>
    %193 = vector.extract_strided_slice %115 {offsets = [16, 0], sizes = [8, 32], strides = [1, 1]} : vector<32x32xf32> to vector<8x32xf32>
    %cst_64 = arith.constant dense<0.000000e+00> : vector<8x32xf32>
    %194 = tpu.matmul %176, %7, %cst_64 {dimension_numbers = #tpu.dot_dimension_numbers<[1], [0], [0], [1], [0, 0, 1, 1], [], []>} : vector<8x32xf32>, vector<32x32xf32>, vector<8x32xf32> -> vector<8x32xf32>
    %195 = vector.broadcast %15 : vector<1x32xf32> to vector<8x32xf32>
    %196 = arith.addf %194, %195 : vector<8x32xf32>
    %197 = arith.mulf %184, %196 : vector<8x32xf32>
    %198 = arith.addf %193, %197 : vector<8x32xf32>
    %199 = math.tanh %198 : vector<8x32xf32>
    %cst_65 = arith.constant 1.000000e+00 : f32
    %200 = vector.broadcast %cst_65 : f32 to vector<8x32xf32>
    %201 = arith.subf %200, %192 : vector<8x32xf32>
    %202 = arith.mulf %201, %199 : vector<8x32xf32>
    %203 = arith.mulf %192, %176 : vector<8x32xf32>
    %204 = arith.addf %202, %203 : vector<8x32xf32>
    %205 = vector.extract_strided_slice %113 {offsets = [24, 0], sizes = [8, 32], strides = [1, 1]} : vector<32x32xf32> to vector<8x32xf32>
    %cst_66 = arith.constant dense<0.000000e+00> : vector<8x32xf32>
    %206 = tpu.matmul %204, %3, %cst_66 {dimension_numbers = #tpu.dot_dimension_numbers<[1], [0], [0], [1], [0, 0, 1, 1], [], []>} : vector<8x32xf32>, vector<32x32xf32>, vector<8x32xf32> -> vector<8x32xf32>
    %207 = arith.addf %205, %206 : vector<8x32xf32>
    %208 = arith.negf %207 : vector<8x32xf32>
    %209 = math.exp %208 : vector<8x32xf32>
    %cst_67 = arith.constant 1.000000e+00 : f32
    %210 = vector.broadcast %cst_67 : f32 to vector<8x32xf32>
    %211 = arith.addf %210, %209 : vector<8x32xf32>
    %212 = arith.divf %210, %211 : vector<8x32xf32>
    %213 = vector.extract_strided_slice %114 {offsets = [24, 0], sizes = [8, 32], strides = [1, 1]} : vector<32x32xf32> to vector<8x32xf32>
    %cst_68 = arith.constant dense<0.000000e+00> : vector<8x32xf32>
    %214 = tpu.matmul %204, %5, %cst_68 {dimension_numbers = #tpu.dot_dimension_numbers<[1], [0], [0], [1], [0, 0, 1, 1], [], []>} : vector<8x32xf32>, vector<32x32xf32>, vector<8x32xf32> -> vector<8x32xf32>
    %215 = arith.addf %213, %214 : vector<8x32xf32>
    %216 = arith.negf %215 : vector<8x32xf32>
    %217 = math.exp %216 : vector<8x32xf32>
    %cst_69 = arith.constant 1.000000e+00 : f32
    %218 = vector.broadcast %cst_69 : f32 to vector<8x32xf32>
    %219 = arith.addf %218, %217 : vector<8x32xf32>
    %220 = arith.divf %218, %219 : vector<8x32xf32>
    %221 = vector.extract_strided_slice %115 {offsets = [24, 0], sizes = [8, 32], strides = [1, 1]} : vector<32x32xf32> to vector<8x32xf32>
    %cst_70 = arith.constant dense<0.000000e+00> : vector<8x32xf32>
    %222 = tpu.matmul %204, %7, %cst_70 {dimension_numbers = #tpu.dot_dimension_numbers<[1], [0], [0], [1], [0, 0, 1, 1], [], []>} : vector<8x32xf32>, vector<32x32xf32>, vector<8x32xf32> -> vector<8x32xf32>
    %223 = vector.broadcast %15 : vector<1x32xf32> to vector<8x32xf32>
    %224 = arith.addf %222, %223 : vector<8x32xf32>
    %225 = arith.mulf %212, %224 : vector<8x32xf32>
    %226 = arith.addf %221, %225 : vector<8x32xf32>
    %227 = math.tanh %226 : vector<8x32xf32>
    %cst_71 = arith.constant 1.000000e+00 : f32
    %228 = vector.broadcast %cst_71 : f32 to vector<8x32xf32>
    %229 = arith.subf %228, %220 : vector<8x32xf32>
    %230 = arith.mulf %229, %227 : vector<8x32xf32>
    %231 = arith.mulf %220, %204 : vector<8x32xf32>
    %232 = arith.addf %230, %231 : vector<8x32xf32>
    %c1_72 = arith.constant 1 : index
    %c0_73 = arith.constant 0 : index
    %c0_74 = arith.constant 0 : index
    %233 = vector.load %arg1[%c1_72, %c0_73, %c0_74] : memref<2x8x32xf32, #tpu.memory_space<vmem>>, vector<1x8x32xf32>
    %234 = vector.shape_cast %233 : vector<1x8x32xf32> to vector<8x32xf32>
    %235 = vector.extract_strided_slice %116 {offsets = [24, 0], sizes = [8, 32], strides = [1, 1]} : vector<32x32xf32> to vector<8x32xf32>
    %cst_75 = arith.constant dense<0.000000e+00> : vector<8x32xf32>
    %236 = tpu.matmul %234, %9, %cst_75 {dimension_numbers = #tpu.dot_dimension_numbers<[1], [0], [0], [1], [0, 0, 1, 1], [], []>} : vector<8x32xf32>, vector<32x32xf32>, vector<8x32xf32> -> vector<8x32xf32>
    %237 = arith.addf %235, %236 : vector<8x32xf32>
    %238 = arith.negf %237 : vector<8x32xf32>
    %239 = math.exp %238 : vector<8x32xf32>
    %cst_76 = arith.constant 1.000000e+00 : f32
    %240 = vector.broadcast %cst_76 : f32 to vector<8x32xf32>
    %241 = arith.addf %240, %239 : vector<8x32xf32>
    %242 = arith.divf %240, %241 : vector<8x32xf32>
    %243 = vector.extract_strided_slice %117 {offsets = [24, 0], sizes = [8, 32], strides = [1, 1]} : vector<32x32xf32> to vector<8x32xf32>
    %cst_77 = arith.constant dense<0.000000e+00> : vector<8x32xf32>
    %244 = tpu.matmul %234, %11, %cst_77 {dimension_numbers = #tpu.dot_dimension_numbers<[1], [0], [0], [1], [0, 0, 1, 1], [], []>} : vector<8x32xf32>, vector<32x32xf32>, vector<8x32xf32> -> vector<8x32xf32>
    %245 = arith.addf %243, %244 : vector<8x32xf32>
    %246 = arith.negf %245 : vector<8x32xf32>
    %247 = math.exp %246 : vector<8x32xf32>
    %cst_78 = arith.constant 1.000000e+00 : f32
    %248 = vector.broadcast %cst_78 : f32 to vector<8x32xf32>
    %249 = arith.addf %248, %247 : vector<8x32xf32>
    %250 = arith.divf %248, %249 : vector<8x32xf32>
    %251 = vector.extract_strided_slice %118 {offsets = [24, 0], sizes = [8, 32], strides = [1, 1]} : vector<32x32xf32> to vector<8x32xf32>
    %cst_79 = arith.constant dense<0.000000e+00> : vector<8x32xf32>
    %252 = tpu.matmul %234, %13, %cst_79 {dimension_numbers = #tpu.dot_dimension_numbers<[1], [0], [0], [1], [0, 0, 1, 1], [], []>} : vector<8x32xf32>, vector<32x32xf32>, vector<8x32xf32> -> vector<8x32xf32>
    %253 = vector.broadcast %17 : vector<1x32xf32> to vector<8x32xf32>
    %254 = arith.addf %252, %253 : vector<8x32xf32>
    %255 = arith.mulf %242, %254 : vector<8x32xf32>
    %256 = arith.addf %251, %255 : vector<8x32xf32>
    %257 = math.tanh %256 : vector<8x32xf32>
    %cst_80 = arith.constant 1.000000e+00 : f32
    %258 = vector.broadcast %cst_80 : f32 to vector<8x32xf32>
    %259 = arith.subf %258, %250 : vector<8x32xf32>
    %260 = arith.mulf %259, %257 : vector<8x32xf32>
    %261 = arith.mulf %250, %234 : vector<8x32xf32>
    %262 = arith.addf %260, %261 : vector<8x32xf32>
    %263 = vector.extract_strided_slice %116 {offsets = [16, 0], sizes = [8, 32], strides = [1, 1]} : vector<32x32xf32> to vector<8x32xf32>
    %cst_81 = arith.constant dense<0.000000e+00> : vector<8x32xf32>
    %264 = tpu.matmul %262, %9, %cst_81 {dimension_numbers = #tpu.dot_dimension_numbers<[1], [0], [0], [1], [0, 0, 1, 1], [], []>} : vector<8x32xf32>, vector<32x32xf32>, vector<8x32xf32> -> vector<8x32xf32>
    %265 = arith.addf %263, %264 : vector<8x32xf32>
    %266 = arith.negf %265 : vector<8x32xf32>
    %267 = math.exp %266 : vector<8x32xf32>
    %cst_82 = arith.constant 1.000000e+00 : f32
    %268 = vector.broadcast %cst_82 : f32 to vector<8x32xf32>
    %269 = arith.addf %268, %267 : vector<8x32xf32>
    %270 = arith.divf %268, %269 : vector<8x32xf32>
    %271 = vector.extract_strided_slice %117 {offsets = [16, 0], sizes = [8, 32], strides = [1, 1]} : vector<32x32xf32> to vector<8x32xf32>
    %cst_83 = arith.constant dense<0.000000e+00> : vector<8x32xf32>
    %272 = tpu.matmul %262, %11, %cst_83 {dimension_numbers = #tpu.dot_dimension_numbers<[1], [0], [0], [1], [0, 0, 1, 1], [], []>} : vector<8x32xf32>, vector<32x32xf32>, vector<8x32xf32> -> vector<8x32xf32>
    %273 = arith.addf %271, %272 : vector<8x32xf32>
    %274 = arith.negf %273 : vector<8x32xf32>
    %275 = math.exp %274 : vector<8x32xf32>
    %cst_84 = arith.constant 1.000000e+00 : f32
    %276 = vector.broadcast %cst_84 : f32 to vector<8x32xf32>
    %277 = arith.addf %276, %275 : vector<8x32xf32>
    %278 = arith.divf %276, %277 : vector<8x32xf32>
    %279 = vector.extract_strided_slice %118 {offsets = [16, 0], sizes = [8, 32], strides = [1, 1]} : vector<32x32xf32> to vector<8x32xf32>
    %cst_85 = arith.constant dense<0.000000e+00> : vector<8x32xf32>
    %280 = tpu.matmul %262, %13, %cst_85 {dimension_numbers = #tpu.dot_dimension_numbers<[1], [0], [0], [1], [0, 0, 1, 1], [], []>} : vector<8x32xf32>, vector<32x32xf32>, vector<8x32xf32> -> vector<8x32xf32>
    %281 = vector.broadcast %17 : vector<1x32xf32> to vector<8x32xf32>
    %282 = arith.addf %280, %281 : vector<8x32xf32>
    %283 = arith.mulf %270, %282 : vector<8x32xf32>
    %284 = arith.addf %279, %283 : vector<8x32xf32>
    %285 = math.tanh %284 : vector<8x32xf32>
    %cst_86 = arith.constant 1.000000e+00 : f32
    %286 = vector.broadcast %cst_86 : f32 to vector<8x32xf32>
    %287 = arith.subf %286, %278 : vector<8x32xf32>
    %288 = arith.mulf %287, %285 : vector<8x32xf32>
    %289 = arith.mulf %278, %262 : vector<8x32xf32>
    %290 = arith.addf %288, %289 : vector<8x32xf32>
    %291 = vector.extract_strided_slice %116 {offsets = [8, 0], sizes = [8, 32], strides = [1, 1]} : vector<32x32xf32> to vector<8x32xf32>
    %cst_87 = arith.constant dense<0.000000e+00> : vector<8x32xf32>
    %292 = tpu.matmul %290, %9, %cst_87 {dimension_numbers = #tpu.dot_dimension_numbers<[1], [0], [0], [1], [0, 0, 1, 1], [], []>} : vector<8x32xf32>, vector<32x32xf32>, vector<8x32xf32> -> vector<8x32xf32>
    %293 = arith.addf %291, %292 : vector<8x32xf32>
    %294 = arith.negf %293 : vector<8x32xf32>
    %295 = math.exp %294 : vector<8x32xf32>
    %cst_88 = arith.constant 1.000000e+00 : f32
    %296 = vector.broadcast %cst_88 : f32 to vector<8x32xf32>
    %297 = arith.addf %296, %295 : vector<8x32xf32>
    %298 = arith.divf %296, %297 : vector<8x32xf32>
    %299 = vector.extract_strided_slice %117 {offsets = [8, 0], sizes = [8, 32], strides = [1, 1]} : vector<32x32xf32> to vector<8x32xf32>
    %cst_89 = arith.constant dense<0.000000e+00> : vector<8x32xf32>
    %300 = tpu.matmul %290, %11, %cst_89 {dimension_numbers = #tpu.dot_dimension_numbers<[1], [0], [0], [1], [0, 0, 1, 1], [], []>} : vector<8x32xf32>, vector<32x32xf32>, vector<8x32xf32> -> vector<8x32xf32>
    %301 = arith.addf %299, %300 : vector<8x32xf32>
    %302 = arith.negf %301 : vector<8x32xf32>
    %303 = math.exp %302 : vector<8x32xf32>
    %cst_90 = arith.constant 1.000000e+00 : f32
    %304 = vector.broadcast %cst_90 : f32 to vector<8x32xf32>
    %305 = arith.addf %304, %303 : vector<8x32xf32>
    %306 = arith.divf %304, %305 : vector<8x32xf32>
    %307 = vector.extract_strided_slice %118 {offsets = [8, 0], sizes = [8, 32], strides = [1, 1]} : vector<32x32xf32> to vector<8x32xf32>
    %cst_91 = arith.constant dense<0.000000e+00> : vector<8x32xf32>
    %308 = tpu.matmul %290, %13, %cst_91 {dimension_numbers = #tpu.dot_dimension_numbers<[1], [0], [0], [1], [0, 0, 1, 1], [], []>} : vector<8x32xf32>, vector<32x32xf32>, vector<8x32xf32> -> vector<8x32xf32>
    %309 = vector.broadcast %17 : vector<1x32xf32> to vector<8x32xf32>
    %310 = arith.addf %308, %309 : vector<8x32xf32>
    %311 = arith.mulf %298, %310 : vector<8x32xf32>
    %312 = arith.addf %307, %311 : vector<8x32xf32>
    %313 = math.tanh %312 : vector<8x32xf32>
    %cst_92 = arith.constant 1.000000e+00 : f32
    %314 = vector.broadcast %cst_92 : f32 to vector<8x32xf32>
    %315 = arith.subf %314, %306 : vector<8x32xf32>
    %316 = arith.mulf %315, %313 : vector<8x32xf32>
    %317 = arith.mulf %306, %290 : vector<8x32xf32>
    %318 = arith.addf %316, %317 : vector<8x32xf32>
    %319 = vector.extract_strided_slice %116 {offsets = [0, 0], sizes = [8, 32], strides = [1, 1]} : vector<32x32xf32> to vector<8x32xf32>
    %cst_93 = arith.constant dense<0.000000e+00> : vector<8x32xf32>
    %320 = tpu.matmul %318, %9, %cst_93 {dimension_numbers = #tpu.dot_dimension_numbers<[1], [0], [0], [1], [0, 0, 1, 1], [], []>} : vector<8x32xf32>, vector<32x32xf32>, vector<8x32xf32> -> vector<8x32xf32>
    %321 = arith.addf %319, %320 : vector<8x32xf32>
    %322 = arith.negf %321 : vector<8x32xf32>
    %323 = math.exp %322 : vector<8x32xf32>
    %cst_94 = arith.constant 1.000000e+00 : f32
    %324 = vector.broadcast %cst_94 : f32 to vector<8x32xf32>
    %325 = arith.addf %324, %323 : vector<8x32xf32>
    %326 = arith.divf %324, %325 : vector<8x32xf32>
    %327 = vector.extract_strided_slice %117 {offsets = [0, 0], sizes = [8, 32], strides = [1, 1]} : vector<32x32xf32> to vector<8x32xf32>
    %cst_95 = arith.constant dense<0.000000e+00> : vector<8x32xf32>
    %328 = tpu.matmul %318, %11, %cst_95 {dimension_numbers = #tpu.dot_dimension_numbers<[1], [0], [0], [1], [0, 0, 1, 1], [], []>} : vector<8x32xf32>, vector<32x32xf32>, vector<8x32xf32> -> vector<8x32xf32>
    %329 = arith.addf %327, %328 : vector<8x32xf32>
    %330 = arith.negf %329 : vector<8x32xf32>
    %331 = math.exp %330 : vector<8x32xf32>
    %cst_96 = arith.constant 1.000000e+00 : f32
    %332 = vector.broadcast %cst_96 : f32 to vector<8x32xf32>
    %333 = arith.addf %332, %331 : vector<8x32xf32>
    %334 = arith.divf %332, %333 : vector<8x32xf32>
    %335 = vector.extract_strided_slice %118 {offsets = [0, 0], sizes = [8, 32], strides = [1, 1]} : vector<32x32xf32> to vector<8x32xf32>
    %cst_97 = arith.constant dense<0.000000e+00> : vector<8x32xf32>
    %336 = tpu.matmul %318, %13, %cst_97 {dimension_numbers = #tpu.dot_dimension_numbers<[1], [0], [0], [1], [0, 0, 1, 1], [], []>} : vector<8x32xf32>, vector<32x32xf32>, vector<8x32xf32> -> vector<8x32xf32>
    %337 = vector.broadcast %17 : vector<1x32xf32> to vector<8x32xf32>
    %338 = arith.addf %336, %337 : vector<8x32xf32>
    %339 = arith.mulf %326, %338 : vector<8x32xf32>
    %340 = arith.addf %335, %339 : vector<8x32xf32>
    %341 = math.tanh %340 : vector<8x32xf32>
    %cst_98 = arith.constant 1.000000e+00 : f32
    %342 = vector.broadcast %cst_98 : f32 to vector<8x32xf32>
    %343 = arith.subf %342, %334 : vector<8x32xf32>
    %344 = arith.mulf %343, %341 : vector<8x32xf32>
    %345 = arith.mulf %334, %318 : vector<8x32xf32>
    %346 = arith.addf %344, %345 : vector<8x32xf32>
    %347 = tpu.concatenate %148, %176, %204, %232 in 0 : vector<8x32xf32>, vector<8x32xf32>, vector<8x32xf32>, vector<8x32xf32> -> vector<32x32xf32>
    %cst_99 = arith.constant 0.000000e+00 : f32
    %348 = vector.broadcast %cst_99 : f32 to vector<32x32xf32>
    %349 = arith.maximumf %347, %348 : vector<32x32xf32>
    %350 = tpu.concatenate %346, %318, %290, %262 in 0 : vector<8x32xf32>, vector<8x32xf32>, vector<8x32xf32>, vector<8x32xf32> -> vector<32x32xf32>
    %cst_100 = arith.constant 0.000000e+00 : f32
    %351 = vector.broadcast %cst_100 : f32 to vector<32x32xf32>
    %352 = arith.maximumf %350, %351 : vector<32x32xf32>
    %c0_101 = arith.constant 0 : index
    %c0_102 = arith.constant 0 : index
    %c0_103 = arith.constant 0 : index
    %353 = vector.load %arg9[%c0_101, %c0_102, %c0_103] : memref<2x32x128xf32, #tpu.memory_space<vmem>>, vector<1x32x128xf32>
    %354 = vector.shape_cast %353 : vector<1x32x128xf32> to vector<32x128xf32>
    %cst_104 = arith.constant dense<0.000000e+00> : vector<32x128xf32>
    %355 = tpu.matmul %349, %354, %cst_104 {dimension_numbers = #tpu.dot_dimension_numbers<[1], [0], [0], [1], [0, 0, 1, 1], [], []>} : vector<32x32xf32>, vector<32x128xf32>, vector<32x128xf32> -> vector<32x128xf32>
    %c1_105 = arith.constant 1 : index
    %c0_106 = arith.constant 0 : index
    %c0_107 = arith.constant 0 : index
    %356 = vector.load %arg9[%c1_105, %c0_106, %c0_107] : memref<2x32x128xf32, #tpu.memory_space<vmem>>, vector<1x32x128xf32>
    %357 = vector.shape_cast %356 : vector<1x32x128xf32> to vector<32x128xf32>
    %cst_108 = arith.constant dense<0.000000e+00> : vector<32x128xf32>
    %358 = tpu.matmul %352, %357, %cst_108 {dimension_numbers = #tpu.dot_dimension_numbers<[1], [0], [0], [1], [0, 0, 1, 1], [], []>} : vector<32x32xf32>, vector<32x128xf32>, vector<32x128xf32> -> vector<32x128xf32>
    %359 = arith.addf %355, %358 : vector<32x128xf32>
    %c0_109 = arith.constant 0 : index
    %c0_110 = arith.constant 0 : index
    %360 = vector.load %arg10[%c0_109, %c0_110] : memref<1x128xf32, #tpu.memory_space<vmem>>, vector<1x128xf32>
    %361 = vector.broadcast %360 : vector<1x128xf32> to vector<32x128xf32>
    %362 = arith.addf %359, %361 : vector<32x128xf32>
    %cst_111 = arith.constant dense<0xFF800000> : vector<32xf32>
    %363 = vector.multi_reduction <maximumf>, %362, %cst_111 [1] : vector<32x128xf32> to vector<32xf32>
    %364 = vector.shape_cast %363 : vector<32xf32> to vector<32x1xf32>
    %365 = vector.broadcast %364 : vector<32x1xf32> to vector<32x128xf32>
    %366 = arith.subf %362, %365 : vector<32x128xf32>
    %367 = math.exp %366 : vector<32x128xf32>
    %cst_112 = arith.constant dense<0.000000e+00> : vector<32xf32>
    %368 = vector.multi_reduction <add>, %367, %cst_112 [1] : vector<32x128xf32> to vector<32xf32>
    %369 = vector.shape_cast %368 : vector<32xf32> to vector<32x1xf32>
    %370 = math.log %369 : vector<32x1xf32>
    %371 = arith.addf %364, %370 : vector<32x1xf32>
    %372 = vector.broadcast %371 : vector<32x1xf32> to vector<32x128xf32>
    %373 = arith.subf %362, %372 : vector<32x128xf32>
    %374 = vector.shape_cast %373 : vector<32x128xf32> to vector<4x8x128xf32>
    %c0_113 = arith.constant 0 : index
    %c0_114 = arith.constant 0 : index
    %c0_115 = arith.constant 0 : index
    %375 = vector.load %arg11[%c0_113, %c0_114, %c0_115] : memref<4x8x128xf32, #tpu.memory_space<vmem>>, vector<4x8x128xf32>
    tpu.vector_store %arg11[%c0_113, %c0_114, %c0_115], %374 {strides = array<i32>} : memref<4x8x128xf32, #tpu.memory_space<vmem>>, vector<4x8x128xf32>,
    %376 = vector.shape_cast %232 : vector<8x32xf32> to vector<1x8x32xf32>
    %377 = vector.shape_cast %346 : vector<8x32xf32> to vector<1x8x32xf32>
    %378 = tpu.concatenate %376, %377 in 0 : vector<1x8x32xf32>, vector<1x8x32xf32> -> vector<2x8x32xf32>
    %cst_116 = arith.constant dense<0.000000e+00> : vector<2x8xf32>
    %379 = vector.multi_reduction <add>, %378, %cst_116 [2] : vector<2x8x32xf32> to vector<2x8xf32>
    %380 = vector.shape_cast %379 : vector<2x8xf32> to vector<2x8x1xf32>
    %cst_117 = arith.constant 3.200000e+01 : f32
    %381 = vector.broadcast %cst_117 : f32 to vector<2x8x1xf32>
    %382 = arith.divf %380, %381 : vector<2x8x1xf32>
    %383 = vector.broadcast %382 : vector<2x8x1xf32> to vector<2x8x32xf32>
    %384 = arith.subf %378, %383 : vector<2x8x32xf32>
    %385 = arith.mulf %384, %384 : vector<2x8x32xf32>
    %cst_118 = arith.constant dense<0.000000e+00> : vector<2x8xf32>
    %386 = vector.multi_reduction <add>, %385, %cst_118 [2] : vector<2x8x32xf32> to vector<2x8xf32>
    %387 = vector.shape_cast %386 : vector<2x8xf32> to vector<2x8x1xf32>
    %cst_119 = arith.constant 3.200000e+01 : f32
    %388 = vector.broadcast %cst_119 : f32 to vector<2x8x1xf32>
    %389 = arith.divf %387, %388 : vector<2x8x1xf32>
    %390 = vector.broadcast %382 : vector<2x8x1xf32> to vector<2x8x32xf32>
    %391 = arith.subf %378, %390 : vector<2x8x32xf32>
    %cst_120 = arith.constant 9.99999974E-6 : f32
    %392 = vector.broadcast %cst_120 : f32 to vector<2x8x1xf32>
    %393 = arith.addf %389, %392 : vector<2x8x1xf32>
    %394 = math.rsqrt %393 : vector<2x8x1xf32>
    %395 = vector.broadcast %394 : vector<2x8x1xf32> to vector<2x8x32xf32>
    %396 = arith.mulf %391, %395 : vector<2x8x32xf32>
    %c0_121 = arith.constant 0 : index
    %c0_122 = arith.constant 0 : index
    %397 = vector.load %arg7[%c0_121, %c0_122] : memref<1x32xf32, #tpu.memory_space<vmem>>, vector<1x32xf32>
    %398 = vector.shape_cast %397 : vector<1x32xf32> to vector<1x1x32xf32>
    %399 = vector.broadcast %398 : vector<1x1x32xf32> to vector<2x8x32xf32>
    %400 = arith.mulf %396, %399 : vector<2x8x32xf32>
    %c0_123 = arith.constant 0 : index
    %c0_124 = arith.constant 0 : index
    %401 = vector.load %arg8[%c0_123, %c0_124] : memref<1x32xf32, #tpu.memory_space<vmem>>, vector<1x32xf32>
    %402 = vector.shape_cast %401 : vector<1x32xf32> to vector<1x1x32xf32>
    %403 = vector.broadcast %402 : vector<1x1x32xf32> to vector<2x8x32xf32>
    %404 = arith.addf %400, %403 : vector<2x8x32xf32>
    %c0_125 = arith.constant 0 : index
    %c0_126 = arith.constant 0 : index
    %c0_127 = arith.constant 0 : index
    %405 = vector.load %arg12[%c0_125, %c0_126, %c0_127] : memref<2x8x32xf32, #tpu.memory_space<vmem>>, vector<2x8x32xf32>
    tpu.vector_store %arg12[%c0_125, %c0_126, %c0_127], %404 {strides = array<i32>} : memref<2x8x32xf32, #tpu.memory_space<vmem>>, vector<2x8x32xf32>,
    return
  }
}

</mosaic_0001>

<bundles_post_ra>
// kernel: ngram_forward.1
= control target key start
LH: loop header
LB: loop body
LE: loop exit
PB: predicated region body
PF: predicated region fallthrough
CT: control target
= control target key end

     0   :  { %v6733_v0 = vmov 0   ;;  %v6734_v17 = vmov 1   ;;  %v6735_v23 = vmov 2   ;;  %v6736_v31 = vmov 3   ;;  %s6747_s29 = smov 32   ;;  %s6748_s26 = smov 64   ;;  %s8130_s0 = inlined_call_operand.vmem [shape: s32[32,10], index: 0, kind: input, shape index: {}]   ;;  %s8131_s2 = inlined_call_operand.vmem [shape: f32[128,32], index: 2, kind: input, shape index: {}]   ;;  %s8132_s3 = inlined_call_operand.vmem [shape: f32[320,192], index: 3, kind: input, shape index: {}]   ;;  %s8133_s4 = inlined_call_operand.vmem [shape: f32[1,192], index: 4, kind: input, shape index: {}]   ;;  %s8134_s5 = inlined_call_operand.vmem [shape: f32[6,32,32], index: 5, kind: input, shape index: {}]   ;;  %s8135_s1 = inlined_call_operand.vmem [shape: f32[2,8,32], index: 1, kind: input, shape index: {}]   ;;  %s8136_s6 = inlined_call_operand.vmem [shape: f32[2,1,32], index: 6, kind: input, shape index: {}]   ;;  %s8137_s9 = inlined_call_operand.vmem [shape: f32[2,32,128], index: 9, kind: input, shape index: {}]   ;;  %s8138_s10 = inlined_call_operand.vmem [shape: f32[1,128], index: 10, kind: input, shape index: {}]   ;;  %s8139_s7 = inlined_call_operand.vmem [shape: f32[1,32], index: 7, kind: input, shape index: {}]   ;;  %s8140_s8 = inlined_call_operand.vmem [shape: f32[1,32], index: 8, kind: input, shape index: {}]   ;;  %s8141_s11 = inlined_call_operand.vmem [shape: f32[4,8,128], index: 11, kind: output, shape index: {0}]   ;;  %s8142_s12 = inlined_call_operand.vmem [shape: f32[2,8,32], index: 12, kind: output, shape index: {1}]  }
   0x1   :  { %6607 = vset.pattern.permute.xlu0 %v6733_v0  ;;  %v6818_v1 = vld [vmem:[%s8130_s0] sm:$0xff]  ;;  %6608 = vset.pattern.permute.xlu1 %v6733_v0  ;;  %v6823_v2 = vld [vmem:[%s8130_s0 + $0x10] sm:$0xff]  ;;  %v6829_v3 = vld [vmem:[%s8130_s0 + $0x8] sm:$0xff]  ;;  %v172_v35 = vlaneseq  ;;  %v6737_v43 = vmov 1.0   ;;  %v6738_v51 = vmov 0.0   ;;  %v6739_v57 = vmov 4  }
   0x2   :  { %187 = vperm.xlu0 %6607, %v6818_v1   ;;  %193 = vperm.xlu1 %6608, %v6823_v2   ;;  %v40_v4 = vld [vmem:[%s8131_s2] sm:$0xff]  ;;  %v41_v5 = vld [vmem:[%s8131_s2 + $0x8] sm:$0xff]  ;;  %v6841_v6 = vld [vmem:[%s8130_s0 + $0x18] sm:$0xff]  ;;  %v6740_v58 = vmov 5   ;;  %v6741_v59 = vmov 6   ;;  %vm295_vm8 = vcmask 261120  }
   0x3   :  { %v6843_v7 = vpack.c.bf16 %v41_v5, %v40_v4  ;;  %v42_v8 = vld [vmem:[%s8131_s2 + $0x10] sm:$0xff]  ;;  %v43_v9 = vld [vmem:[%s8131_s2 + $0x18] sm:$0xff]  ;;  %v44_v11 = vld [vmem:[%s8131_s2 + $0x20] sm:$0xff]  ;;  %v6954_v36 = vand.u32 127, %v172_v35  ;;  %s6749_s27 = smov 96  }
   0x4   :  { %v6851_v10 = vpack.c.bf16 %v43_v9, %v42_v8  ;;  %v45_v12 = vld [vmem:[%s8131_s2 + $0x28] sm:$0xff]  ;;  %v46_v14 = vld [vmem:[%s8131_s2 + $0x30] sm:$0xff]  ;;  %v47_v15 = vld [vmem:[%s8131_s2 + $0x38] sm:$0xff] }
   0x5   :  { %5947 = vmatprep.subr.bf16.mxu0 %v6843_v7  ;;  %5987 = vmatprep.subr.bf16.mxu1 %v6843_v7  ;;  %v6866_v13 = vpack.c.bf16 %v45_v12, %v44_v11  ;;  %v6878_v16 = vpack.c.bf16 %v47_v15, %v46_v14  ;;  %v48_v18 = vld [vmem:[%s8131_s2 + $0x40] sm:$0xff]  ;;  %v49_v19 = vld [vmem:[%s8131_s2 + $0x48] sm:$0xff]  ;;  %v50_v21 = vld [vmem:[%s8131_s2 + $0x50] sm:$0xff] }
   0x6   :  { %190 = vperm.xlu0 %6607, %v6829_v3   ;;  %196 = vperm.xlu1 %6608, %v6841_v6   ;;  %v6892_v20 = vpack.c.bf16 %v49_v19, %v48_v18  ;;  %v51_v22 = vld [vmem:[%s8131_s2 + $0x58] sm:$0xff]  ;;  %v52_v25 = vld [vmem:[%s8131_s2 + $0x60] sm:$0xff]  ;;  %v53_v26 = vld [vmem:[%s8131_s2 + $0x68] sm:$0xff] }
   0x7   :  { %5949 = vmatpush3.bf16.msra.mxu0 %v6843_v7  ;;  %5989 = vmatpush3.bf16.msra.mxu1 %v6843_v7  ;;  %v6905_v24 = vpack.c.bf16 %v51_v22, %v50_v21  ;;  %v6918_v27 = vpack.c.bf16 %v53_v26, %v52_v25  ;;  %v54_v28 = vld [vmem:[%s8131_s2 + $0x70] sm:$0xff]  ;;  %v55_v29 = vld [vmem:[%s8131_s2 + $0x78] sm:$0xff]  ;;  %v57_v32 = vld [vmem:[%s8132_s3 + $0x8] sm:$0xff] }
   0x8   :  { %5951 = vmatprep.subr.bf16.mxu0 %v6851_v10  ;;  %5991 = vmatprep.subr.bf16.mxu1 %v6851_v10  ;;  %v6932_v30 = vpack.c.bf16 %v55_v29, %v54_v28  ;;  %v59_v33 = vld [vmem:[%s8132_s3 + $0x18] sm:$0xff]  ;;  %v56_v39 = vld [vmem:[%s8132_s3] sm:$0xff]  ;;  %v58_v40 = vld [vmem:[%s8132_s3 + $0x10] sm:$0xff] }
   0x9   :  { %v5978_v34 = vpack.c.bf16 %v59_v33, %v57_v32  ;;  %v61_v41 = vld [vmem:[%s8132_s3 + $0x28] sm:$0xff]  ;;  %v63_v42 = vld [vmem:[%s8132_s3 + $0x38] sm:$0xff]  ;;  %v5980_v44 = vpack.c.bf16 %v58_v40, %v56_v39  ;;  %v60_v48 = vld [vmem:[%s8132_s3 + $0x20] sm:$0xff] }
   0xa   :  { %6610 = vset.pattern.permute.xlu1 %v6734_v17  ;;  %6609 = vset.pattern.permute.xlu0 %v6734_v17  ;;  %v5982_v47 = vpack.c.bf16 %v63_v42, %v61_v41  ;;  %v62_v49 = vld [vmem:[%s8132_s3 + $0x30] sm:$0xff]  ;;  %v65_v14 = vld [vmem:[%s8132_s3 + $0x48] sm:$0xff]  ;;  %v67_v15 = vld [vmem:[%s8132_s3 + $0x58] sm:$0xff] }
   0xb   :  { %5953 = vmatpush3.bf16.msra.mxu0 %v6851_v10  ;;  %5993 = vmatpush3.bf16.msra.mxu1 %v6851_v10  ;;  %v5984_v50 = vpack.c.bf16 %v62_v49, %v60_v48  ;;  %v6018_v18 = vpack.c.bf16 %v67_v15, %v65_v14  ;;  %v66_v19 = vld [vmem:[%s8132_s3 + $0x50] sm:$0xff]  ;;  %v69_v21 = vld [vmem:[%s8132_s3 + $0x68] sm:$0xff]  ;;  %v71_v22 = vld [vmem:[%s8132_s3 + $0x78] sm:$0xff] }
   0xc   :  { %5955 = vmatprep.subr.bf16.mxu0 %v6866_v13  ;;  %409 = vperm.xlu1 %6610, %v6829_v3   ;;  %v6022_v25 = vpack.c.bf16 %v71_v22, %v69_v21  ;;  %v68_v26 = vld [vmem:[%s8132_s3 + $0x60] sm:$0xff]  ;;  %v70_v28 = vld [vmem:[%s8132_s3 + $0x70] sm:$0xff]  ;;  %v75_v32 = vld [vmem:[%s8132_s3 + $0x98] sm:$0xff] }
   0xd   :  { %406 = vperm.xlu0 %6609, %v6818_v1   ;;  %5995 = vmatprep.subr.bf16.mxu1 %v6866_v13  ;;  %v6024_v29 = vpack.c.bf16 %v70_v28, %v68_v26  ;;  %v72_v33 = vld [vmem:[%s8132_s3 + $0x80] sm:$0xff]  ;;  %v79_v39 = vld [vmem:[%s8132_s3 + $0xb8] sm:$0xff] }
   0xf   :  { %5957 = vmatpush3.bf16.msra.mxu0 %v6866_v13  ;;  %5997 = vmatpush3.bf16.msra.mxu1 %v6866_v13 }
  0x10   :  { %5959 = vmatprep.subr.bf16.mxu0 %v6878_v16  ;;  %5999 = vmatprep.subr.bf16.mxu1 %v6878_v16 }
  0x11   :  { %6611 = vset.pattern.permute.xlu1 %v6735_v23  ;;  %6612 = vset.pattern.permute.xlu0 %v6735_v23 }
  0x12   :  { %624 = vperm.xlu1 %6611, %v6818_v1   ;;  %627 = vperm.xlu0 %6612, %v6829_v3  }
  0x13   :  { %5961 = vmatpush3.bf16.msra.mxu0 %v6878_v16  ;;  %6001 = vmatpush3.bf16.msra.mxu1 %v6878_v16 }
  0x14   :  { %5963 = vmatprep.subr.bf16.mxu0 %v6892_v20  ;;  %6003 = vmatprep.subr.bf16.mxu1 %v6892_v20 }
  0x16   :  { %6613 = vset.pattern.permute.xlu1 %v6734_v17  ;;  %630 = vperm.xlu0 %6612, %v6823_v2   ;;  %v64_v17 = vld [vmem:[%s8132_s3 + $0x40] sm:$0xff] }
  0x17   :  { %5965 = vmatpush3.bf16.msra.mxu0 %v6892_v20  ;;  %412 = vperm.xlu1 %6613, %v6823_v2  }
  0x18   :  { %5967 = vmatprep.subr.bf16.mxu0 %v6905_v24  ;;  %6005 = vmatpush3.bf16.msra.mxu1 %v6892_v20 }
  0x19   :  { %6007 = vmatprep.subr.bf16.mxu1 %v6905_v24 }
  0x1a   :  { %6615 = vset.pattern.permute.xlu0 %v6736_v31 }
  0x1b   :  { %5969 = vmatpush3.bf16.msra.mxu0 %v6905_v24  ;;  %415 = vperm.xlu1 %6613, %v6841_v6  }
  0x1c   :  { %5971 = vmatprep.subr.bf16.mxu0 %v6918_v27  ;;  %842 = vperm.xlu0 %6615, %v6818_v1  }
  0x1d   :  { %6009 = vmatpush3.bf16.msra.mxu1 %v6905_v24 }
  0x1e   :  { %6011 = vmatprep.subr.bf16.mxu1 %v6918_v27 }
  0x1f   :  { %5973 = vmatpush3.bf16.msra.mxu0 %v6918_v27  ;;  %6614 = vset.pattern.permute.xlu1 %v6735_v23  ;;  %v6020_v23 = vpack.c.bf16 %v66_v19, %v64_v17 }
  0x20   :  { %5975 = vmatprep.subr.bf16.mxu0 %v6932_v30  ;;  %633 = vperm.xlu1 %6614, %v6841_v6  }
  0x21   :  { %851 = vperm.xlu0 %6615, %v6841_v6   ;;  %6013 = vmatpush3.bf16.msra.mxu1 %v6918_v27 }
  0x22   :  { %6015 = vmatprep.subr.bf16.mxu1 %v6932_v30 }
  0x23   :  { %5977 = vmatpush3.bf16.msra.mxu0 %v6932_v30 }
  0x24   :  { %6616 = vset.pattern.permute.xlu1 %v6736_v31  ;;  %5979 = vmatprep.subr.bf16.mxu0 %v5978_v34  ;;  %v73_v31 = vld [vmem:[%s8132_s3 + $0x88] sm:$0xff] }
  0x25   :  { %845 = vperm.xlu1 %6616, %v6829_v3   ;;  %6017 = vmatpush3.bf16.msra.mxu1 %v6932_v30  ;;  %v6058_v34 = vpack.c.bf16 %v75_v32, %v73_v31  ;;  %v80_v32 = vld [vmem:[%s8132_s3 + $0xc0] sm:$0xff] }
  0x26   :  { %6618 = vset.pattern.permute.xlu0 %v6739_v57  ;;  %6019 = vmatprep.subr.bf16.mxu1 %v6018_v18 }
  0x27   :  { %1063 = vperm.xlu0 %6618, %v6829_v3  }
  0x29   :  { %848 = vperm.xlu1 %6616, %v6823_v2  }
  0x2b   :  { %1066 = vperm.xlu0 %6618, %v6823_v2  }
  0x2d   :  { %6617 = vset.pattern.permute.xlu1 %v6739_v57 }
  0x2e   :  { %1060 = vperm.xlu1 %6617, %v6818_v1  }
  0x2f   :  { %6621 = vset.pattern.permute.xlu0 %v6740_v58 }
  0x30   :  { %1284 = vperm.xlu0 %6621, %v6823_v2  }
  0x32   :  { %6619 = vset.pattern.permute.xlu1 %v6740_v58 }
  0x33   :  { %1278 = vperm.xlu1 %6619, %v6818_v1  }
  0x34   :  { %6624 = vset.pattern.permute.xlu0 %v6741_v59 }
  0x35   :  { %1499 = vperm.xlu0 %6624, %v6829_v3  }
  0x37   :  { %1281 = vperm.xlu1 %6619, %v6829_v3  }
  0x3b   :  { %6620 = vset.pattern.permute.xlu1 %v6739_v57 }
  0x3c   :  { %1069 = vperm.xlu1 %6620, %v6841_v6  }
  0x40   :  { %6622 = vset.pattern.permute.xlu1 %v6740_v58 }
  0x41   :  { %1287 = vperm.xlu1 %6622, %v6841_v6  }
  0x45   :  { %6623 = vset.pattern.permute.xlu1 %v6741_v59 }
  0x46   :  { %1496 = vperm.xlu1 %6623, %v6818_v1  }
  0x4a   :  { %1502 = vperm.xlu1 %6623, %v6823_v2  }
  0x4e   :  { %1505 = vperm.xlu1 %6623, %v6841_v6  }
  0x81   :  { %v188_v37 = vpop.permute.xlu0 %187  ;;  %v194_v38 = vpop.permute.xlu1 %193 }
  0x82   :  { %vm198_vm0 = vcmp.eq.s32.totalorder %v188_v37, %v6954_v36  ;;  %vm200_vm1 = vcmp.eq.s32.totalorder %v194_v38, %v6954_v36  ;;  %v74_v37 = vld [vmem:[%s8132_s3 + $0x90] sm:$0xff]  ;;  %v77_v38 = vld [vmem:[%s8132_s3 + $0xa8] sm:$0xff] }
  0x83   :  { %5306 = vmatprep.mubr.msk.f32.mxu0 %vm198_vm0, %v6737_v43  ;;  %v6060_v41 = vpack.c.bf16 %v74_v37, %v72_v33  ;;  %v6062_v42 = vpack.c.bf16 %v79_v39, %v77_v38  ;;  %v82_v33 = vld [vmem:[%s8132_s3 + $0xd0] sm:$0xff]  ;;  %v87_v37 = vld [vmem:[%s8132_s3 + $0xf8] sm:$0xff] }
  0x84   :  { %v6100_v38 = vpack.c.bf16 %v82_v33, %v80_v32 }
  0x85   :  { %v191_v45 = vpop.permute.xlu0 %190  ;;  %v197_v46 = vpop.permute.xlu1 %196 }
  0x86   :  { %vm199_vm2 = vcmp.eq.s32.totalorder %v191_v45, %v6954_v36  ;;  %vm201_vm3 = vcmp.eq.s32.totalorder %v197_v46, %v6954_v36  ;;  %v78_v45 = vld [vmem:[%s8132_s3 + $0xb0] sm:$0xff] }
  0x87   :  { %5307 = vmatmul.mubr.msk.f32.vlgmr.msra.gmra.mrb[0].mxu0 %vm199_vm2, %v6737_v43 }
  0x88   :  { %5309 = vmatprep.mubr.msk.f32.mxu0 %vm200_vm1, %v6737_v43  ;;  %5981 = vmatpush1.bf16.msra.mxu0 %v5980_v44  ;;  %v76_v44 = vld [vmem:[%s8132_s3 + $0xa0] sm:$0xff] }
  0x89   :  { %5983 = vmatprep.subr.bf16.mxu0 %v5982_v47  ;;  %v6064_v47 = vpack.c.bf16 %v78_v45, %v76_v44 }
  0x8b   :  { %5310 = vmatmul.mubr.msk.f32.gmra.mrb[2].mxu0 %vm201_vm3, %v6737_v43  ;;  %v410_v52 = vpop.permute.xlu1 %409 }
  0x8c   :  { %5985 = vmatpush1.bf16.msra.mxu0 %v5984_v50  ;;  %372 = vmatprep.mubr.f32.mxu0 %v6738_v51  ;;  %vm418_vm4 = vcmp.eq.s32.totalorder %v410_v52, %v6954_v36  ;;  %v407_v53 = vpop.permute.xlu0 %406  ;;  %v81_v50 = vld [vmem:[%s8132_s3 + $0xc8] sm:$0xff]  ;;  %v83_v52 = vld [vmem:[%s8132_s3 + $0xd8] sm:$0xff] }
  0x8d   :  { %6027 = vmatprep.subr.bf16.mxu0 %v6843_v7  ;;  %vm417_vm5 = vcmp.eq.s32.totalorder %v407_v53, %v6954_v36  ;;  %v6098_v53 = vpack.c.bf16 %v83_v52, %v81_v50 }
  0x8e   :  { %5344 = vmatprep.mubr.msk.f32.mxu1 %vm417_vm5, %v6737_v43 }
  0x8f   :  { %5345 = vmatmul.mubr.msk.f32.vlgmr.msra.gmra.mrb[0].mxu1 %vm418_vm4, %v6737_v43 }
  0x90   :  { %6021 = vmatpush1.bf16.msra.mxu1 %v6020_v23 }
  0x91   :  { %v625_v54 = vpop.permute.xlu1 %624  ;;  %v628_v0 = vpop.permute.xlu0 %627  ;;  %6023 = vmatprep.subr.bf16.mxu1 %v6022_v25 }
  0x92   :  { %vm635_vm9 = vcmp.eq.s32.totalorder %v625_v54, %v6954_v36  ;;  %vm636_vm10 = vcmp.eq.s32.totalorder %v628_v0, %v6954_v36  ;;  %v6743_v0 = vmov 8  }
  0x94   :  { %6025 = vmatpush1.bf16.msra.mxu1 %v6024_v29 }
  0x95   :  { %v631_v4 = vpop.permute.xlu0 %630  ;;  %6059 = vmatprep.subr.bf16.mxu1 %v6058_v34  ;;  %v85_v34 = vld [vmem:[%s8132_s3 + $0xe8] sm:$0xff] }
  0x96   :  { %v413_v55 = vpop.permute.xlu1 %412  ;;  %vm637_vm11 = vcmp.eq.s32.totalorder %v631_v4, %v6954_v36 }
  0x97   :  { %vm419_vm6 = vcmp.eq.s32.totalorder %v413_v55, %v6954_v36 }
  0x98   :  { %5347 = vmatprep.mubr.msk.f32.mxu1 %vm419_vm6, %v6737_v43 }
  0x9a   :  { %v416_v56 = vpop.permute.xlu1 %415 }
  0x9b   :  { %vm420_vm7 = vcmp.eq.s32.totalorder %v416_v56, %v6954_v36  ;;  %v843_v8 = vpop.permute.xlu0 %842 }
  0x9c   :  { %5348 = vmatmul.mubr.msk.f32.gmra.mrb[2].mxu1 %vm420_vm7, %v6737_v43  ;;  %vm853_vm13 = vcmp.eq.s32.totalorder %v843_v8, %v6954_v36  ;;  %v177_v8 = vshrl.u32 %v172_v35, 7  ;;  %v174_v35 = vld [vmem:[%s8133_s4] sm:$0x3] }
  0x9d   :  { %590 = vmatprep.mubr.f32.mxu1 %v6738_v51 }
  0x9e   :  { %v178_v14 = vsub.s32 0, %v177_v8 }
  0x9f   :  { %v634_v5 = vpop.permute.xlu1 %633 }
  0xa0   :  { %vm638_vm12 = vcmp.eq.s32.totalorder %v634_v5, %v6954_v36  ;;  %v852_v12 = vpop.permute.xlu0 %851 }
  0xa1   :  { %vm856_vm0 = vcmp.eq.s32.totalorder %v852_v12, %v6954_v36  ;;  %v182_v12 = vsub.s32 1, %v177_v8 }
  0xa4   :  { %v846_v9 = vpop.permute.xlu1 %845 }
  0xa5   :  { %vm854_vm14 = vcmp.eq.s32.totalorder %v846_v9, %v6954_v36 }
  0xa6   :  { %v7145_v57 = vpop.permute.xlu0 %1063 }
  0xa8   :  { %v849_v11 = vpop.permute.xlu1 %848 }
  0xa9   :  { %vm855_vm15 = vcmp.eq.s32.totalorder %v849_v11, %v6954_v36  ;;  %v6744_v11 = vmov 9  }
  0xaa   :  { %v7150_v58 = vpop.permute.xlu0 %1066 }
  0xad   :  { %v7138_v54 = vpop.permute.xlu1 %1060 }
  0xb2   :  { %v1279_v55 = vpop.permute.xlu1 %1278 }
  0xb3   :  { %vm1289_vm1 = vcmp.eq.s32.totalorder %v1279_v55, %v6954_v36 }
  0xb6   :  { %v1282_v56 = vpop.permute.xlu1 %1281 }
  0xb7   :  { %vm1290_vm2 = vcmp.eq.s32.totalorder %v1282_v56, %v6954_v36  ;;  %v88_v56 = vld [vmem:[%s8132_s3 + $0x100] sm:$0xff] }
  0xbb   :  { %v7153_v59 = vpop.permute.xlu1 %1069 }
 0x15a   :  { %v5308_v60 = vpop.f32.mrb[0].mxu0 }
 0x15b   :  { %v276_v61 = vpop.f32.mrb[1].mxu0 }
 0x15c   :  { %4768 = vmatmul.mubr.msk.f32.vlgmr.msra.gmra.mrb[4].mxu0 %vm295_vm8, %v276_v61  ;;  %v1288_v61 = vpop.permute.xlu1 %1287 }
 0x15d   :  { %6029 = vmatpush3.bf16.msra.mxu0 %v6843_v7  ;;  %378 = vmatprep.mubr.f32.mxu0 %v6738_v51  ;;  %vm1292_vm4 = vcmp.eq.s32.totalorder %v1288_v61, %v6954_v36  ;;  %v93_v61 = vld [vmem:[%s8132_s3 + $0x128] sm:$0xff] }
 0x15e   :  { %6031 = vmatprep.subr.bf16.mxu0 %v6851_v10  ;;  %v5311_v62 = vpop.f32.mrb[2].mxu0 }
 0x15f   :  { %v286_v63 = vpop.f32.mrb[3].mxu0 }
 0x160   :  { %4769 = vmatmul.mubr.msk.f32.gmra.mrb[6].mxu0 %vm295_vm8, %v5308_v60  ;;  %v1285_v60 = vpop.permute.xlu0 %1284 }
 0x161   :  { %6033 = vmatpush3.bf16.msra.mxu0 %v6851_v10  ;;  %384 = vmatprep.mubr.f32.mxu0 %v6738_v51  ;;  %vm1291_vm3 = vcmp.eq.s32.totalorder %v1285_v60, %v6954_v36  ;;  %v90_v60 = vld [vmem:[%s8132_s3 + $0x110] sm:$0xff] }
 0x162   :  { %6035 = vmatprep.subr.bf16.mxu0 %v6866_v13  ;;  %v5346_v40 = vpop.f32.mrb[0].mxu1 }
 0x163   :  { %v495_v46 = vpop.f32.mrb[1].mxu1 }
 0x164   :  { %4770 = vmatmul.mubr.msk.f32.gmra.mrb[8].mxu0 %vm295_vm8, %v286_v63  ;;  %4780 = vmatmul.mubr.msk.f32.vlgmr.msra.gmra.mrb[4].mxu1 %vm295_vm8, %v495_v46  ;;  %v1497_v63 = vpop.permute.xlu1 %1496  ;;  %v1500_v5 = vpop.permute.xlu0 %1499 }
 0x165   :  { %6037 = vmatpush3.bf16.msra.mxu0 %v6866_v13  ;;  %390 = vmatprep.mubr.f32.mxu0 %v6738_v51  ;;  %vm1507_vm5 = vcmp.eq.s32.totalorder %v1497_v63, %v6954_v36  ;;  %vm1508_vm6 = vcmp.eq.s32.totalorder %v1500_v5, %v6954_v36  ;;  %v6140_v63 = vpack.c.bf16 %v90_v60, %v88_v56  ;;  %v94_v5 = vld [vmem:[%s8132_s3 + $0x130] sm:$0xff]  ;;  %v4742_v60 = vld [vmem:[%s8134_s5 + $0x38] sm:$0xff] }
 0x166   :  { %6039 = vmatprep.subr.bf16.mxu0 %v6878_v16  ;;  %596 = vmatprep.mubr.f32.mxu1 %v6738_v51  ;;  %v4741_v56 = vld [vmem:[%s8134_s5 + $0x30] sm:$0xff] }
 0x167   :  { %6061 = vmatpush1.bf16.msra.mxu1 %v6060_v41  ;;  %v84_v41 = vld [vmem:[%s8132_s3 + $0xe0] sm:$0xff] }
 0x168   :  { %4771 = vmatmul.mubr.msk.f32.gmra.mrb[10].mxu0 %vm295_vm8, %v5311_v62  ;;  %6063 = vmatprep.subr.bf16.mxu1 %v6062_v42  ;;  %v6742_v62 = vmov 7   ;;  %v1503_v4 = vpop.permute.xlu1 %1502  ;;  %v86_v42 = vld [vmem:[%s8132_s3 + $0xf0] sm:$0xff] }
 0x169   :  { %6041 = vmatpush3.bf16.msra.mxu0 %v6878_v16  ;;  %5382 = vmatprep.mubr.msk.f32.mxu0 %vm635_vm9, %v6737_v43  ;;  %vm1509_vm7 = vcmp.eq.s32.totalorder %v1503_v4, %v6954_v36  ;;  %v6104_v45 = vpack.c.bf16 %v86_v42, %v84_v41  ;;  %v92_v4 = vld [vmem:[%s8132_s3 + $0x120] sm:$0xff]  ;;  %v137_v42 = vld [vmem:[%s8134_s5 + $0x8] sm:$0xff] }
 0x16a   :  { %6043 = vmatprep.subr.bf16.mxu0 %v6892_v20  ;;  %4781 = vmatmul.mubr.msk.f32.gmra.mrb[6].mxu1 %vm295_vm8, %v5346_v40  ;;  %v6102_v40 = vpack.c.bf16 %v87_v37, %v85_v34  ;;  %v136_v41 = vld [vmem:[%s8134_s5] sm:$0xff] }
 0x16b   :  { %602 = vmatprep.mubr.f32.mxu1 %v6738_v51  ;;  %6065 = vmatpush1.bf16.msra.mxu1 %v6064_v47 }
 0x16c   :  { %6099 = vmatprep.subr.bf16.mxu1 %v6098_v53  ;;  %6626 = vset.pattern.permute.xlu1 %v6742_v62  ;;  %v1506_v9 = vpop.permute.xlu1 %1505  ;;  %v89_v53 = vld [vmem:[%s8132_s3 + $0x108] sm:$0xff] }
 0x16d   :  { %6045 = vmatpush3.bf16.msra.mxu0 %v6892_v20  ;;  %1717 = vperm.xlu1 %6626, %v6829_v3   ;;  %vm1510_vm9 = vcmp.eq.s32.totalorder %v1506_v9, %v6954_v36  ;;  %v97_v9 = vld [vmem:[%s8132_s3 + $0x148] sm:$0xff] }
 0x16e   :  { %6047 = vmatprep.subr.bf16.mxu0 %v6905_v24  ;;  %6625 = vset.pattern.permute.xlu0 %v6742_v62 }
 0x16f   :  { %v5349_v48 = vpop.f32.mrb[2].mxu1  ;;  %1714 = vperm.xlu0 %6625, %v6818_v1  }
 0x170   :  { %v505_v49 = vpop.f32.mrb[3].mxu1 }
 0x171   :  { %6049 = vmatpush3.bf16.msra.mxu0 %v6905_v24  ;;  %4782 = vmatmul.mubr.msk.f32.gmra.mrb[8].mxu1 %vm295_vm8, %v505_v49 }
 0x172   :  { %6051 = vmatprep.subr.bf16.mxu0 %v6918_v27  ;;  %608 = vmatprep.mubr.f32.mxu1 %v6738_v51 }
 0x173   :  { %6627 = vset.pattern.permute.xlu1 %v6743_v0  ;;  %6628 = vset.pattern.permute.xlu0 %v6743_v0 }
 0x174   :  { %1932 = vperm.xlu1 %6627, %v6818_v1   ;;  %1935 = vperm.xlu0 %6628, %v6829_v3  }
 0x175   :  { %6053 = vmatpush3.bf16.msra.mxu0 %v6918_v27  ;;  %4783 = vmatmul.mubr.msk.f32.gmra.mrb[10].mxu1 %vm295_vm8, %v5349_v48 }
 0x176   :  { %6055 = vmatprep.subr.bf16.mxu0 %v6932_v30  ;;  %808 = vmatprep.mubr.f32.mxu1 %v6738_v51 }
 0x178   :  { %6629 = vset.pattern.permute.xlu1 %v6742_v62  ;;  %1938 = vperm.xlu0 %6628, %v6823_v2   ;;  %v95_v62 = vld [vmem:[%s8132_s3 + $0x138] sm:$0xff] }
 0x179   :  { %6057 = vmatpush3.bf16.msra.mxu0 %v6932_v30  ;;  %1720 = vperm.xlu1 %6629, %v6823_v2  }
 0x17a   :  { %6067 = vmatprep.subr.bf16.mxu0 %v6843_v7 }
 0x17c   :  { %5383 = vmatmul.mubr.msk.f32.vlgmr.msra.gmra.mrb[12].mxu0 %vm636_vm10, %v6737_v43  ;;  %6631 = vset.pattern.permute.xlu0 %v6744_v11  ;;  %vm1071_vm10 = vcmp.eq.s32.totalorder %v7138_v54, %v6954_v36  ;;  %v91_v54 = vld [vmem:[%s8132_s3 + $0x118] sm:$0xff] }
 0x17d   :  { %5385 = vmatprep.mubr.msk.f32.mxu0 %vm637_vm11, %v6737_v43  ;;  %6069 = vmatpush3.bf16.msra.mxu0 %v6843_v7  ;;  %v6138_v55 = vpack.c.bf16 %v91_v54, %v89_v53  ;;  %vm1072_vm11 = vcmp.eq.s32.totalorder %v7145_v57, %v6954_v36  ;;  %v6144_v57 = vpack.c.bf16 %v94_v5, %v92_v4  ;;  %v4740_v53 = vld [vmem:[%s8134_s5 + $0x28] sm:$0xff]  ;;  %v7414_v54 = vld [vmem:[%s8135_s1] sm:$0xff]  ;;  %v103_v4 = vld [vmem:[%s8132_s3 + $0x178] sm:$0xff] }
 0x17e   :  { %6071 = vmatprep.subr.bf16.mxu0 %v6851_v10  ;;  %1723 = vperm.xlu1 %6629, %v6841_v6  }
 0x17f   :  { %2150 = vperm.xlu0 %6631, %v6818_v1   ;;  %v7193_v1 = vrot.slane %v174_v35, %v182_v12 }
 0x180   :  { %5386 = vmatmul.mubr.msk.f32.gmra.mrb[14].mxu0 %vm638_vm12, %v6737_v43  ;;  %vm1073_vm12 = vcmp.eq.s32.totalorder %v7150_v58, %v6954_v36 }
 0x181   :  { %6073 = vmatpush3.bf16.msra.mxu0 %v6851_v10  ;;  %5420 = vmatprep.mubr.msk.f32.mxu0 %vm853_vm13, %v6737_v43  ;;  %vm1074_vm13 = vcmp.eq.s32.totalorder %v7153_v59, %v6954_v36  ;;  %v99_v59 = vld [vmem:[%s8132_s3 + $0x158] sm:$0xff] }
 0x182   :  { %6075 = vmatprep.subr.bf16.mxu0 %v6866_v13  ;;  %6630 = vset.pattern.permute.xlu1 %v6743_v0  ;;  %v6142_v0 = vpack.c.bf16 %v95_v62, %v93_v61  ;;  %v7428_v61 = vpack.c.bf16 %v4742_v60, %v4741_v56  ;;  %v96_v62 = vld [vmem:[%s8132_s3 + $0x140] sm:$0xff]  ;;  %v110_v56 = vld [vmem:[%s8132_s3 + $0x1b0] sm:$0xff] }
 0x183   :  { %1941 = vperm.xlu1 %6630, %v6841_v6   ;;  %2159 = vperm.xlu0 %6631, %v6841_v6   ;;  %v7204_v6 = vrot.slane %v174_v35, %v178_v14 }
 0x185   :  { %6077 = vmatpush3.bf16.msra.mxu0 %v6866_v13 }
 0x186   :  { %6079 = vmatprep.subr.bf16.mxu0 %v6878_v16 }
 0x187   :  { %6632 = vset.pattern.permute.xlu1 %v6744_v11  ;;  %v6178_v11 = vpack.c.bf16 %v99_v59, %v97_v9  ;;  %v100_v59 = vld [vmem:[%s8132_s3 + $0x160] sm:$0xff] }
 0x188   :  { %2153 = vperm.xlu1 %6632, %v6829_v3  }
 0x189   :  { %6081 = vmatpush3.bf16.msra.mxu0 %v6878_v16 }
 0x18a   :  { %6083 = vmatprep.subr.bf16.mxu0 %v6892_v20 }
 0x18c   :  { %2156 = vperm.xlu1 %6632, %v6823_v2  }
 0x18d   :  { %6085 = vmatpush3.bf16.msra.mxu0 %v6892_v20 }
 0x18e   :  { %6087 = vmatprep.subr.bf16.mxu0 %v6905_v24 }
 0x191   :  { %6089 = vmatpush3.bf16.msra.mxu0 %v6905_v24 }
 0x192   :  { %6091 = vmatprep.subr.bf16.mxu0 %v6918_v27 }
 0x195   :  { %6093 = vmatpush3.bf16.msra.mxu0 %v6918_v27 }
 0x196   :  { %6095 = vmatprep.subr.bf16.mxu0 %v6932_v30 }
 0x199   :  { %6097 = vmatpush3.bf16.msra.mxu0 %v6932_v30 }
 0x19a   :  { %6147 = vmatprep.subr.bf16.mxu0 %v6843_v7 }
 0x19c   :  { %5421 = vmatmul.mubr.msk.f32.vlgmr.msra.gmra.mrb[16].mxu0 %vm854_vm14, %v6737_v43 }
 0x19d   :  { %5423 = vmatprep.mubr.msk.f32.mxu0 %vm855_vm15, %v6737_v43  ;;  %6149 = vmatpush3.bf16.msra.mxu0 %v6843_v7 }
 0x19e   :  { %6151 = vmatprep.subr.bf16.mxu0 %v6851_v10 }
 0x1a0   :  { %5424 = vmatmul.mubr.msk.f32.gmra.mrb[18].mxu0 %vm856_vm0, %v6737_v43 }
 0x1a1   :  { %6153 = vmatpush3.bf16.msra.mxu0 %v6851_v10  ;;  %5496 = vmatprep.mubr.msk.f32.mxu0 %vm1289_vm1, %v6737_v43 }
 0x1a2   :  { %6155 = vmatprep.subr.bf16.mxu0 %v6866_v13 }
 0x1a5   :  { %6157 = vmatpush3.bf16.msra.mxu0 %v6866_v13 }
 0x1a6   :  { %6159 = vmatprep.subr.bf16.mxu0 %v6878_v16 }
 0x1a9   :  { %6161 = vmatpush3.bf16.msra.mxu0 %v6878_v16 }
 0x1aa   :  { %6163 = vmatprep.subr.bf16.mxu0 %v6892_v20 }
 0x1ad   :  { %6165 = vmatpush3.bf16.msra.mxu0 %v6892_v20 }
 0x1ae   :  { %6167 = vmatprep.subr.bf16.mxu0 %v6905_v24 }
 0x1b1   :  { %6169 = vmatpush3.bf16.msra.mxu0 %v6905_v24 }
 0x1b2   :  { %6171 = vmatprep.subr.bf16.mxu0 %v6918_v27 }
 0x1b5   :  { %6173 = vmatpush3.bf16.msra.mxu0 %v6918_v27 }
 0x1b6   :  { %6175 = vmatprep.subr.bf16.mxu0 %v6932_v30 }
 0x1b9   :  { %6177 = vmatpush3.bf16.msra.mxu0 %v6932_v30 }
 0x1ba   :  { %6187 = vmatprep.subr.bf16.mxu0 %v6843_v7 }
 0x1bc   :  { %5497 = vmatmul.mubr.msk.f32.vlgmr.msra.gmra.mrb[20].mxu0 %vm1290_vm2, %v6737_v43 }
 0x1bd   :  { %6189 = vmatpush3.bf16.msra.mxu0 %v6843_v7  ;;  %5499 = vmatprep.mubr.msk.f32.mxu0 %vm1291_vm3, %v6737_v43 }
 0x1be   :  { %6191 = vmatprep.subr.bf16.mxu0 %v6851_v10 }
 0x1c0   :  { %5500 = vmatmul.mubr.msk.f32.gmra.mrb[22].mxu0 %vm1292_vm4, %v6737_v43 }
 0x1c1   :  { %6193 = vmatpush3.bf16.msra.mxu0 %v6851_v10  ;;  %5534 = vmatprep.mubr.msk.f32.mxu0 %vm1507_vm5, %v6737_v43 }
 0x1c2   :  { %6195 = vmatprep.subr.bf16.mxu0 %v6866_v13 }
 0x1c5   :  { %6197 = vmatpush3.bf16.msra.mxu0 %v6866_v13 }
 0x1c6   :  { %6199 = vmatprep.subr.bf16.mxu0 %v6878_v16 }
 0x1c9   :  { %6201 = vmatpush3.bf16.msra.mxu0 %v6878_v16 }
 0x1ca   :  { %6203 = vmatprep.subr.bf16.mxu0 %v6892_v20 }
 0x1cd   :  { %6205 = vmatpush3.bf16.msra.mxu0 %v6892_v20 }
 0x1ce   :  { %6207 = vmatprep.subr.bf16.mxu0 %v6905_v24 }
 0x1d1   :  { %6209 = vmatpush3.bf16.msra.mxu0 %v6905_v24 }
 0x1d2   :  { %6211 = vmatprep.subr.bf16.mxu0 %v6918_v27 }
 0x1d5   :  { %6213 = vmatpush3.bf16.msra.mxu0 %v6918_v27 }
 0x1d6   :  { %6215 = vmatprep.subr.bf16.mxu0 %v6932_v30 }
 0x1d9   :  { %6217 = vmatpush3.bf16.msra.mxu0 %v6932_v30 }
 0x1da   :  { %6267 = vmatprep.subr.bf16.mxu0 %v6843_v7 }
 0x1dc   :  { %5535 = vmatmul.mubr.msk.f32.vlgmr.msra.gmra.mrb[24].mxu0 %vm1508_vm6, %v6737_v43  ;;  %vm6746_vm6 = vmmov 0  }
 0x1dd   :  { %5537 = vmatprep.mubr.msk.f32.mxu0 %vm1509_vm7, %v6737_v43  ;;  %6269 = vmatpush3.bf16.msra.mxu0 %v6843_v7 }
 0x1de   :  { %6271 = vmatprep.subr.bf16.mxu0 %v6851_v10 }
 0x1e0   :  { %5538 = vmatmul.mubr.msk.f32.gmra.mrb[26].mxu0 %vm1510_vm9, %v6737_v43 }
 0x1e1   :  { %6273 = vmatpush3.bf16.msra.mxu0 %v6851_v10 }
 0x1e2   :  { %6275 = vmatprep.subr.bf16.mxu0 %v6866_v13 }
 0x1e5   :  { %6277 = vmatpush3.bf16.msra.mxu0 %v6866_v13 }
 0x1e6   :  { %6279 = vmatprep.subr.bf16.mxu0 %v6878_v16 }
 0x1e9   :  { %6281 = vmatpush3.bf16.msra.mxu0 %v6878_v16 }
 0x1ea   :  { %6283 = vmatprep.subr.bf16.mxu0 %v6892_v20 }
 0x1ed   :  { %6285 = vmatpush3.bf16.msra.mxu0 %v6892_v20 }
 0x1ee   :  { %6287 = vmatprep.subr.bf16.mxu0 %v6905_v24 }
 0x1f1   :  { %6289 = vmatpush3.bf16.msra.mxu0 %v6905_v24 }
 0x1f2   :  { %6291 = vmatprep.subr.bf16.mxu0 %v6918_v27 }
 0x1f5   :  { %6293 = vmatpush3.bf16.msra.mxu0 %v6918_v27 }
 0x1f6   :  { %6295 = vmatprep.subr.bf16.mxu0 %v6932_v30 }
 0x1f9   :  { %6297 = vmatpush3.bf16.msra.mxu0 %v6932_v30 }
 0x1fa   :  { %6307 = vmatprep.subr.bf16.mxu0 %v6843_v7 }
 0x22f   :  { %v7196_v15 = vpop.f32.mrb[4].mxu0 }
 0x230   :  { %v376_v17 = vpop.f32.mrb[5].mxu0 }
 0x231   :  { %v7202_v18 = vadd.f32 %v376_v17, %v7193_v1 }
 0x233   :  { %v380_v19 = vpop.f32.mrb[6].mxu0 }
 0x234   :  { %v7208_v21 = vadd.f32 %v380_v19, %v7204_v6  ;;  %v382_v22 = vpop.f32.mrb[7].mxu0 }
 0x235   :  { %v7213_v3 = vadd.f32 %v382_v22, %v7193_v1 }
 0x237   :  { %v386_v23 = vpop.f32.mrb[8].mxu0 }
 0x238   :  { %v7217_v25 = vadd.f32 %v386_v23, %v7204_v6  ;;  %v388_v26 = vpop.f32.mrb[9].mxu0  ;;  %v7344_v23 = vpop.permute.xlu1 %1717 }
 0x239   :  { %v7221_v28 = vadd.f32 %v388_v26, %v7193_v1  ;;  %v7346_v26 = vpop.permute.xlu0 %1714 }
 0x23a   :  { %vm1725_vm7 = vcmp.eq.s32.totalorder %v7346_v26, %v6954_v36 }
 0x23b   :  { %v392_v29 = vpop.f32.mrb[10].mxu0 }
 0x23c   :  { %v7225_v2 = vadd.f32 %v392_v29, %v7204_v6  ;;  %v7227_v31 = vpop.f32.mrb[11].mxu0  ;;  %v1933_v29 = vpop.permute.xlu1 %1932 }
 0x23d   :  { %vm1943_vm14 = vcmp.eq.s32.totalorder %v1933_v29, %v6954_v36  ;;  %v1936_v32 = vpop.permute.xlu0 %1935 }
 0x23e   :  { %5610 = vmatprep.mubr.msk.f32.mxu0 %vm1943_vm14, %v6737_v43  ;;  %vm1944_vm15 = vcmp.eq.s32.totalorder %v1936_v32, %v6954_v36  ;;  %v105_v32 = vld [vmem:[%s8132_s3 + $0x188] sm:$0xff] }
 0x23f   :  { %5611 = vmatmul.mubr.msk.f32.vlgmr.msra.gmra.mrb[28].mxu0 %vm1944_vm15, %v6737_v43 }
 0x240   :  { %6309 = vmatpush3.bf16.msra.mxu0 %v6843_v7  ;;  %v7353_v33 = vpop.permute.xlu1 %1720 }
 0x241   :  { %6311 = vmatprep.subr.bf16.mxu0 %v6851_v10  ;;  %v1939_v34 = vpop.permute.xlu0 %1938  ;;  %vm1727_vm9 = vcmp.eq.s32.totalorder %v7353_v33, %v6954_v36 }
 0x242   :  { %vm1945_vm0 = vcmp.eq.s32.totalorder %v1939_v34, %v6954_v36  ;;  %v107_v34 = vld [vmem:[%s8132_s3 + $0x198] sm:$0xff] }
 0x243   :  { %5613 = vmatprep.mubr.msk.f32.mxu0 %vm1945_vm0, %v6737_v43 }
 0x244   :  { %6313 = vmatpush3.bf16.msra.mxu0 %v6851_v10  ;;  %v7359_v37 = vpop.permute.xlu1 %1723 }
 0x245   :  { %6315 = vmatprep.subr.bf16.mxu0 %v6866_v13 }
 0x248   :  { %6317 = vmatpush3.bf16.msra.mxu0 %v6866_v13 }
 0x249   :  { %6319 = vmatprep.subr.bf16.mxu0 %v6878_v16 }
 0x24c   :  { %6321 = vmatpush3.bf16.msra.mxu0 %v6878_v16 }
 0x24d   :  { %6323 = vmatprep.subr.bf16.mxu0 %v6892_v20 }
 0x24f   :  { %v5384_v39 = vpop.f32.mrb[12].mxu0 }
 0x250   :  { %v713_v44 = vpop.f32.mrb[13].mxu0  ;;  %6325 = vmatpush3.bf16.msra.mxu0 %v6892_v20 }
 0x251   :  { %4792 = vmatmul.mubr.msk.f32.vlgmr.msra.gmra.mrb[4].mxu1 %vm295_vm8, %v713_v44  ;;  %6327 = vmatprep.subr.bf16.mxu0 %v6905_v24 }
 0x252   :  { %814 = vmatprep.mubr.f32.mxu1 %v6738_v51  ;;  %6101 = vmatpush1.bf16.msra.mxu1 %v6100_v38  ;;  %v2151_v38 = vpop.permute.xlu0 %2150 }
 0x253   :  { %v5387_v46 = vpop.f32.mrb[14].mxu0  ;;  %6103 = vmatprep.subr.bf16.mxu1 %v6102_v40  ;;  %vm2161_vm1 = vcmp.eq.s32.totalorder %v2151_v38, %v6954_v36 }
 0x254   :  { %v723_v47 = vpop.f32.mrb[15].mxu0  ;;  %6329 = vmatpush3.bf16.msra.mxu0 %v6905_v24 }
 0x255   :  { %4793 = vmatmul.mubr.msk.f32.gmra.mrb[6].mxu1 %vm295_vm8, %v5384_v39  ;;  %v1942_v39 = vpop.permute.xlu1 %1941  ;;  %6331 = vmatprep.subr.bf16.mxu0 %v6918_v27 }
 0x256   :  { %820 = vmatprep.mubr.f32.mxu1 %v6738_v51  ;;  %6105 = vmatpush1.bf16.msra.mxu1 %v6104_v45  ;;  %vm1946_vm2 = vcmp.eq.s32.totalorder %v1942_v39, %v6954_v36  ;;  %v7384_v45 = vpack.c.bf16 %v137_v42, %v136_v41  ;;  %v104_v42 = vld [vmem:[%s8132_s3 + $0x180] sm:$0xff] }
 0x257   :  { %6107 = vmatprep.subr.bf16.mxu1 %v6843_v7  ;;  %5614 = vmatmul.mubr.msk.f32.gmra.mrb[30].mxu0 %vm1946_vm2, %v6737_v43 }
 0x258   :  { %5648 = vmatprep.mubr.msk.f32.mxu0 %vm2161_vm1, %v6737_v43  ;;  %6333 = vmatpush3.bf16.msra.mxu0 %v6918_v27 }
 0x259   :  { %4794 = vmatmul.mubr.msk.f32.gmra.mrb[8].mxu1 %vm295_vm8, %v723_v47  ;;  %v2154_v40 = vpop.permute.xlu1 %2153  ;;  %6335 = vmatprep.subr.bf16.mxu0 %v6932_v30  ;;  %v6745_v47 = vmov 0.0|0.0  }
 0x25a   :  { %826 = vmatprep.mubr.f32.mxu1 %v6738_v51  ;;  %vm2162_vm3 = vcmp.eq.s32.totalorder %v2154_v40, %v6954_v36  ;;  %v6218_v40 = vpack.c.bf16 %v107_v34, %v105_v32 }
 0x25c   :  { %6337 = vmatpush3.bf16.msra.mxu0 %v6932_v30 }
 0x25d   :  { %4795 = vmatmul.mubr.msk.f32.gmra.mrb[10].mxu1 %vm295_vm8, %v5387_v46  ;;  %v2157_v44 = vpop.permute.xlu1 %2156  ;;  %v2160_v46 = vpop.permute.xlu0 %2159  ;;  %6346 = vmatprep.subr.bf16.mxu0 %v6745_v47 }
 0x25e   :  { %1026 = vmatprep.mubr.f32.mxu1 %v6738_v51  ;;  %vm2163_vm4 = vcmp.eq.s32.totalorder %v2157_v44, %v6954_v36  ;;  %vm2164_vm5 = vcmp.eq.s32.totalorder %v2160_v46, %v6954_v36  ;;  %v106_v44 = vld [vmem:[%s8132_s3 + $0x190] sm:$0xff]  ;;  %v109_v46 = vld [vmem:[%s8132_s3 + $0x1a8] sm:$0xff] }
 0x25f   :  { %5649 = vmatmul.mubr.msk.f32.vlgmr.msra.gmra.mrb[32].mxu0 %vm2162_vm3, %v6737_v43 }
 0x260   :  { %5651 = vmatprep.mubr.msk.f32.mxu0 %vm2163_vm4, %v6737_v43  ;;  %6348 = vmatpush3.bf16.msra.mxu0 %v7384_v45 }
 0x261   :  { %6349 = vmatprep.subr.bf16.mxu0 %v6745_v47 }
 0x263   :  { %5652 = vmatmul.mubr.msk.f32.gmra.mrb[34].mxu0 %vm2164_vm5, %v6737_v43 }
 0x264   :  { %5662 = vmatprep.mubr.msk.f32.mxu0 %vm6746_vm6, %v6738_v51 }
 0x26f   :  { %v5422_v48 = vpop.f32.mrb[16].mxu0 }
 0x270   :  { %v931_v49 = vpop.f32.mrb[17].mxu0 }
 0x271   :  { %4804 = vmatmul.mubr.msk.f32.vlgmr.msra.gmra.mrb[4].mxu1 %vm295_vm8, %v931_v49  ;;  %v139_v49 = vld [vmem:[%s8134_s5 + $0x18] sm:$0xff] }
 0x272   :  { %6109 = vmatpush3.bf16.msra.mxu1 %v6843_v7  ;;  %1032 = vmatprep.mubr.f32.mxu1 %v6738_v51 }
 0x273   :  { %v5425_v50 = vpop.f32.mrb[18].mxu0  ;;  %6111 = vmatprep.subr.bf16.mxu1 %v6851_v10 }
 0x274   :  { %v941_v52 = vpop.f32.mrb[19].mxu0 }
 0x275   :  { %4805 = vmatmul.mubr.msk.f32.gmra.mrb[6].mxu1 %vm295_vm8, %v5422_v48  ;;  %v138_v48 = vld [vmem:[%s8134_s5 + $0x10] sm:$0xff] }
 0x276   :  { %6113 = vmatpush3.bf16.msra.mxu1 %v6851_v10  ;;  %1038 = vmatprep.mubr.f32.mxu1 %v6738_v51 }
 0x277   :  { %6115 = vmatprep.subr.bf16.mxu1 %v6866_v13 }
 0x279   :  { %4806 = vmatmul.mubr.msk.f32.gmra.mrb[8].mxu1 %vm295_vm8, %v941_v52  ;;  %v4739_v52 = vld [vmem:[%s8134_s5 + $0x20] sm:$0xff] }
 0x27a   :  { %6117 = vmatpush3.bf16.msra.mxu1 %v6866_v13  ;;  %1044 = vmatprep.mubr.f32.mxu1 %v6738_v51 }
 0x27b   :  { %6119 = vmatprep.subr.bf16.mxu1 %v6878_v16 }
 0x27d   :  { %4807 = vmatmul.mubr.msk.f32.gmra.mrb[10].mxu1 %vm295_vm8, %v5425_v50  ;;  %v7398_v50 = vpack.c.bf16 %v139_v49, %v138_v48  ;;  %v111_v48 = vld [vmem:[%s8132_s3 + $0x1b8] sm:$0xff]  ;;  %v6220_v49 = vpack.c.bf16 %v106_v44, %v104_v42 }
 0x27e   :  { %6121 = vmatpush3.bf16.msra.mxu1 %v6878_v16  ;;  %5458 = vmatprep.mubr.msk.f32.mxu1 %vm1071_vm10, %v6737_v43  ;;  %vm1726_vm10 = vcmp.eq.s32.totalorder %v7344_v23, %v6954_v36  ;;  %v131_v42 = vld [vmem:[%s8132_s3 + $0x258] sm:$0xff] }
 0x27f   :  { %6123 = vmatprep.subr.bf16.mxu1 %v6892_v20  ;;  %6351 = vmatpush3.bf16.msra.mxu0 %v7398_v50 }
 0x280   :  { %6352 = vmatprep.subr.bf16.mxu0 %v6745_v47 }
 0x282   :  { %6125 = vmatpush3.bf16.msra.mxu1 %v6892_v20  ;;  %5663 = vmatmul.mubr.msk.f32.vlgmr.msra.gmra.mrb[36].mxu0 %vm295_vm8, %v7414_v54 }
 0x283   :  { %6127 = vmatprep.subr.bf16.mxu1 %v6905_v24  ;;  %5673 = vmatprep.mubr.msk.f32.mxu0 %vm6746_vm6, %v6738_v51 }
 0x286   :  { %6129 = vmatpush3.bf16.msra.mxu1 %v6905_v24 }
 0x287   :  { %6131 = vmatprep.subr.bf16.mxu1 %v6918_v27 }
 0x28a   :  { %6133 = vmatpush3.bf16.msra.mxu1 %v6918_v27 }
 0x28b   :  { %6135 = vmatprep.subr.bf16.mxu1 %v6932_v30 }
 0x28e   :  { %6137 = vmatpush3.bf16.msra.mxu1 %v6932_v30 }
 0x28f   :  { %6139 = vmatprep.subr.bf16.mxu1 %v6138_v55  ;;  %v7322_v58 = vpop.f32.mrb[20].mxu0  ;;  %v7416_v55 = vpack.c.bf16 %v4740_v53, %v4739_v52  ;;  %v6222_v52 = vpack.c.bf16 %v111_v48, %v109_v46  ;;  %v108_v53 = vld [vmem:[%s8132_s3 + $0x1a0] sm:$0xff] }
 0x290   :  { %v7324_v8 = vpop.f32.mrb[21].mxu0  ;;  %v6224_v60 = vpack.c.bf16 %v110_v56, %v108_v53  ;;  %v130_v53 = vld [vmem:[%s8132_s3 + $0x250] sm:$0xff]  ;;  %v133_v56 = vld [vmem:[%s8132_s3 + $0x268] sm:$0xff] }
 0x291   :  { %5459 = vmatmul.mubr.msk.f32.vlgmr.msra.gmra.mrb[12].mxu1 %vm1072_vm11, %v6737_v43  ;;  %6354 = vmatpush3.bf16.msra.mxu0 %v7416_v55  ;;  %vm1728_vm11 = vcmp.eq.s32.totalorder %v7359_v37, %v6954_v36  ;;  %v123_v36 = vld [vmem:[%s8132_s3 + $0x218] sm:$0xff] }
 0x292   :  { %5461 = vmatprep.mubr.msk.f32.mxu1 %vm1073_vm12, %v6737_v43  ;;  %6141 = vmatpush1.bf16.msra.mxu1 %v6140_v63  ;;  %v98_v63 = vld [vmem:[%s8132_s3 + $0x150] sm:$0xff] }
 0x293   :  { %6143 = vmatprep.subr.bf16.mxu1 %v6142_v0  ;;  %v7332_v12 = vpop.f32.mrb[22].mxu0  ;;  %6355 = vmatprep.subr.bf16.mxu0 %v6745_v47  ;;  %v101_v0 = vld [vmem:[%s8132_s3 + $0x168] sm:$0xff]  ;;  %v6180_v5 = vpack.c.bf16 %v98_v63, %v96_v62 }
 0x294   :  { %v7334_v35 = vpop.f32.mrb[23].mxu0  ;;  %v6182_v9 = vpack.c.bf16 %v103_v4, %v101_v0 }
 0x295   :  { %5462 = vmatmul.mubr.msk.f32.gmra.mrb[14].mxu1 %vm1074_vm13, %v6737_v43  ;;  %6357 = vmatpush3.bf16.msra.mxu0 %v7428_v61 }
 0x296   :  { %6145 = vmatpush1.bf16.msra.mxu1 %v6144_v57  ;;  %1244 = vmatprep.mubr.f32.mxu1 %v6738_v51 }
 0x297   :  { %6179 = vmatprep.subr.bf16.mxu1 %v6178_v11  ;;  %6364 = vmatprep.subr.bf16.mxu0 %v6745_v47  ;;  %v102_v11 = vld [vmem:[%s8132_s3 + $0x170] sm:$0xff] }
 0x298   :  { %5674 = vmatmul.mubr.msk.f32.vlgmr.msra.gmra.mrb[38].mxu0 %vm295_vm8, %v7414_v54  ;;  %v6184_v38 = vpack.c.bf16 %v102_v11, %v100_v59  ;;  %v125_v59 = vld [vmem:[%s8132_s3 + $0x228] sm:$0xff]  ;;  %v127_v11 = vld [vmem:[%s8132_s3 + $0x238] sm:$0xff] }
 0x299   :  { %6366 = vmatpush3.bf16.msra.mxu0 %v7384_v45  ;;  %5695 = vmatprep.mubr.msk.f32.mxu0 %vm6746_vm6, %v6738_v51  ;;  %v6302_v34 = vpack.c.bf16 %v127_v11, %v125_v59 }
 0x29a   :  { %6367 = vmatprep.subr.bf16.mxu0 %v6745_v47 }
 0x29d   :  { %6369 = vmatpush3.bf16.msra.mxu0 %v7398_v50 }
 0x29e   :  { %6376 = vmatprep.subr.bf16.mxu0 %v6745_v47 }
 0x2af   :  { %v7336_v14 = vpop.f32.mrb[24].mxu0 }
 0x2b0   :  { %v7338_v17 = vpop.f32.mrb[25].mxu0 }
 0x2b3   :  { %v7340_v19 = vpop.f32.mrb[26].mxu0 }
 0x2b4   :  { %v7342_v22 = vpop.f32.mrb[27].mxu0 }
 0x364   :  { %v5460_v57 = vpop.f32.mrb[12].mxu1 }
 0x365   :  { %v1149_v29 = vpop.f32.mrb[13].mxu1 }
 0x366   :  { %4816 = vmatmul.mubr.msk.f32.vlgmr.msra.gmra.mrb[4].mxu1 %vm295_vm8, %v1149_v29 }
 0x367   :  { %6181 = vmatpush1.bf16.msra.mxu1 %v6180_v5  ;;  %1250 = vmatprep.mubr.f32.mxu1 %v6738_v51 }
 0x368   :  { %v5463_v39 = vpop.f32.mrb[14].mxu1  ;;  %6183 = vmatprep.subr.bf16.mxu1 %v6182_v9  ;;  %v122_v9 = vld [vmem:[%s8132_s3 + $0x210] sm:$0xff] }
 0x369   :  { %v1159_v41 = vpop.f32.mrb[15].mxu1 }
 0x36a   :  { %4817 = vmatmul.mubr.msk.f32.gmra.mrb[6].mxu1 %vm295_vm8, %v5460_v57  ;;  %v120_v57 = vld [vmem:[%s8132_s3 + $0x200] sm:$0xff] }
 0x36b   :  { %1256 = vmatprep.mubr.f32.mxu1 %v6738_v51  ;;  %6185 = vmatpush1.bf16.msra.mxu1 %v6184_v38  ;;  %v6300_v29 = vpack.c.bf16 %v122_v9, %v120_v57  ;;  %v124_v38 = vld [vmem:[%s8132_s3 + $0x220] sm:$0xff] }
 0x36c   :  { %6219 = vmatprep.subr.bf16.mxu1 %v6218_v40 }
 0x36e   :  { %4818 = vmatmul.mubr.msk.f32.gmra.mrb[8].mxu1 %vm295_vm8, %v1159_v41  ;;  %v129_v41 = vld [vmem:[%s8132_s3 + $0x248] sm:$0xff] }
 0x36f   :  { %1262 = vmatprep.mubr.f32.mxu1 %v6738_v51  ;;  %v6338_v48 = vpack.c.bf16 %v131_v42, %v129_v41 }
 0x372   :  { %4819 = vmatmul.mubr.msk.f32.gmra.mrb[10].mxu1 %vm295_vm8, %v5463_v39  ;;  %v126_v39 = vld [vmem:[%s8132_s3 + $0x230] sm:$0xff] }
 0x373   :  { %1462 = vmatprep.mubr.f32.mxu1 %v6738_v51  ;;  %v6304_v44 = vpack.c.bf16 %v126_v39, %v124_v38 }
 0x376   :  { %4828 = vmatmul.mubr.msk.f32.vlgmr.msra.gmra.mrb[4].mxu1 %vm295_vm8, %v7324_v8 }
 0x377   :  { %6221 = vmatpush1.bf16.msra.mxu1 %v6220_v49  ;;  %1468 = vmatprep.mubr.f32.mxu1 %v6738_v51 }
 0x378   :  { %6223 = vmatprep.subr.bf16.mxu1 %v6222_v52  ;;  %v128_v52 = vld [vmem:[%s8132_s3 + $0x240] sm:$0xff] }
 0x37a   :  { %4829 = vmatmul.mubr.msk.f32.gmra.mrb[6].mxu1 %vm295_vm8, %v7322_v58  ;;  %v119_v58 = vld [vmem:[%s8132_s3 + $0x1f8] sm:$0xff] }
 0x37b   :  { %1474 = vmatprep.mubr.f32.mxu1 %v6738_v51  ;;  %6225 = vmatpush1.bf16.msra.mxu1 %v6224_v60  ;;  %v135_v60 = vld [vmem:[%s8132_s3 + $0x278] sm:$0xff] }
 0x37c   :  { %6227 = vmatprep.subr.bf16.mxu1 %v6843_v7 }
 0x37e   :  { %4830 = vmatmul.mubr.msk.f32.gmra.mrb[8].mxu1 %vm295_vm8, %v7334_v35  ;;  %v118_v35 = vld [vmem:[%s8132_s3 + $0x1f0] sm:$0xff] }
 0x37f   :  { %1480 = vmatprep.mubr.f32.mxu1 %v6738_v51 }
 0x382   :  { %4831 = vmatmul.mubr.msk.f32.gmra.mrb[10].mxu1 %vm295_vm8, %v7332_v12  ;;  %v116_v12 = vld [vmem:[%s8132_s3 + $0x1e0] sm:$0xff] }
 0x383   :  { %1680 = vmatprep.mubr.f32.mxu1 %v6738_v51 }
 0x386   :  { %4840 = vmatmul.mubr.msk.f32.vlgmr.msra.gmra.mrb[4].mxu1 %vm295_vm8, %v7338_v17 }
 0x387   :  { %6229 = vmatpush3.bf16.msra.mxu1 %v6843_v7  ;;  %1686 = vmatprep.mubr.f32.mxu1 %v6738_v51  ;;  %v113_v7 = vld [vmem:[%s8132_s3 + $0x1c8] sm:$0xff] }
 0x388   :  { %6231 = vmatprep.subr.bf16.mxu1 %v6851_v10 }
 0x38a   :  { %4841 = vmatmul.mubr.msk.f32.gmra.mrb[6].mxu1 %vm295_vm8, %v7336_v14  ;;  %v5612_v14 = vpop.f32.mrb[28].mxu0 }
 0x38b   :  { %6233 = vmatpush3.bf16.msra.mxu1 %v6851_v10  ;;  %1692 = vmatprep.mubr.f32.mxu1 %v6738_v51  ;;  %v115_v10 = vld [vmem:[%s8132_s3 + $0x1d8] sm:$0xff]  ;;  %v2021_v17 = vpop.f32.mrb[29].mxu0 }
 0x38c   :  { %6235 = vmatprep.subr.bf16.mxu1 %v6866_v13  ;;  %v5615_v23 = vpop.f32.mrb[30].mxu0 }
 0x38d   :  { %v2031_v26 = vpop.f32.mrb[31].mxu0 }
 0x38e   :  { %4842 = vmatmul.mubr.msk.f32.gmra.mrb[8].mxu1 %vm295_vm8, %v7342_v22  ;;  %v7575_v33 = vpop.f32.mrb[32].mxu0 }
 0x38f   :  { %6237 = vmatpush3.bf16.msra.mxu1 %v6866_v13  ;;  %1698 = vmatprep.mubr.f32.mxu1 %v6738_v51  ;;  %v6258_v13 = vpack.c.bf16 %v115_v10, %v113_v7  ;;  %v6340_v7 = vpack.c.bf16 %v130_v53, %v128_v52  ;;  %v6342_v10 = vpack.c.bf16 %v135_v60, %v133_v56 }
 0x390   :  { %6239 = vmatprep.subr.bf16.mxu1 %v6878_v16 }
 0x392   :  { %4843 = vmatmul.mubr.msk.f32.gmra.mrb[10].mxu1 %vm295_vm8, %v7340_v19  ;;  %v121_v19 = vld [vmem:[%s8132_s3 + $0x208] sm:$0xff] }
 0x393   :  { %6241 = vmatpush3.bf16.msra.mxu1 %v6878_v16  ;;  %5572 = vmatprep.mubr.msk.f32.mxu1 %vm1725_vm7, %v6737_v43  ;;  %v112_v16 = vld [vmem:[%s8132_s3 + $0x1c0] sm:$0xff]  ;;  %v6298_v22 = vpack.c.bf16 %v123_v36, %v121_v19 }
 0x394   :  { %6243 = vmatprep.subr.bf16.mxu1 %v6892_v20 }
 0x397   :  { %6245 = vmatpush3.bf16.msra.mxu1 %v6892_v20  ;;  %v114_v20 = vld [vmem:[%s8132_s3 + $0x1d0] sm:$0xff] }
 0x398   :  { %6247 = vmatprep.subr.bf16.mxu1 %v6905_v24 }
 0x39b   :  { %6249 = vmatpush3.bf16.msra.mxu1 %v6905_v24  ;;  %v117_v24 = vld [vmem:[%s8132_s3 + $0x1e8] sm:$0xff] }
 0x39c   :  { %6251 = vmatprep.subr.bf16.mxu1 %v6918_v27  ;;  %v6262_v8 = vpack.c.bf16 %v119_v58, %v117_v24  ;;  %v4743_v24 = vld [vmem:[%s8134_s5 + $0x40] sm:$0xff]  ;;  %v4744_v58 = vld [vmem:[%s8134_s5 + $0x48] sm:$0xff] }
 0x39f   :  { %6253 = vmatpush3.bf16.msra.mxu1 %v6918_v27  ;;  %v6260_v27 = vpack.c.bf16 %v114_v20, %v112_v16  ;;  %v134_v16 = vld [vmem:[%s8132_s3 + $0x270] sm:$0xff] }
 0x3a0   :  { %6255 = vmatprep.subr.bf16.mxu1 %v6932_v30 }
 0x3a3   :  { %6257 = vmatpush3.bf16.msra.mxu1 %v6932_v30  ;;  %v6264_v30 = vpack.c.bf16 %v118_v35, %v116_v12  ;;  %v4746_v12 = vld [vmem:[%s8134_s5 + $0x58] sm:$0xff] }
 0x3a4   :  { %6259 = vmatprep.subr.bf16.mxu1 %v6258_v13  ;;  %v132_v13 = vld [vmem:[%s8132_s3 + $0x260] sm:$0xff] }
 0x3a5   :  { %v6344_v20 = vpack.c.bf16 %v134_v16, %v132_v13 }
 0x3a6   :  { %5573 = vmatmul.mubr.msk.f32.vlgmr.msra.gmra.mrb[16].mxu1 %vm1726_vm10, %v6737_v43 }
 0x3a7   :  { %5575 = vmatprep.mubr.msk.f32.mxu1 %vm1727_vm9, %v6737_v43  ;;  %6261 = vmatpush1.bf16.msra.mxu1 %v6260_v27  ;;  %v7653_v27 = vpack.c.bf16 %v4744_v58, %v4743_v24 }
 0x3a8   :  { %6263 = vmatprep.subr.bf16.mxu1 %v6262_v8  ;;  %v4745_v8 = vld [vmem:[%s8134_s5 + $0x50] sm:$0xff] }
 0x3a9   :  { %v7665_v35 = vpack.c.bf16 %v4746_v12, %v4745_v8 }
 0x3aa   :  { %5576 = vmatmul.mubr.msk.f32.gmra.mrb[18].mxu1 %vm1728_vm11, %v6737_v43  ;;  %v7577_v43 = vpop.f32.mrb[33].mxu0 }
 0x3ab   :  { %6265 = vmatpush1.bf16.msra.mxu1 %v6264_v30  ;;  %1898 = vmatprep.mubr.f32.mxu1 %v6738_v51  ;;  %v7579_v37 = vpop.f32.mrb[34].mxu0  ;;  %v397_v30 = vadd.f32 %v7196_v15, %v7204_v6 }
 0x3ac   :  { %6299 = vmatprep.subr.bf16.mxu1 %v6298_v22  ;;  %v7581_v62 = vpop.f32.mrb[35].mxu0 }
 0x3ad   :  { %v7583_v63 = vpop.f32.mrb[36].mxu0 }
 0x3ae   :  { %v5664_v0 = vpop.f32.mrb[37].mxu0 }
 0x3af   :  { %v2514_v4 = vpop.f32.mrb[38].mxu0 }
 0x3b0   :  { %2519 = vrot.lane.b32.xlu0 %v2514_v4, %s6747_s29  ;;  %v5675_v5 = vpop.f32.mrb[39].mxu0 }
 0x3b4   :  { %2618 = vrot.lane.b32.xlu0 %v7414_v54, %s6747_s29 }
 0x479   :  { %v5574_v32 = vpop.f32.mrb[16].mxu1 }
 0x47a   :  { %v1803_v40 = vpop.f32.mrb[17].mxu1 }
 0x47b   :  { %4852 = vmatmul.mubr.msk.f32.vlgmr.msra.gmra.mrb[4].mxu1 %vm295_vm8, %v1803_v40 }
 0x47c   :  { %6301 = vmatpush1.bf16.msra.mxu1 %v6300_v29  ;;  %1904 = vmatprep.mubr.f32.mxu1 %v6738_v51  ;;  %v2520_v29 = vpop.permute.xlu0 %2519 }
 0x47d   :  { %v5577_v46 = vpop.f32.mrb[18].mxu1  ;;  %6303 = vmatprep.subr.bf16.mxu1 %v6302_v34 }
 0x47e   :  { %v1813_v49 = vpop.f32.mrb[19].mxu1 }
 0x47f   :  { %4853 = vmatmul.mubr.msk.f32.gmra.mrb[6].mxu1 %vm295_vm8, %v5574_v32 }
 0x480   :  { %1910 = vmatprep.mubr.f32.mxu1 %v6738_v51  ;;  %6305 = vmatpush1.bf16.msra.mxu1 %v6304_v44  ;;  %v2619_v41 = vpop.permute.xlu0 %2618 }
 0x481   :  { %6339 = vmatprep.subr.bf16.mxu1 %v6338_v48 }
 0x483   :  { %4854 = vmatmul.mubr.msk.f32.gmra.mrb[8].mxu1 %vm295_vm8, %v1813_v49 }
 0x484   :  { %1916 = vmatprep.mubr.f32.mxu1 %v6738_v51 }
 0x487   :  { %4855 = vmatmul.mubr.msk.f32.gmra.mrb[10].mxu1 %vm295_vm8, %v5577_v46 }
 0x488   :  { %2116 = vmatprep.mubr.f32.mxu1 %v6738_v51 }
 0x48b   :  { %4864 = vmatmul.mubr.msk.f32.vlgmr.msra.gmra.mrb[4].mxu1 %vm295_vm8, %v2021_v17 }
 0x48c   :  { %6341 = vmatpush1.bf16.msra.mxu1 %v6340_v7  ;;  %2122 = vmatprep.mubr.f32.mxu1 %v6738_v51 }
 0x48d   :  { %6343 = vmatprep.subr.bf16.mxu1 %v6342_v10 }
 0x48f   :  { %4865 = vmatmul.mubr.msk.f32.gmra.mrb[6].mxu1 %vm295_vm8, %v5612_v14 }
 0x490   :  { %2128 = vmatprep.mubr.f32.mxu1 %v6738_v51  ;;  %6345 = vmatpush1.bf16.msra.mxu1 %v6344_v20 }
 0x491   :  { %6358 = vmatprep.subr.bf16.mxu1 %v6745_v47 }
 0x493   :  { %4866 = vmatmul.mubr.msk.f32.gmra.mrb[8].mxu1 %vm295_vm8, %v2031_v26 }
 0x494   :  { %2134 = vmatprep.mubr.f32.mxu1 %v6738_v51 }
 0x497   :  { %4867 = vmatmul.mubr.msk.f32.gmra.mrb[10].mxu1 %vm295_vm8, %v5615_v23 }
 0x498   :  { %2334 = vmatprep.mubr.f32.mxu1 %v6738_v51 }
 0x49b   :  { %4876 = vmatmul.mubr.msk.f32.vlgmr.msra.gmra.mrb[4].mxu1 %vm295_vm8, %v7577_v43 }
 0x49c   :  { %2340 = vmatprep.mubr.f32.mxu1 %v6738_v51  ;;  %6360 = vmatpush3.bf16.msra.mxu1 %v7653_v27 }
 0x49d   :  { %6361 = vmatprep.subr.bf16.mxu1 %v6745_v47 }
 0x49f   :  { %4877 = vmatmul.mubr.msk.f32.gmra.mrb[6].mxu1 %vm295_vm8, %v7575_v33 }
 0x4a0   :  { %2346 = vmatprep.mubr.f32.mxu1 %v6738_v51  ;;  %6363 = vmatpush3.bf16.msra.mxu1 %v7665_v35 }
 0x4a1   :  { %6370 = vmatprep.subr.bf16.mxu1 %v6745_v47 }
 0x4a3   :  { %4878 = vmatmul.mubr.msk.f32.gmra.mrb[8].mxu1 %vm295_vm8, %v7581_v62  ;;  %v404_v62 = vadd.f32 %v7227_v31, %v7193_v1 }
 0x4a4   :  { %2352 = vmatprep.mubr.f32.mxu1 %v6738_v51 }
 0x4a7   :  { %4879 = vmatmul.mubr.msk.f32.gmra.mrb[10].mxu1 %vm295_vm8, %v7579_v37 }
 0x4a8   :  { %5684 = vmatprep.mubr.msk.f32.mxu1 %vm6746_vm6, %v6738_v51 }
 0x4ab   :  { %5685 = vmatmul.mubr.msk.f32.vlgmr.msra.gmra.mrb[20].mxu1 %vm295_vm8, %v7414_v54 }
 0x4ac   :  { %6372 = vmatpush3.bf16.msra.mxu1 %v7416_v55  ;;  %5706 = vmatprep.mubr.msk.f32.mxu1 %vm6746_vm6, %v6738_v51 }
 0x4ad   :  { %6373 = vmatprep.subr.bf16.mxu1 %v6745_v47 }
 0x4b0   :  { %6375 = vmatpush3.bf16.msra.mxu1 %v7428_v61 }
 0x4b1   :  { %6382 = vmatprep.subr.bf16.mxu1 %v6745_v47 }
 0x56e   :  { %v2336_v14 = vpop.f32.mrb[4].mxu1 }
 0x56f   :  { %v7690_v17 = vadd.f32 %v2336_v14, %v397_v30  ;;  %v2338_v19 = vpop.f32.mrb[5].mxu1 }
 0x570   :  { %v7693_v54 = vadd.f32 %v2338_v19, %v7202_v18 }
 0x571   :  { %v2441_v36 = vadd.f32 %v7690_v17, %v7583_v63  ;;  %v2522_v32 = vadd.f32 %v7690_v17, %v2520_v29 }
 0x572   :  { %v2342_v22 = vpop.f32.mrb[6].mxu1 }
 0x573   :  { %v4881_v23 = vmul.f32 -1.442695, %v2441_v36  ;;  %v7698_v26 = vadd.f32 %v2342_v22, %v7208_v21  ;;  %v2344_v33 = vpop.f32.mrb[7].mxu1  ;;  %v4883_v34 = vmul.f32 -1.442695, %v2522_v32 }
 0x574   :  { %v7701_v43 = vadd.f32 %v2344_v33, %v7213_v3 }
 0x575   :  { %6633 = vpow2.f32 %v4881_v23 }
 0x576   :  { %v2348_v15 = vpop.f32.mrb[8].mxu1 }
 0x577   :  { %v7704_v6 = vadd.f32 %v2348_v15, %v7217_v25  ;;  %v2350_v37 = vpop.f32.mrb[9].mxu1  ;;  %v7719_v25 = vld [vmem:[%s8136_s6] ss:$0 sm:$0xff] }
 0x578   :  { %v7707_v18 = vadd.f32 %v2350_v37, %v7221_v28 }
 0x57a   :  { %v2354_v63 = vpop.f32.mrb[10].mxu1 }
 0x57b   :  { %v7712_v21 = vadd.f32 %v2354_v63, %v7225_v2  ;;  %v2356_v0 = vpop.f32.mrb[11].mxu1 }
 0x57c   :  { %v7714_v4 = vadd.f32 %v2356_v0, %v404_v62 }
 0x57e   :  { %v2601_v3 = vpop.f32.mrb[20].mxu1 }
 0x57f   :  { %v6634_v5 = vpop.eup %6633  ;;  %v5686_v57 = vpop.f32.mrb[21].mxu1  ;;  %v2602_v28 = vadd.f32 %v7719_v25, %v2601_v3 }
 0x580   :  { %v2445_v9 = vadd.f32 1.0, %v6634_v5 }
 0x582   :  { %6635 = vrcp.f32 %v2445_v9 }
 0x58c   :  { %v6636_v1 = vpop.eup %6635 }
 0x58d   :  { %v2605_v31 = vmul.f32 %v6636_v1, %v2602_v28 }
 0x58f   :  { %2607 = vrot.lane.b32.xlu1 %v2605_v31, %s6748_s26 }
 0x601   :  { %v2608_v2 = vpop.permute.xlu1 %2607 }
 0x602   :  { %v2610_v59 = vadd.f32 %v7690_v17, %v2608_v2 }
 0x604   :  { %6637 = vtanh.f32 %v2610_v59 }
 0x605   :  { %6639 = vpow2.f32 %v4883_v34 }
 0x60e   :  { %v6638_v11 = vpop.eup %6637 }
 0x60f   :  { %2614 = vrot.lane.b32.xlu1 %v6638_v11, %s6749_s27  ;;  %v6640_v38 = vpop.eup %6639 }
 0x610   :  { %v2526_v39 = vadd.f32 1.0, %v6640_v38 }
 0x612   :  { %6641 = vrcp.f32 %v2526_v39 }
 0x61c   :  { %v6642_v40 = vpop.eup %6641 }
 0x61d   :  { %v2612_v42 = vsub.f32 1.0, %v6642_v40  ;;  %v2621_v46 = vmul.f32 %v6642_v40, %v2619_v41 }
 0x681   :  { %v2615_v44 = vpop.permute.xlu1 %2614 }
 0x682   :  { %v2617_v48 = vmul.f32 %v2615_v44, %v2612_v42 }
 0x684   :  { %v7726_v49 = vadd.f32 %v2621_v46, %v2617_v48 }
 0x686   :  { %2624 = vrot.lane.b32.xlu1 %v7726_v49, %s6749_s27 }
 0x6f8   :  { %v2625_v52 = vpop.permute.xlu1 %2624 }
 0x6f9   :  { %5696 = vmatmul.mubr.msk.f32.vlgmr.msra.gmra.mrb[40].mxu0 %vm295_vm8, %v2625_v52  ;;  %5707 = vmatmul.mubr.msk.f32.vlgmr.msra.gmra.mrb[22].mxu1 %vm295_vm8, %v2625_v52 }
 0x6fa   :  { %6378 = vmatpush3.bf16.msra.mxu0 %v7653_v27  ;;  %5717 = vmatprep.mubr.msk.f32.mxu0 %vm6746_vm6, %v6738_v51 }
 0x6fb   :  { %6379 = vmatprep.subr.bf16.mxu0 %v6745_v47  ;;  %6384 = vmatpush3.bf16.msra.mxu1 %v7384_v45 }
 0x6fc   :  { %6385 = vmatprep.subr.bf16.mxu1 %v6745_v47  ;;  %5728 = vmatprep.mubr.msk.f32.mxu1 %vm6746_vm6, %v6738_v51 }
 0x6fe   :  { %6381 = vmatpush3.bf16.msra.mxu0 %v7665_v35 }
 0x6ff   :  { %6388 = vmatprep.subr.bf16.mxu0 %v6745_v47  ;;  %6387 = vmatpush3.bf16.msra.mxu1 %v7398_v50 }
 0x700   :  { %6394 = vmatprep.subr.bf16.mxu1 %v6745_v47 }
 0x701   :  { %5718 = vmatmul.mubr.msk.f32.vlgmr.msra.gmra.mrb[42].mxu0 %vm295_vm8, %v2625_v52 }
 0x702   :  { %6390 = vmatpush3.bf16.msra.mxu0 %v7416_v55  ;;  %5739 = vmatprep.mubr.msk.f32.mxu0 %vm6746_vm6, %v6738_v51 }
 0x703   :  { %6391 = vmatprep.subr.bf16.mxu0 %v6745_v47 }
 0x706   :  { %6393 = vmatpush3.bf16.msra.mxu0 %v7428_v61 }
 0x707   :  { %6400 = vmatprep.subr.bf16.mxu0 %v6745_v47 }
 0x7cc   :  { %v2694_v53 = vpop.f32.mrb[40].mxu0  ;;  %v2771_v56 = vpop.f32.mrb[22].mxu1 }
 0x7cd   :  { %v2698_v60 = vadd.f32 %v7698_v26, %v2694_v53  ;;  %v5697_v7 = vpop.f32.mrb[41].mxu0  ;;  %2776 = vrot.lane.b32.xlu1 %v2771_v56, %s6747_s29  ;;  %v5708_v10 = vpop.f32.mrb[23].mxu1 }
 0x7cf   :  { %v4887_v13 = vmul.f32 -1.442695, %v2698_v60 }
 0x7d1   :  { %6643 = vpow2.f32 %v4887_v13  ;;  %v4747_v13 = vld [vmem:[%s8134_s5 + $0x60] sm:$0xff] }
 0x7d4   :  { %v2852_v16 = vpop.f32.mrb[42].mxu0 }
 0x7d5   :  { %v5719_v20 = vpop.f32.mrb[43].mxu0  ;;  %v2853_v8 = vadd.f32 %v7719_v25, %v2852_v16  ;;  %v4748_v16 = vld [vmem:[%s8134_s5 + $0x68] sm:$0xff] }
 0x7d6   :  { %v7802_v20 = vpack.c.bf16 %v4748_v16, %v4747_v13 }
 0x7db   :  { %v6644_v24 = vpop.eup %6643 }
 0x7dc   :  { %v2702_v58 = vadd.f32 1.0, %v6644_v24  ;;  %v4749_v24 = vld [vmem:[%s8134_s5 + $0x70] sm:$0xff] }
 0x7de   :  { %6645 = vrcp.f32 %v2702_v58  ;;  %v4750_v58 = vld [vmem:[%s8134_s5 + $0x78] sm:$0xff] }
 0x7e8   :  { %v6646_v12 = vpop.eup %6645 }
 0x7e9   :  { %v2856_v30 = vmul.f32 %v6646_v12, %v2853_v8  ;;  %v7814_v12 = vpack.c.bf16 %v4750_v58, %v4749_v24 }
 0x7eb   :  { %2858 = vrot.lane.b32.xlu0 %v2856_v30, %s6748_s26  ;;  %v4751_v30 = vld [vmem:[%s8134_s5 + $0x80] sm:$0xff] }
 0x83f   :  { %v2777_v22 = vpop.permute.xlu1 %2776 }
 0x840   :  { %v2779_v23 = vadd.f32 %v7698_v26, %v2777_v22 }
 0x842   :  { %v4889_v33 = vmul.f32 -1.442695, %v2779_v23  ;;  %v4753_v23 = vld [vmem:[%s8134_s5 + $0x90] sm:$0xff] }
 0x85d   :  { %v2859_v14 = vpop.permute.xlu0 %2858 }
 0x85e   :  { %v2861_v19 = vadd.f32 %v7698_v26, %v2859_v14  ;;  %v4752_v14 = vld [vmem:[%s8134_s5 + $0x88] sm:$0xff] }
 0x85f   :  { %v7841_v22 = vpack.c.bf16 %v4752_v14, %v4751_v30 }
 0x860   :  { %6647 = vtanh.f32 %v2861_v19  ;;  %v4756_v19 = vld [vmem:[%s8134_s5 + $0xa8] sm:$0xff] }
 0x861   :  { %6649 = vpow2.f32 %v4889_v33  ;;  %v4754_v33 = vld [vmem:[%s8134_s5 + $0x98] sm:$0xff] }
 0x86a   :  { %v6648_v36 = vpop.eup %6647 }
 0x86b   :  { %2865 = vrot.lane.b32.xlu0 %v6648_v36, %s6749_s27  ;;  %v6650_v15 = vpop.eup %6649  ;;  %v7839_v36 = vld [vmem:[%s8135_s1 + $0x8] sm:$0xff] }
 0x86c   :  { %v2783_v37 = vadd.f32 1.0, %v6650_v15  ;;  %v4757_v15 = vld [vmem:[%s8134_s5 + $0xb0] sm:$0xff] }
 0x86e   :  { %6651 = vrcp.f32 %v2783_v37  ;;  %v4758_v37 = vld [vmem:[%s8134_s5 + $0xb8] sm:$0xff] }
 0x878   :  { %v6652_v62 = vpop.eup %6651 }
 0x879   :  { %v2863_v63 = vsub.f32 1.0, %v6652_v62  ;;  %v2869_v5 = vmul.f32 %v6652_v62, %v7726_v49  ;;  %v7863_v62 = vpack.c.bf16 %v4754_v33, %v4753_v23 }
 0x8dd   :  { %v2866_v0 = vpop.permute.xlu0 %2865 }
 0x8de   :  { %v2868_v3 = vmul.f32 %v2866_v0, %v2863_v63  ;;  %v7869_v63 = vpack.c.bf16 %v4758_v37, %v4757_v15 }
 0x8e0   :  { %v7759_v57 = vadd.f32 %v2869_v5, %v2868_v3 }
 0x8e2   :  { %2872 = vrot.lane.b32.xlu1 %v7759_v57, %s6749_s27 }
 0x954   :  { %v2873_v9 = vpop.permute.xlu1 %2872 }
 0x955   :  { %5729 = vmatmul.mubr.msk.f32.vlgmr.msra.gmra.mrb[24].mxu1 %vm295_vm8, %v2873_v9  ;;  %5740 = vmatmul.mubr.msk.f32.vlgmr.msra.gmra.mrb[44].mxu0 %vm295_vm8, %v2873_v9 }
 0x956   :  { %6396 = vmatpush3.bf16.msra.mxu1 %v7653_v27  ;;  %5750 = vmatprep.mubr.msk.f32.mxu1 %vm6746_vm6, %v6738_v51 }
 0x957   :  { %6397 = vmatprep.subr.bf16.mxu1 %v6745_v47  ;;  %6402 = vmatpush3.bf16.msra.mxu0 %v7384_v45 }
 0x958   :  { %6403 = vmatprep.subr.bf16.mxu0 %v6745_v47  ;;  %5761 = vmatprep.mubr.msk.f32.mxu0 %vm6746_vm6, %v6738_v51 }
 0x95a   :  { %6399 = vmatpush3.bf16.msra.mxu1 %v7665_v35 }
 0x95b   :  { %6406 = vmatprep.subr.bf16.mxu1 %v6745_v47  ;;  %6405 = vmatpush3.bf16.msra.mxu0 %v7398_v50 }
 0x95c   :  { %6412 = vmatprep.subr.bf16.mxu0 %v6745_v47 }
 0x95d   :  { %5751 = vmatmul.mubr.msk.f32.vlgmr.msra.gmra.mrb[26].mxu1 %vm295_vm8, %v2873_v9 }
 0x95e   :  { %6408 = vmatpush3.bf16.msra.mxu1 %v7416_v55  ;;  %5772 = vmatprep.mubr.msk.f32.mxu1 %vm6746_vm6, %v6738_v51 }
 0x95f   :  { %6409 = vmatprep.subr.bf16.mxu1 %v6745_v47 }
 0x962   :  { %6411 = vmatpush3.bf16.msra.mxu1 %v7428_v61 }
 0x963   :  { %6418 = vmatprep.subr.bf16.mxu1 %v6745_v47 }
 0xa28   :  { %v2942_v45 = vpop.f32.mrb[24].mxu1  ;;  %v3019_v28 = vpop.f32.mrb[44].mxu0 }
 0xa29   :  { %v2946_v1 = vadd.f32 %v7704_v6, %v2942_v45  ;;  %3024 = vrot.lane.b32.xlu1 %v3019_v28, %s6747_s29  ;;  %v5730_v50 = vpop.f32.mrb[25].mxu1  ;;  %v5741_v31 = vpop.f32.mrb[45].mxu0 }
 0xa2b   :  { %v4892_v2 = vmul.f32 -1.442695, %v2946_v1 }
 0xa2d   :  { %6653 = vpow2.f32 %v4892_v2 }
 0xa30   :  { %v3100_v55 = vpop.f32.mrb[26].mxu1 }
 0xa31   :  { %v5752_v59 = vpop.f32.mrb[27].mxu1  ;;  %v3101_v32 = vadd.f32 %v7719_v25, %v3100_v55 }
 0xa32   :  { %v7901_v59 = vld [vmem:[%s8136_s6 + $0x1] ss:$0 sm:$0xff] }
 0xa37   :  { %v6654_v11 = vpop.eup %6653 }
 0xa38   :  { %v2950_v29 = vadd.f32 1.0, %v6654_v11 }
 0xa3a   :  { %6655 = vrcp.f32 %v2950_v29 }
 0xa44   :  { %v6656_v61 = vpop.eup %6655 }
 0xa45   :  { %v3104_v34 = vmul.f32 %v6656_v61, %v3101_v32 }
 0xa47   :  { %3106 = vrot.lane.b32.xlu0 %v3104_v34, %s6748_s26 }
 0xa9b   :  { %v3025_v41 = vpop.permute.xlu1 %3024 }
 0xa9c   :  { %v3027_v42 = vadd.f32 %v7704_v6, %v3025_v41 }
 0xa9e   :  { %v4894_v44 = vmul.f32 -1.442695, %v3027_v42 }
 0xab9   :  { %v3107_v38 = vpop.permute.xlu0 %3106 }
 0xaba   :  { %v3109_v39 = vadd.f32 %v7704_v6, %v3107_v38 }
 0xabc   :  { %6657 = vtanh.f32 %v3109_v39 }
 0xabd   :  { %6659 = vpow2.f32 %v4894_v44 }
 0xac6   :  { %v6658_v40 = vpop.eup %6657 }
 0xac7   :  { %3113 = vrot.lane.b32.xlu0 %v6658_v40, %s6749_s27  ;;  %v6660_v46 = vpop.eup %6659 }
 0xac8   :  { %v3031_v48 = vadd.f32 1.0, %v6660_v46 }
 0xaca   :  { %6661 = vrcp.f32 %v3031_v48 }
 0xad4   :  { %v6662_v52 = vpop.eup %6661 }
 0xad5   :  { %v3111_v53 = vsub.f32 1.0, %v6662_v52  ;;  %v3117_v60 = vmul.f32 %v6662_v52, %v7759_v57 }
 0xb39   :  { %v3114_v56 = vpop.permute.xlu0 %3113 }
 0xb3a   :  { %v3116_v7 = vmul.f32 %v3114_v56, %v3111_v53 }
 0xb3c   :  { %v7792_v10 = vadd.f32 %v3117_v60, %v3116_v7 }
 0xb3e   :  { %3120 = vrot.lane.b32.xlu1 %v7792_v10, %s6749_s27 }
 0xbb0   :  { %v3121_v8 = vpop.permute.xlu1 %3120 }
 0xbb1   :  { %5762 = vmatmul.mubr.msk.f32.vlgmr.msra.gmra.mrb[46].mxu0 %vm295_vm8, %v3121_v8  ;;  %5773 = vmatmul.mubr.msk.f32.vlgmr.msra.gmra.mrb[28].mxu1 %vm295_vm8, %v3121_v8 }
 0xbb2   :  { %6414 = vmatpush3.bf16.msra.mxu0 %v7653_v27  ;;  %6420 = vmatpush3.bf16.msra.mxu1 %v7802_v20  ;;  %v4755_v27 = vld [vmem:[%s8134_s5 + $0xa0] sm:$0xff] }
 0xbb3   :  { %6415 = vmatprep.subr.bf16.mxu0 %v6745_v47  ;;  %6421 = vmatprep.subr.bf16.mxu1 %v6745_v47 }
 0xbb4   :  { %5783 = vmatprep.mubr.msk.f32.mxu0 %vm6746_vm6, %v6738_v51  ;;  %5794 = vmatprep.mubr.msk.f32.mxu1 %vm6746_vm6, %v6738_v51 }
 0xbb6   :  { %6417 = vmatpush3.bf16.msra.mxu0 %v7665_v35  ;;  %6423 = vmatpush3.bf16.msra.mxu1 %v7814_v12  ;;  %v7851_v35 = vpack.c.bf16 %v4756_v19, %v4755_v27 }
 0xbb7   :  { %6424 = vmatprep.subr.bf16.mxu0 %v6745_v47  ;;  %6430 = vmatprep.subr.bf16.mxu1 %v6745_v47 }
 0xbb9   :  { %5784 = vmatmul.mubr.msk.f32.vlgmr.msra.gmra.mrb[48].mxu0 %vm295_vm8, %v3121_v8  ;;  %5795 = vmatmul.mubr.msk.f32.vlgmr.msra.gmra.mrb[30].mxu1 %vm295_vm8, %v7839_v36 }
 0xbba   :  { %6426 = vmatpush3.bf16.msra.mxu0 %v7841_v22  ;;  %5805 = vmatprep.mubr.msk.f32.mxu0 %vm6746_vm6, %v6738_v51 }
 0xbbb   :  { %6427 = vmatprep.subr.bf16.mxu0 %v6745_v47  ;;  %6432 = vmatpush3.bf16.msra.mxu1 %v7851_v35 }
 0xbbc   :  { %6433 = vmatprep.subr.bf16.mxu1 %v6745_v47  ;;  %5816 = vmatprep.mubr.msk.f32.mxu1 %vm6746_vm6, %v6738_v51 }
 0xbbe   :  { %6429 = vmatpush3.bf16.msra.mxu0 %v7863_v62 }
 0xbbf   :  { %6435 = vmatpush3.bf16.msra.mxu1 %v7869_v63  ;;  %6436 = vmatprep.subr.bf16.mxu0 %v6745_v47 }
 0xbc0   :  { %6442 = vmatprep.subr.bf16.mxu1 %v6745_v47 }
 0xbc1   :  { %5806 = vmatmul.mubr.msk.f32.vlgmr.msra.gmra.mrb[50].mxu0 %vm295_vm8, %v7839_v36 }
 0xbc2   :  { %5817 = vmatmul.mubr.msk.f32.vlgmr.msra.gmra.mrb[32].mxu1 %vm295_vm8, %v7839_v36  ;;  %6438 = vmatpush3.bf16.msra.mxu0 %v7802_v20 }
 0xbc3   :  { %6444 = vmatpush3.bf16.msra.mxu1 %v7841_v22  ;;  %6439 = vmatprep.subr.bf16.mxu0 %v6745_v47 }
 0xbc4   :  { %6445 = vmatprep.subr.bf16.mxu1 %v6745_v47  ;;  %5827 = vmatprep.mubr.msk.f32.mxu0 %vm6746_vm6, %v6738_v51 }
 0xbc5   :  { %5838 = vmatprep.mubr.msk.f32.mxu1 %vm6746_vm6, %v6738_v51 }
 0xbc6   :  { %6441 = vmatpush3.bf16.msra.mxu0 %v7814_v12 }
 0xbc7   :  { %6447 = vmatpush3.bf16.msra.mxu1 %v7863_v62  ;;  %6448 = vmatprep.subr.bf16.mxu0 %v6745_v47 }
 0xbc8   :  { %6454 = vmatprep.subr.bf16.mxu1 %v6745_v47 }
 0xc84   :  { %v3190_v0 = vpop.f32.mrb[46].mxu0  ;;  %v7894_v3 = vpop.f32.mrb[28].mxu1 }
 0xc85   :  { %v3194_v5 = vadd.f32 %v7712_v21, %v3190_v0  ;;  %v5763_v9 = vpop.f32.mrb[47].mxu0  ;;  %v5774_v45 = vpop.f32.mrb[29].mxu1 }
 0xc87   :  { %v4897_v28 = vmul.f32 -1.442695, %v3194_v5 }
 0xc89   :  { %6663 = vpow2.f32 %v4897_v28 }
 0xc8c   :  { %v3348_v1 = vpop.f32.mrb[48].mxu0  ;;  %v3438_v50 = vpop.f32.mrb[30].mxu1 }
 0xc8d   :  { %v5785_v31 = vpop.f32.mrb[49].mxu0  ;;  %3443 = vrot.lane.b32.xlu0 %v3438_v50, %s6749_s27  ;;  %v5796_v2 = vpop.f32.mrb[31].mxu1  ;;  %v3349_v39 = vadd.f32 %v7719_v25, %v3348_v1 }
 0xc93   :  { %v6664_v55 = vpop.eup %6663 }
 0xc94   :  { %v3198_v11 = vadd.f32 1.0, %v6664_v55  ;;  %v3519_v29 = vpop.f32.mrb[50].mxu0 }
 0xc95   :  { %v3602_v32 = vpop.f32.mrb[32].mxu1  ;;  %v5807_v61 = vpop.f32.mrb[51].mxu0  ;;  %v3523_v16 = vadd.f32 %v7714_v4, %v3519_v29 }
 0xc96   :  { %6665 = vrcp.f32 %v3198_v11  ;;  %v3603_v34 = vadd.f32 %v7901_v59, %v3602_v32  ;;  %v5818_v38 = vpop.f32.mrb[33].mxu1 }
 0xc97   :  { %v4905_v24 = vmul.f32 -1.442695, %v3523_v16 }
 0xc98   :  { %3607 = vrot.lane.b32.xlu1 %v3603_v34, %s6749_s27 }
 0xca0   :  { %v6666_v40 = vpop.eup %6665 }
 0xca1   :  { %v7906_v41 = vmul.f32 %v6666_v40, %v3349_v39 }
 0xcff   :  { %v3444_v42 = vpop.permute.xlu0 %3443 }
 0xd00   :  { %v3446_v44 = vadd.f32 %v7712_v21, %v3444_v42 }
 0xd02   :  { %v4903_v46 = vmul.f32 -1.442695, %v3446_v44 }
 0xd04   :  { %6667 = vpow2.f32 %v4903_v46 }
 0xd0a   :  { %v3608_v53 = vpop.permute.xlu1 %3607 }
 0xd0e   :  { %v6668_v48 = vpop.eup %6667 }
 0xd0f   :  { %v3450_v52 = vadd.f32 1.0, %v6668_v48 }
 0xd11   :  { %6669 = vrcp.f32 %v3450_v52 }
 0xd1b   :  { %v6670_v56 = vpop.eup %6669 }
 0xd1c   :  { %v3610_v60 = vmul.f32 %v6670_v56, %v3608_v53 }
 0xd1e   :  { %3612 = vrot.lane.b32.xlu0 %v3610_v60, %s6748_s26 }
 0xd90   :  { %v3613_v7 = vpop.permute.xlu0 %3612 }
 0xd91   :  { %v3615_v13 = vadd.f32 %v7714_v4, %v3613_v7 }
 0xd93   :  { %6671 = vtanh.f32 %v3615_v13 }
 0xd94   :  { %6673 = vpow2.f32 %v4905_v24 }
 0xd9d   :  { %v6672_v25 = vpop.eup %6671 }
 0xd9e   :  { %3619 = vrot.lane.b32.xlu1 %v6672_v25, %s6749_s27  ;;  %v6674_v58 = vpop.eup %6673 }
 0xd9f   :  { %v3527_v8 = vadd.f32 1.0, %v6674_v58 }
 0xda1   :  { %6675 = vrcp.f32 %v3527_v8 }
 0xdab   :  { %v6676_v30 = vpop.eup %6675 }
 0xdac   :  { %v3617_v14 = vsub.f32 1.0, %v6676_v30  ;;  %v3623_v23 = vmul.f32 %v6676_v30, %v7839_v36 }
 0xe10   :  { %v3620_v27 = vpop.permute.xlu1 %3619 }
 0xe11   :  { %v3622_v19 = vmul.f32 %v3620_v27, %v3617_v14 }
 0xe13   :  { %v7914_v33 = vadd.f32 %v3623_v23, %v3622_v19 }
 0xe15   :  { %5828 = vmatmul.mubr.msk.f32.vlgmr.msra.gmra.mrb[52].mxu0 %vm295_vm8, %v7914_v33  ;;  %5839 = vmatmul.mubr.msk.f32.vlgmr.msra.gmra.mrb[34].mxu1 %vm295_vm8, %v7914_v33 }
 0xe16   :  { %6450 = vmatpush3.bf16.msra.mxu0 %v7851_v35  ;;  %5849 = vmatprep.mubr.msk.f32.mxu0 %vm6746_vm6, %v6738_v51 }
 0xe17   :  { %6451 = vmatprep.subr.bf16.mxu0 %v6745_v47  ;;  %6456 = vmatpush3.bf16.msra.mxu1 %v7802_v20 }
 0xe18   :  { %6457 = vmatprep.subr.bf16.mxu1 %v6745_v47  ;;  %5860 = vmatprep.mubr.msk.f32.mxu1 %vm6746_vm6, %v6738_v51 }
 0xe1a   :  { %6453 = vmatpush3.bf16.msra.mxu0 %v7869_v63 }
 0xe1b   :  { %6460 = vmatprep.subr.bf16.mxu0 %v6745_v47  ;;  %6459 = vmatpush3.bf16.msra.mxu1 %v7814_v12 }
 0xe1c   :  { %6466 = vmatprep.subr.bf16.mxu1 %v6745_v47 }
 0xe1d   :  { %5850 = vmatmul.mubr.msk.f32.vlgmr.msra.gmra.mrb[54].mxu0 %vm295_vm8, %v7914_v33 }
 0xe1e   :  { %6462 = vmatpush3.bf16.msra.mxu0 %v7841_v22  ;;  %5871 = vmatprep.mubr.msk.f32.mxu0 %vm6746_vm6, %v6738_v51 }
 0xe1f   :  { %6463 = vmatprep.subr.bf16.mxu0 %v6745_v47 }
 0xe22   :  { %6465 = vmatpush3.bf16.msra.mxu0 %v7863_v62 }
 0xe23   :  { %6472 = vmatprep.subr.bf16.mxu0 %v6745_v47 }
 0xee8   :  { %v3694_v4 = vpop.f32.mrb[52].mxu0  ;;  %v3775_v36 = vpop.f32.mrb[34].mxu1 }
 0xee9   :  { %v5840_v15 = vpop.f32.mrb[35].mxu1  ;;  %3699 = vrot.lane.b32.xlu0 %v3694_v4, %s6749_s27  ;;  %v5829_v37 = vpop.f32.mrb[53].mxu0  ;;  %v3779_v34 = vadd.f32 %v7707_v18, %v3775_v36 }
 0xef0   :  { %v3852_v0 = vpop.f32.mrb[54].mxu0 }
 0xef1   :  { %v3853_v5 = vadd.f32 %v7901_v59, %v3852_v0  ;;  %v5851_v9 = vpop.f32.mrb[55].mxu0 }
 0xef3   :  { %3857 = vrot.lane.b32.xlu1 %v3853_v5, %s6749_s27 }
 0xf5b   :  { %v3700_v45 = vpop.permute.xlu0 %3699 }
 0xf5c   :  { %v3702_v28 = vadd.f32 %v7704_v6, %v3700_v45  ;;  %v4911_v6 = vmul.f32 -1.442695, %v3779_v34  ;;  %v4923_v34 = vld [vmem:[%s8137_s9 + $0x20] sm:$0xff] }
 0xf5e   :  { %v4909_v1 = vmul.f32 -1.442695, %v3702_v28 }
 0xf60   :  { %6677 = vpow2.f32 %v4909_v1 }
 0xf65   :  { %v3858_v55 = vpop.permute.xlu1 %3857 }
 0xf6a   :  { %v6678_v50 = vpop.eup %6677 }
 0xf6b   :  { %v3706_v31 = vadd.f32 1.0, %v6678_v50 }
 0xf6d   :  { %6679 = vrcp.f32 %v3706_v31 }
 0xf77   :  { %v6680_v2 = vpop.eup %6679 }
 0xf78   :  { %v3860_v11 = vmul.f32 %v6680_v2, %v3858_v55 }
 0xf7a   :  { %3862 = vrot.lane.b32.xlu0 %v3860_v11, %s6748_s26 }
 0xfec   :  { %v3863_v29 = vpop.permute.xlu0 %3862 }
 0xfed   :  { %v3865_v32 = vadd.f32 %v7707_v18, %v3863_v29 }
 0xfef   :  { %6681 = vtanh.f32 %v3865_v32 }
 0xff0   :  { %6683 = vpow2.f32 %v4911_v6  ;;  %v4924_v6 = vld [vmem:[%s8137_s9 + $0x28] sm:$0xff] }
 0xff9   :  { %v6682_v61 = vpop.eup %6681 }
 0xffa   :  { %3869 = vrot.lane.b32.xlu1 %v6682_v61, %s6749_s27  ;;  %v6684_v38 = vpop.eup %6683 }
 0xffb   :  { %v3783_v39 = vadd.f32 1.0, %v6684_v38 }
 0xffd   :  { %6685 = vrcp.f32 %v3783_v39 }
0x1007   :  { %v6686_v40 = vpop.eup %6685 }
0x1008   :  { %v3867_v42 = vsub.f32 1.0, %v6686_v40  ;;  %v3873_v46 = vmul.f32 %v6686_v40, %v7914_v33 }
0x106c   :  { %v3870_v44 = vpop.permute.xlu1 %3869 }
0x106d   :  { %v3872_v48 = vmul.f32 %v3870_v44, %v3867_v42 }
0x106f   :  { %v7949_v52 = vadd.f32 %v3873_v46, %v3872_v48 }
0x1071   :  { %5861 = vmatmul.mubr.msk.f32.vlgmr.msra.gmra.mrb[36].mxu1 %vm295_vm8, %v7949_v52  ;;  %5872 = vmatmul.mubr.msk.f32.vlgmr.msra.gmra.mrb[56].mxu0 %vm295_vm8, %v7949_v52 }
0x1072   :  { %6468 = vmatpush3.bf16.msra.mxu1 %v7851_v35  ;;  %5882 = vmatprep.mubr.msk.f32.mxu1 %vm6746_vm6, %v6738_v51 }
0x1073   :  { %6469 = vmatprep.subr.bf16.mxu1 %v6745_v47  ;;  %6474 = vmatpush3.bf16.msra.mxu0 %v7802_v20 }
0x1074   :  { %6475 = vmatprep.subr.bf16.mxu0 %v6745_v47  ;;  %5893 = vmatprep.mubr.msk.f32.mxu0 %vm6746_vm6, %v6738_v51 }
0x1076   :  { %6471 = vmatpush3.bf16.msra.mxu1 %v7869_v63 }
0x1077   :  { %6478 = vmatprep.subr.bf16.mxu1 %v6745_v47  ;;  %6477 = vmatpush3.bf16.msra.mxu0 %v7814_v12 }
0x1078   :  { %6484 = vmatprep.subr.bf16.mxu0 %v6745_v47 }
0x1079   :  { %5883 = vmatmul.mubr.msk.f32.vlgmr.msra.gmra.mrb[38].mxu1 %vm295_vm8, %v7949_v52 }
0x107a   :  { %6480 = vmatpush3.bf16.msra.mxu1 %v7841_v22  ;;  %5904 = vmatprep.mubr.msk.f32.mxu1 %vm6746_vm6, %v6738_v51 }
0x107b   :  { %6481 = vmatprep.subr.bf16.mxu1 %v6745_v47 }
0x107e   :  { %6483 = vmatpush3.bf16.msra.mxu1 %v7863_v62 }
0x1144   :  { %v3944_v18 = vpop.f32.mrb[36].mxu1  ;;  %v4025_v20 = vpop.f32.mrb[56].mxu0 }
0x1145   :  { %3949 = vrot.lane.b32.xlu0 %v3944_v18, %s6749_s27  ;;  %v5862_v53 = vpop.f32.mrb[37].mxu1  ;;  %v5873_v12 = vpop.f32.mrb[57].mxu0  ;;  %v4029_v19 = vadd.f32 %v7701_v43, %v4025_v20  ;;  %v4925_v18 = vld [vmem:[%s8137_s9 + $0x30] sm:$0xff]  ;;  %v4926_v20 = vld [vmem:[%s8137_s9 + $0x38] sm:$0xff] }
0x1146   :  { %v6494_v53 = vpack.c.bf16 %v4926_v20, %v4925_v18  ;;  %v4384_v12 = vld [vmem:[%s8137_s9 + $0x8] sm:$0xff] }
0x114c   :  { %v4102_v56 = vpop.f32.mrb[38].mxu1 }
0x114d   :  { %v4103_v60 = vadd.f32 %v7901_v59, %v4102_v56  ;;  %v5884_v7 = vpop.f32.mrb[39].mxu1 }
0x114f   :  { %4107 = vrot.lane.b32.xlu1 %v4103_v60, %s6749_s27 }
0x11b7   :  { %v3950_v22 = vpop.permute.xlu0 %3949 }
0x11b8   :  { %v3952_v13 = vadd.f32 %v7698_v26, %v3950_v22  ;;  %v4916_v26 = vmul.f32 -1.442695, %v4029_v19 }
0x11ba   :  { %v4914_v25 = vmul.f32 -1.442695, %v3952_v13 }
0x11bc   :  { %6687 = vpow2.f32 %v4914_v25 }
0x11c1   :  { %v4108_v58 = vpop.permute.xlu1 %4107 }
0x11c6   :  { %v6688_v16 = vpop.eup %6687 }
0x11c7   :  { %v3956_v24 = vadd.f32 1.0, %v6688_v16 }
0x11c9   :  { %6689 = vrcp.f32 %v3956_v24 }
0x11d3   :  { %v6690_v62 = vpop.eup %6689 }
0x11d4   :  { %v4110_v8 = vmul.f32 %v6690_v62, %v4108_v58  ;;  %v4376_v62 = vmax.f32 %v7759_v57, 0.0 }
0x11d6   :  { %4112 = vrot.lane.b32.xlu0 %v4110_v8, %s6748_s26 }
0x1248   :  { %v4113_v30 = vpop.permute.xlu0 %4112 }
0x1249   :  { %v4115_v14 = vadd.f32 %v7701_v43, %v4113_v30 }
0x124b   :  { %6691 = vtanh.f32 %v4115_v14 }
0x124c   :  { %6693 = vpow2.f32 %v4916_v26 }
0x1255   :  { %v6692_v27 = vpop.eup %6691 }
0x1256   :  { %4119 = vrot.lane.b32.xlu1 %v6692_v27, %s6749_s27  ;;  %v6694_v23 = vpop.eup %6693 }
0x1257   :  { %v4033_v4 = vadd.f32 1.0, %v6694_v23 }
0x1259   :  { %6695 = vrcp.f32 %v4033_v4 }
0x1263   :  { %v6696_v36 = vpop.eup %6695 }
0x1264   :  { %v4117_v15 = vsub.f32 1.0, %v6696_v36  ;;  %v4123_v5 = vmul.f32 %v6696_v36, %v7949_v52  ;;  %v4385_v36 = vld [vmem:[%s8137_s9 + $0x10] sm:$0xff] }
0x12c8   :  { %v4120_v37 = vpop.permute.xlu1 %4119 }
0x12c9   :  { %v4122_v0 = vmul.f32 %v4120_v37, %v4117_v15 }
0x12cb   :  { %v7983_v9 = vadd.f32 %v4123_v5, %v4122_v0 }
0x12cd   :  { %5894 = vmatmul.mubr.msk.f32.vlgmr.msra.gmra.mrb[58].mxu0 %vm295_vm8, %v7983_v9  ;;  %5905 = vmatmul.mubr.msk.f32.vlgmr.msra.gmra.mrb[40].mxu1 %vm295_vm8, %v7983_v9  ;;  %v4380_v0 = vmax.f32 %v7983_v9, 0.0 }
0x12ce   :  { %6486 = vmatpush3.bf16.msra.mxu0 %v7851_v35  ;;  %5915 = vmatprep.mubr.msk.f32.mxu0 %vm6746_vm6, %v6738_v51 }
0x12cf   :  { %6487 = vmatprep.subr.bf16.mxu0 %v6745_v47 }
0x12d2   :  { %6489 = vmatpush3.bf16.msra.mxu0 %v7869_v63 }
0x12d5   :  { %5916 = vmatmul.mubr.msk.f32.vlgmr.msra.gmra.mrb[60].mxu0 %vm295_vm8, %v7983_v9 }
0x13a0   :  { %v4194_v43 = vpop.f32.mrb[58].mxu0  ;;  %v7996_v45 = vpop.f32.mrb[40].mxu1 }
0x13a1   :  { %v5906_v28 = vpop.f32.mrb[41].mxu1  ;;  %4199 = vrot.lane.b32.xlu0 %v4194_v43, %s6749_s27  ;;  %v5895_v1 = vpop.f32.mrb[59].mxu0  ;;  %v4279_v8 = vadd.f32 %v7693_v54, %v7996_v45  ;;  %v4381_v43 = vmax.f32 %v7949_v52, 0.0 }
0x13a2   :  { %v4382_v1 = vmax.f32 %v7914_v33, 0.0 }
0x13a3   :  { %v4921_v30 = vmul.f32 -1.442695, %v4279_v8 }
0x13a5   :  { %3354 = vrot.lane.b32.xlu0 %v7906_v41, %s6748_s26 }
0x13a8   :  { %v4352_v35 = vpop.f32.mrb[60].mxu0 }
0x13a9   :  { %v4353_v51 = vadd.f32 %v7901_v59, %v4352_v35  ;;  %v5917_v50 = vpop.f32.mrb[61].mxu0  ;;  %v4375_v59 = vmax.f32 %v7726_v49, 0.0  ;;  %v6490_v49 = vpack.c.bf16 %v4924_v6, %v4923_v34 }
0x13ab   :  { %4357 = vrot.lane.b32.xlu1 %v4353_v51, %s6749_s27  ;;  %6491 = vmatprep.subr.bf16.mxu1 %v6490_v49 }
0x13ac   :  { %6493 = vmatpush3.bf16.msra.mxu1 %v6490_v49 }
0x13ad   :  { %6495 = vmatprep.subr.bf16.mxu1 %v6494_v53 }
0x13af   :  { %3272 = vrot.lane.b32.xlu1 %v7894_v3, %s6747_s29  ;;  %v4377_v3 = vmax.f32 %v7792_v10, 0.0 }
0x13b0   :  { %6497 = vmatpush3.bf16.msra.mxu1 %v6494_v53 }
0x1413   :  { %v4200_v47 = vpop.permute.xlu0 %4199 }
0x1414   :  { %v4202_v63 = vadd.f32 %v7690_v17, %v4200_v47 }
0x1416   :  { %v4919_v31 = vmul.f32 -1.442695, %v4202_v63 }
0x1417   :  { %v3355_v2 = vpop.permute.xlu0 %3354 }
0x1418   :  { %6697 = vpow2.f32 %v4919_v31  ;;  %v3357_v55 = vadd.f32 %v7712_v21, %v3355_v2  ;;  %v4935_v31 = vld [vmem:[%s8138_s10] ss:$0 sm:$0xff] }
0x141a   :  { %6699 = vtanh.f32 %v3357_v55 }
0x141d   :  { %v4358_v32 = vpop.permute.xlu1 %4357 }
0x1421   :  { %v3273_v38 = vpop.permute.xlu1 %3272 }
0x1422   :  { %v6698_v11 = vpop.eup %6697  ;;  %v3275_v39 = vadd.f32 %v7712_v21, %v3273_v38  ;;  %v4383_v21 = vld [vmem:[%s8137_s9] sm:$0xff] }
0x1423   :  { %v4206_v41 = vadd.f32 1.0, %v6698_v11  ;;  %v6498_v60 = vpack.c.bf16 %v4384_v12, %v4383_v21 }
0x1424   :  { %v6700_v29 = vpop.eup %6699  ;;  %v4899_v40 = vmul.f32 -1.442695, %v3275_v39 }
0x1425   :  { %6701 = vrcp.f32 %v4206_v41  ;;  %3361 = vrot.lane.b32.xlu1 %v6700_v29, %s6749_s27  ;;  %6499 = vmatprep.subr.bf16.mxu1 %v6498_v60 }
0x1426   :  { %6703 = vpow2.f32 %v4899_v40 }
0x1429   :  { %4493 = vrot.lane.b32.xlu1 %v4375_v59, %s6749_s27 }
0x142d   :  { %4497 = vrot.lane.b32.xlu1 %v4377_v3, %s6749_s27 }
0x142f   :  { %v6702_v17 = vpop.eup %6701 }
0x1430   :  { %v4360_v61 = vmul.f32 %v6702_v17, %v4358_v32  ;;  %v6704_v42 = vpop.eup %6703 }
0x1431   :  { %v3279_v44 = vadd.f32 1.0, %v6704_v42  ;;  %v4936_v42 = vld [vmem:[%s8139_s7] ss:$0 sm:$0xff] }
0x1432   :  { %4362 = vrot.lane.b32.xlu0 %v4360_v61, %s6748_s26 }
0x1433   :  { %6705 = vrcp.f32 %v3279_v44 }
0x143d   :  { %v6706_v56 = vpop.eup %6705 }
0x143e   :  { %v3359_v22 = vsub.f32 1.0, %v6706_v56  ;;  %v3365_v16 = vmul.f32 %v6706_v56, %v7792_v10 }
0x1497   :  { %v3362_v7 = vpop.permute.xlu1 %3361 }
0x1498   :  { %v3364_v13 = vmul.f32 %v3362_v7, %v3359_v22  ;;  %v4937_v7 = vld [vmem:[%s8140_s8] ss:$0 sm:$0xff] }
0x149a   :  { %v3366_v24 = vadd.f32 %v3365_v16, %v3364_v13 }
0x149b   :  { %v4494_v28 = vpop.permute.xlu1 %4493 }
0x149c   :  { %v4378_v58 = vmax.f32 %v3366_v24, 0.0 }
0x149f   :  { %v4498_v52 = vpop.permute.xlu1 %4497 }
0x14a4   :  { %v4363_v46 = vpop.permute.xlu0 %4362 }
0x14a5   :  { %v4365_v48 = vadd.f32 %v7693_v54, %v4363_v46  ;;  %v4386_v54 = vld [vmem:[%s8137_s9 + $0x18] sm:$0xff] }
0x14a6   :  { %v6502_v5 = vpack.c.bf16 %v4386_v54, %v4385_v36 }
0x14a7   :  { %6707 = vtanh.f32 %v4365_v48 }
0x14a8   :  { %6709 = vpow2.f32 %v4921_v30 }
0x14b1   :  { %v6708_v25 = vpop.eup %6707 }
0x14b2   :  { %4369 = vrot.lane.b32.xlu0 %v6708_v25, %s6749_s27  ;;  %v6710_v14 = vpop.eup %6709 }
0x14b3   :  { %v4283_v27 = vadd.f32 1.0, %v6710_v14 }
0x14b5   :  { %6711 = vrcp.f32 %v4283_v27 }
0x14b6   :  { %4495 = vrot.lane.b32.xlu0 %v4376_v62, %s6749_s27 }
0x14ba   :  { %4499 = vrot.lane.b32.xlu0 %v4378_v58, %s6749_s27 }
0x14be   :  { %4658 = vrot.lane.b32.xlu0 %v3366_v24, %s6749_s27 }
0x14bf   :  { %v6712_v10 = vpop.eup %6711 }
0x14c0   :  { %v4367_v19 = vsub.f32 1.0, %v6712_v10  ;;  %v4373_v57 = vmul.f32 %v6712_v10, %v7983_v9 }
0x1524   :  { %v4370_v26 = vpop.permute.xlu0 %4369 }
0x1525   :  { %v4372_v23 = vmul.f32 %v4370_v26, %v4367_v19 }
0x1527   :  { %v4374_v4 = vadd.f32 %v4373_v57, %v4372_v23 }
0x1528   :  { %v4496_v15 = vpop.permute.xlu0 %4495 }
0x1529   :  { %v4379_v37 = vmax.f32 %v4374_v4, 0.0  ;;  %4654 = vrot.lane.b32.xlu1 %v4374_v4, %s6747_s29 }
0x152b   :  { %5926 = vmatprep.mubr.msk.f32.mxu1 %vm295_vm8, %v4379_v37 }
0x152c   :  { %5927 = vmatmul.mubr.msk.f32.vlgmr.msra.gmra.mrb[42].mxu1 %vm295_vm8, %v4380_v0  ;;  %v4500_v45 = vpop.permute.xlu0 %4499 }
0x152d   :  { %5929 = vmatprep.mubr.msk.f32.mxu1 %vm295_vm8, %v4381_v43  ;;  %6501 = vmatpush3.bf16.msra.mxu1 %v6498_v60 }
0x152e   :  { %6503 = vmatprep.subr.bf16.mxu1 %v6502_v5 }
0x1530   :  { %5930 = vmatmul.mubr.msk.f32.gmra.mrb[44].mxu1 %vm295_vm8, %v4382_v1  ;;  %v4659_v35 = vpop.permute.xlu0 %4658 }
0x1531   :  { %6505 = vmatpush3.bf16.msra.mxu1 %v6502_v5  ;;  %5940 = vmatprep.mubr.msk.f32.mxu1 %vm295_vm8, %v4494_v28  ;;  %v4664_v9 = vsel %vm295_vm8, %v4659_v35, 0.0 }
0x1532   :  { %4665 = vadd.xlane.f32.xlu0 %v4664_v9 }
0x1534   :  { %5941 = vmatmul.mubr.msk.f32.vlgmr.msra.gmra.mrb[42].mxu1 %vm295_vm8, %v4496_v15 }
0x1535   :  { %5943 = vmatprep.mubr.msk.f32.mxu1 %vm295_vm8, %v4498_v52 }
0x1538   :  { %5944 = vmatmul.mubr.msk.f32.gmra.mrb[44].mxu1 %vm295_vm8, %v4500_v45 }
0x159b   :  { %v4655_v51 = vpop.permute.xlu1 %4654 }
0x159c   :  { %4660 = vrot.lane.b32.xlu1 %v4655_v51, %s6749_s27 }
0x15bf   :  { %v4666_v33 = vpop.xlane.xlu0 %4665 }
0x15c0   :  { %v4671_v50 = vmul.f32 0.03125, %v4666_v33 }
0x15c2   :  { %v8062_v47 = vsub.f32 %v3366_v24, %v4671_v50 }
0x15c4   :  { %v4675_v63 = vmul.f32 %v8062_v47, %v8062_v47 }
0x15c6   :  { %4679 = vrot.lane.b32.xlu0 %v4675_v63, %s6749_s27 }
0x1607   :  { %v5942_v2 = vpop.f32.mrb[42].mxu1 }
0x1608   :  { %v8070_v55 = vadd.f32 %v5942_v2, %v4935_v31  ;;  %v4575_v11 = vpop.f32.mrb[43].mxu1 }
0x1609   :  { %v8072_v41 = vadd.f32 %v4935_v31, %v4575_v11 }
0x160b   :  { %4605 = vmax.xlane.f32.xlu0 %v8072_v41  ;;  %v5945_v29 = vpop.f32.mrb[44].mxu1 }
0x160c   :  { %v4585_v59 = vpop.f32.mrb[45].mxu1  ;;  %v8079_v61 = vadd.f32 %v5945_v29, %v4935_v31 }
0x160d   :  { %v8075_v3 = vadd.f32 %v4935_v31, %v4585_v59 }
0x160e   :  { %v4661_v17 = vpop.permute.xlu1 %4660 }
0x160f   :  { %4609 = vmax.xlane.f32.xlu0 %v8075_v3  ;;  %v4667_v32 = vsel %vm295_vm8, %v4661_v17, 0.0 }
0x1610   :  { %4668 = vadd.xlane.f32.xlu1 %v4667_v32 }
0x1613   :  { %4611 = vmax.xlane.f32.xlu0 %v8079_v61 }
0x1638   :  { %v4680_v39 = vpop.permute.xlu0 %4679 }
0x1639   :  { %v4685_v40 = vsel %vm295_vm8, %v4680_v39, 0.0 }
0x1698   :  { %v4606_v44 = vpop.xlane.xlu0 %4605 }
0x1699   :  { %v4613_v46 = vsub.f32 %v8072_v41, %v4606_v44 }
0x169b   :  { %v4617_v18 = vmul.f32 1.442695, %v4613_v46 }
0x169c   :  { %v4610_v48 = vpop.xlane.xlu0 %4609 }
0x169d   :  { %v4669_v34 = vpop.xlane.xlu1 %4668  ;;  %v4615_v20 = vsub.f32 %v8075_v3, %v4610_v48  ;;  %6713 = vpow2.f32 %v4617_v18 }
0x169e   :  { %v4672_v6 = vmul.f32 0.03125, %v4669_v34 }
0x169f   :  { %v4621_v53 = vmul.f32 1.442695, %v4615_v20 }
0x16a0   :  { %v8082_v49 = vsub.f32 %v4655_v51, %v4672_v6  ;;  %v4612_v22 = vpop.xlane.xlu0 %4611 }
0x16a1   :  { %6715 = vpow2.f32 %v4621_v53  ;;  %v4616_v25 = vsub.f32 %v8079_v61, %v4612_v22 }
0x16a2   :  { %v4676_v38 = vmul.f32 %v8082_v49, %v8082_v49 }
0x16a3   :  { %v4623_v62 = vmul.f32 1.442695, %v4616_v25 }
0x16a4   :  { %4681 = vrot.lane.b32.xlu1 %v4676_v38, %s6749_s27 }
0x16a7   :  { %v6714_v21 = vpop.eup %6713 }
0x16ab   :  { %v6716_v12 = vpop.eup %6715 }
0x16c8   :  { %4607 = vmax.xlane.f32.xlu1 %v8070_v55 }
0x16cc   :  { %4686 = vadd.xlane.f32.xlu1 %v4685_v40 }
0x16dd   :  { %4705 = vrot.lane.b32.xlu1 %v4936_v42, %s6747_s29 }
0x1701   :  { %4625 = vadd.xlane.f32.xlu1 %v6714_v21 }
0x1705   :  { %4629 = vadd.xlane.f32.xlu1 %v6716_v12 }
0x1716   :  { %v4682_v56 = vpop.permute.xlu1 %4681 }
0x1717   :  { %v4688_v60 = vsel %vm295_vm8, %v4682_v56, 0.0 }
0x1718   :  { %4689 = vadd.xlane.f32.xlu0 %v4688_v60 }
0x172e   :  { %4716 = vrot.lane.b32.xlu0 %v4937_v7, %s6747_s29 }
0x1755   :  { %v4608_v13 = vpop.xlane.xlu1 %4607 }
0x1756   :  { %v4614_v16 = vsub.f32 %v8070_v55, %v4608_v13 }
0x1758   :  { %v4619_v24 = vmul.f32 1.442695, %v4614_v16 }
0x1759   :  { %v4687_v30 = vpop.xlane.xlu1 %4686 }
0x175a   :  { %6717 = vpow2.f32 %v4619_v24  ;;  %v4691_v10 = vmul.f32 0.03125, %v4687_v30 }
0x175b   :  { %6719 = vpow2.f32 %v4623_v62 }
0x175c   :  { %v4693_v26 = vadd.f32 1e-05, %v4691_v10 }
0x175d   :  { %v4706_v14 = vpop.permute.xlu1 %4705 }
0x1764   :  { %v6718_v58 = vpop.eup %6717 }
0x1765   :  { %4627 = vadd.xlane.f32.xlu0 %v6718_v58  ;;  %v6720_v8 = vpop.eup %6719 }
0x1769   :  { %4631 = vadd.xlane.f32.xlu0 %v6720_v8 }
0x178e   :  { %v4626_v27 = vpop.xlane.xlu1 %4625 }
0x178f   :  { %6721 = vlog2.f32 %v4626_v27 }
0x1792   :  { %v4630_v19 = vpop.xlane.xlu1 %4629 }
0x1793   :  { %6723 = vlog2.f32 %v4630_v19 }
0x1794   :  { %6725 = vrsqrt.f32 %v4693_v26 }
0x1799   :  { %v6722_v57 = vpop.eup %6721 }
0x179a   :  { %v4634_v23 = vmul.f32 0.6931472, %v6722_v57 }
0x179c   :  { %v4641_v4 = vadd.f32 %v4634_v23, %v4606_v44 }
0x179d   :  { %v6724_v36 = vpop.eup %6723 }
0x179e   :  { %v4645_v54 = vsub.f32 %v8072_v41, %v4641_v4  ;;  %v4638_v15 = vmul.f32 0.6931472, %v6724_v36  ;;  %v6726_v0 = vpop.eup %6725 }
0x179f   :  { %v4697_v43 = vmul.f32 %v6726_v0, %v8062_v47 }
0x17a0   :  { %4649 = vst [vmem:[%s8141_s11] sm:$0xff] %v4645_v54  ;;  %v4643_v37 = vadd.f32 %v4638_v15, %v4610_v48 }
0x17a1   :  { %v4708_v1 = vmul.f32 %v4706_v14, %v4697_v43 }
0x17a2   :  { %v4647_v5 = vsub.f32 %v8075_v3, %v4643_v37 }
0x17a4   :  { %4651 = vst [vmem:[%s8141_s11 + $0x10] sm:$0xff] %v4647_v5 }
0x17a5   :  { %v4690_v45 = vpop.xlane.xlu0 %4689 }
0x17a6   :  { %v4692_v28 = vmul.f32 0.03125, %v4690_v45 }
0x17a8   :  { %v4694_v35 = vadd.f32 1e-05, %v4692_v28 }
0x17a9   :  { %v4717_v9 = vpop.permute.xlu0 %4716 }
0x17aa   :  { %6727 = vrsqrt.f32 %v4694_v35  ;;  %v4719_v52 = vadd.f32 %v4717_v9, %v4708_v1 }
0x17ac   :  { %4723 = vrot.lane.b32.xlu1 %v4719_v52, %s6749_s27 }
0x17b4   :  { %v6728_v51 = vpop.eup %6727 }
0x17b5   :  { %v4698_v33 = vmul.f32 %v6728_v51, %v8082_v49 }
0x17b7   :  { %v4709_v50 = vmul.f32 %v4706_v14, %v4698_v33 }
0x17b9   :  { %v4720_v63 = vadd.f32 %v4717_v9, %v4709_v50 }
0x17bb   :  { %4725 = vrot.lane.b32.xlu0 %v4720_v63, %s6749_s27 }
0x17f2   :  { %v4628_v47 = vpop.xlane.xlu0 %4627 }
0x17f3   :  { %6729 = vlog2.f32 %v4628_v47 }
0x17f6   :  { %v4632_v31 = vpop.xlane.xlu0 %4631 }
0x17f7   :  { %6731 = vlog2.f32 %v4632_v31 }
0x17fd   :  { %v6730_v2 = vpop.eup %6729 }
0x17fe   :  { %v4636_v11 = vmul.f32 0.6931472, %v6730_v2 }
0x1800   :  { %v4642_v41 = vadd.f32 %v4636_v11, %v4608_v13 }
0x1801   :  { %v6732_v29 = vpop.eup %6731 }
0x1802   :  { %v4646_v59 = vsub.f32 %v8070_v55, %v4642_v41  ;;  %v4640_v3 = vmul.f32 0.6931472, %v6732_v29 }
0x1804   :  { %4650 = vst [vmem:[%s8141_s11 + $0x8] sm:$0xff] %v4646_v59  ;;  %v4644_v17 = vadd.f32 %v4640_v3, %v4612_v22 }
0x1806   :  { %v4648_v32 = vsub.f32 %v8079_v61, %v4644_v17 }
0x1808   :  { %4652 = vst [vmem:[%s8141_s11 + $0x18] sm:$0xff] %v4648_v32 }
0x181e   :  { %v4724_v34 = vpop.permute.xlu1 %4723 }
0x181f   :  { %4729 = vst.msk [vmem:[%s8142_s12] sm:$0xff] %vm295_vm8, %v4724_v34 }
0x182d   :  { %v4726_v6 = vpop.permute.xlu0 %4725 }
0x182e   :  { %4730 = vst.msk [vmem:[%s8142_s12 + $0x8] sm:$0xff] %vm295_vm8, %v4726_v6 }

</bundles_post_ra>
